<compile_context>
chip_gen: v7x
topology: tpu7x:2x2x1
jax: 0.10.0
libtpu: 0.0.40
codegen_flags: <defaults>
</compile_context>

<pallas_src>
import jax
import jax.numpy as jnp
from jax.experimental import pallas as pl
from jax.experimental.pallas import tpu as pltpu

MODEL_DIM = 64
NUM_HEADS = 4
NUM_LAYERS = 2
FF_DIM = 128
HEAD_DIM = MODEL_DIM // NUM_HEADS
LN_EPS = 1e-5


def _layernorm(x, w, b):
    # PyTorch LayerNorm: biased variance, eps inside sqrt.
    mu = jnp.mean(x, axis=-1, keepdims=True)
    var = jnp.mean((x - mu) ** 2, axis=-1, keepdims=True)
    return (x - mu) / jnp.sqrt(var + LN_EPS) * w + b


def small_transformer_kernel(
    x_ref, pe_ref, wp_ref, bp_ref,
    wqkv_ref, bqkv_ref, wo_ref, bo_ref, ln1w_ref, ln1b_ref,
    w1_ref, b1_ref, w2_ref, b2_ref, ln2w_ref, ln2b_ref,
    wout_ref, bout_ref,
    out_ref,
    attn_scratch,
):
    B, S, IN = x_ref.shape
    BS = B * S
    D = MODEL_DIM
    scale = 1.0 / jnp.sqrt(jnp.float32(HEAD_DIM))

    # ---- input projection + positional encoding, all B*S rows at once ----
    x = x_ref[...].reshape(BS, IN)
    x = jnp.dot(x, wp_ref[...], preferred_element_type=jnp.float32) + bp_ref[...]
    x = x + pe_ref[...]                                   # pe pre-tiled to (B*S, D)

    for l in range(NUM_LAYERS):                           # static unroll (L=2)
        # ---- fused QKV projection over all rows: (B*S, 3D) ----
        qkv = jnp.dot(x, wqkv_ref[l],
                      preferred_element_type=jnp.float32) + bqkv_ref[l]
        wo_l = wo_ref[l]                                  # (D, D), (in, out)

        # ---- per-batch / per-head attention (tiny S x S matmuls) ----
        for b in range(B):
            r0 = b * S
            acc = jnp.zeros((S, D), jnp.float32)
            for h in range(NUM_HEADS):
                c = h * HEAD_DIM
                qh = qkv[r0:r0 + S, c:c + HEAD_DIM]
                kh = qkv[r0:r0 + S, D + c:D + c + HEAD_DIM]
                vh = qkv[r0:r0 + S, 2 * D + c:2 * D + c + HEAD_DIM]

                # scores: contract last dims directly (no kh.T materialization)
                s = jax.lax.dot_general(
                    qh, kh, (((1,), (1,)), ((), ())),
                    preferred_element_type=jnp.float32) * scale
                s = s - jnp.max(s, axis=-1, keepdims=True)
                p = jnp.exp(s)
                p = p * pl.reciprocal(jnp.sum(p, axis=-1, keepdims=True),
                                      approx=True)

                head = jnp.dot(p, vh, preferred_element_type=jnp.float32)
                # fold through this head's Wo slice; accumulate (no lane concat)
                acc = acc + jnp.dot(head, wo_l[c:c + HEAD_DIM, :],
                                    preferred_element_type=jnp.float32)
            attn_scratch[r0:r0 + S, :] = acc

        attn = attn_scratch[...] + bo_ref[l]
        x = _layernorm(x + attn, ln1w_ref[l], ln1b_ref[l])

        # ---- feedforward (ReLU), all rows at once ----
        h1 = jnp.maximum(
            jnp.dot(x, w1_ref[l], preferred_element_type=jnp.float32) + b1_ref[l],
            0.0)
        ff = jnp.dot(h1, w2_ref[l], preferred_element_type=jnp.float32) + b2_ref[l]
        x = _layernorm(x + ff, ln2w_ref[l], ln2b_ref[l])

    # ---- last token per batch + output head (VPU mul + lane reduce) ----
    last = jnp.concatenate(
        [x[b * S + S - 1: b * S + S, :] for b in range(B)], axis=0)   # (B, D)
    out_ref[...] = (jnp.sum(last * wout_ref[...], axis=-1, keepdims=True)
                    + bout_ref[...])


def prepare_params(p):
    """One-time wrapper-side conversion: PyTorch (out,in) layout -> (in,out),
    with Q/K/V fused, so the kernel never transposes."""
    wqkv = jnp.concatenate(
        [jnp.swapaxes(p["wq"], 1, 2),
         jnp.swapaxes(p["wk"], 1, 2),
         jnp.swapaxes(p["wv"], 1, 2)], axis=-1)            # (L, D, 3D)
    bqkv = jnp.concatenate([p["bq"], p["bk"], p["bv"]], axis=-1)   # (L, 1, 3D)
    return {
        "wp": p["wp"].T,                                   # (input_dim, D)
        "bp": p["bp"],
        "wqkv": wqkv, "bqkv": bqkv,
        "wo": jnp.swapaxes(p["wo"], 1, 2), "bo": p["bo"],  # (L, D, D)
        "ln1w": p["ln1w"], "ln1b": p["ln1b"],
        "w1": jnp.swapaxes(p["w1"], 1, 2), "b1": p["b1"],  # (L, D, F)
        "w2": jnp.swapaxes(p["w2"], 1, 2), "b2": p["b2"],  # (L, F, D)
        "ln2w": p["ln2w"], "ln2b": p["ln2b"],
        "wout": p["wout"],                                 # (1, D) row, used on VPU
        "bout": p["bout"],
    }


def small_transformer_forward(x, pe, params_pt):
    B, S, _ = x.shape
    kp = prepare_params(params_pt)
    pe_tiled = jnp.tile(pe, (B, 1))                        # (B*S, D), batch-major rows

    inputs = (
        x, pe_tiled,
        kp["wp"], kp["bp"],
        kp["wqkv"], kp["bqkv"], kp["wo"], kp["bo"], kp["ln1w"], kp["ln1b"],
        kp["w1"], kp["b1"], kp["w2"], kp["b2"], kp["ln2w"], kp["ln2b"],
        kp["wout"], kp["bout"],
    )
    vmem = pl.BlockSpec(memory_space=pltpu.MemorySpace.VMEM)
    return pl.pallas_call(
        small_transformer_kernel,
        out_shape=jax.ShapeDtypeStruct((B, 1), jnp.float32),
        in_specs=[vmem] * len(inputs),
        out_specs=vmem,
        scratch_shapes=[pltpu.VMEM((B * S, MODEL_DIM), jnp.float32)],
    )(*inputs)


def make_positional_encoding(seq_len, model_dim):
    position = jnp.arange(seq_len, dtype=jnp.float32)[:, None]
    div_term = jnp.exp(jnp.arange(0, model_dim, 2, dtype=jnp.float32)
                       * (-jnp.log(10000.0) / model_dim))
    pe = jnp.zeros((seq_len, model_dim), dtype=jnp.float32)
    pe = pe.at[:, 0::2].set(jnp.sin(position * div_term))
    pe = pe.at[:, 1::2].set(jnp.cos(position * div_term))
    return pe


def init_params(key, input_dim):
    """Parameters in the PyTorch (out_features, in_features) convention."""
    ks = jax.random.split(key, 16)

    def nrm(k, shape, scale=0.05):
        return scale * jax.random.normal(k, shape, dtype=jnp.float32)

    L, D, F = NUM_LAYERS, MODEL_DIM, FF_DIM
    return {
        # input projection
        "wp": nrm(ks[0], (D, input_dim)), "bp": nrm(ks[1], (1, D)),
        # attention (per-layer stacked along leading axis)
        "wq": nrm(ks[2], (L, D, D)), "bq": nrm(ks[3], (L, 1, D)),
        "wk": nrm(ks[4], (L, D, D)), "bk": nrm(ks[5], (L, 1, D)),
        "wv": nrm(ks[6], (L, D, D)), "bv": nrm(ks[7], (L, 1, D)),
        "wo": nrm(ks[8], (L, D, D)), "bo": nrm(ks[9], (L, 1, D)),
        # layernorms (PyTorch default init: ones / zeros)
        "ln1w": jnp.ones((L, 1, D), jnp.float32), "ln1b": jnp.zeros((L, 1, D), jnp.float32),
        "ln2w": jnp.ones((L, 1, D), jnp.float32), "ln2b": jnp.zeros((L, 1, D), jnp.float32),
        # feedforward
        "w1": nrm(ks[10], (L, F, D)), "b1": nrm(ks[11], (L, 1, F)),
        "w2": nrm(ks[12], (L, D, F)), "b2": nrm(ks[13], (L, 1, D)),
        # output head
        "wout": nrm(ks[14], (1, D)), "bout": nrm(ks[15], (1, 1)),
    }


if __name__ == "__main__":
    B, S, INPUT_DIM = 2, 8, 16
    key = jax.random.PRNGKey(0)
    kx, kp = jax.random.split(key)

    x = jax.random.normal(kx, (B, S, INPUT_DIM), dtype=jnp.float32)
    params = init_params(kp, INPUT_DIM)
    pe = make_positional_encoding(S, MODEL_DIM)

    out = small_transformer_forward(x, pe, params)
    out = jax.block_until_ready(out)
    assert out.shape == (B, 1) and out.dtype == jnp.float32
    assert bool(jnp.all(jnp.isfinite(out)))
    print("KERNEL_OK")
</pallas_src>

<mosaic_0001>
module attributes {stable_mosaic.version = 11 : i64} {
  func.func @small_transformer_kernel(%arg0: memref<2x8x16xf32, #tpu.memory_space<vmem>>, %arg1: memref<16x64xf32, #tpu.memory_space<vmem>>, %arg2: memref<16x64xf32, #tpu.memory_space<vmem>>, %arg3: memref<1x64xf32, #tpu.memory_space<vmem>>, %arg4: memref<2x64x192xf32, #tpu.memory_space<vmem>>, %arg5: memref<2x1x192xf32, #tpu.memory_space<vmem>>, %arg6: memref<2x64x64xf32, #tpu.memory_space<vmem>>, %arg7: memref<2x1x64xf32, #tpu.memory_space<vmem>>, %arg8: memref<2x1x64xf32, #tpu.memory_space<vmem>>, %arg9: memref<2x1x64xf32, #tpu.memory_space<vmem>>, %arg10: memref<2x64x128xf32, #tpu.memory_space<vmem>>, %arg11: memref<2x1x128xf32, #tpu.memory_space<vmem>>, %arg12: memref<2x128x64xf32, #tpu.memory_space<vmem>>, %arg13: memref<2x1x64xf32, #tpu.memory_space<vmem>>, %arg14: memref<2x1x64xf32, #tpu.memory_space<vmem>>, %arg15: memref<2x1x64xf32, #tpu.memory_space<vmem>>, %arg16: memref<1x64xf32, #tpu.memory_space<vmem>>, %arg17: memref<1x1xf32, #tpu.memory_space<vmem>>, %arg18: memref<2x1xf32, #tpu.memory_space<vmem>>, %arg19: memref<16x64xf32, #tpu.memory_space<vmem>>) attributes {dimension_semantics = [], scalar_prefetch = 0 : i64, scratch_operands = 1 : i64, tpu.core_type = #tpu.core_type<tc>} {
    %cst = arith.constant 1.600000e+01 : f32
    %0 = math.sqrt %cst : f32
    %cst_0 = arith.constant 1.000000e+00 : f32
    %1 = arith.divf %cst_0, %0 : f32
    %c0 = arith.constant 0 : index
    %c0_1 = arith.constant 0 : index
    %c0_2 = arith.constant 0 : index
    %2 = vector.load %arg0[%c0, %c0_1, %c0_2] : memref<2x8x16xf32, #tpu.memory_space<vmem>>, vector<2x8x16xf32>
    %3 = vector.shape_cast %2 : vector<2x8x16xf32> to vector<16x16xf32>
    %c0_3 = arith.constant 0 : index
    %c0_4 = arith.constant 0 : index
    %4 = vector.load %arg2[%c0_3, %c0_4] : memref<16x64xf32, #tpu.memory_space<vmem>>, vector<16x64xf32>
    %cst_5 = arith.constant dense<0.000000e+00> : vector<16x64xf32>
    %5 = tpu.matmul %3, %4, %cst_5 {dimension_numbers = #tpu.dot_dimension_numbers<[1], [0], [0], [1], [0, 0, 1, 1], [], []>} : vector<16x16xf32>, vector<16x64xf32>, vector<16x64xf32> -> vector<16x64xf32>
    %c0_6 = arith.constant 0 : index
    %c0_7 = arith.constant 0 : index
    %6 = vector.load %arg3[%c0_6, %c0_7] : memref<1x64xf32, #tpu.memory_space<vmem>>, vector<1x64xf32>
    %7 = vector.broadcast %6 : vector<1x64xf32> to vector<16x64xf32>
    %8 = arith.addf %5, %7 : vector<16x64xf32>
    %c0_8 = arith.constant 0 : index
    %c0_9 = arith.constant 0 : index
    %9 = vector.load %arg1[%c0_8, %c0_9] : memref<16x64xf32, #tpu.memory_space<vmem>>, vector<16x64xf32>
    %10 = arith.addf %8, %9 : vector<16x64xf32>
    %c0_10 = arith.constant 0 : index
    %c0_11 = arith.constant 0 : index
    %c0_12 = arith.constant 0 : index
    %11 = vector.load %arg4[%c0_10, %c0_11, %c0_12] : memref<2x64x192xf32, #tpu.memory_space<vmem>>, vector<1x64x192xf32>
    %12 = vector.shape_cast %11 : vector<1x64x192xf32> to vector<64x192xf32>
    %cst_13 = arith.constant dense<0.000000e+00> : vector<16x192xf32>
    %13 = tpu.matmul %10, %12, %cst_13 {dimension_numbers = #tpu.dot_dimension_numbers<[1], [0], [0], [1], [0, 0, 1, 1], [], []>} : vector<16x64xf32>, vector<64x192xf32>, vector<16x192xf32> -> vector<16x192xf32>
    %c0_14 = arith.constant 0 : index
    %c0_15 = arith.constant 0 : index
    %c0_16 = arith.constant 0 : index
    %14 = vector.load %arg5[%c0_14, %c0_15, %c0_16] : memref<2x1x192xf32, #tpu.memory_space<vmem>>, vector<1x1x192xf32>
    %15 = vector.shape_cast %14 : vector<1x1x192xf32> to vector<1x192xf32>
    %16 = vector.broadcast %15 : vector<1x192xf32> to vector<16x192xf32>
    %17 = arith.addf %13, %16 : vector<16x192xf32>
    %c0_17 = arith.constant 0 : index
    %c0_18 = arith.constant 0 : index
    %c0_19 = arith.constant 0 : index
    %18 = vector.load %arg6[%c0_17, %c0_18, %c0_19] : memref<2x64x64xf32, #tpu.memory_space<vmem>>, vector<1x64x64xf32>
    %19 = vector.shape_cast %18 : vector<1x64x64xf32> to vector<64x64xf32>
    %cst_20 = arith.constant 0.000000e+00 : f32
    %20 = vector.broadcast %cst_20 : f32 to vector<8x64xf32>
    %21 = vector.extract_strided_slice %17 {offsets = [0, 0], sizes = [8, 16], strides = [1, 1]} : vector<16x192xf32> to vector<8x16xf32>
    %22 = vector.extract_strided_slice %17 {offsets = [0, 64], sizes = [8, 16], strides = [1, 1]} : vector<16x192xf32> to vector<8x16xf32>
    %23 = vector.extract_strided_slice %17 {offsets = [0, 128], sizes = [8, 16], strides = [1, 1]} : vector<16x192xf32> to vector<8x16xf32>
    %cst_21 = arith.constant dense<0.000000e+00> : vector<8x8xf32>
    %24 = tpu.matmul %21, %22, %cst_21 {dimension_numbers = #tpu.dot_dimension_numbers<[1], [1], [0], [0], [0, 0, 1, 0], [], []>} : vector<8x16xf32>, vector<8x16xf32>, vector<8x8xf32> -> vector<8x8xf32>
    %25 = vector.broadcast %1 : f32 to vector<8x8xf32>
    %26 = arith.mulf %24, %25 : vector<8x8xf32>
    %cst_22 = arith.constant dense<0xFF800000> : vector<8xf32>
    %27 = vector.multi_reduction <maximumf>, %26, %cst_22 [1] : vector<8x8xf32> to vector<8xf32>
    %28 = vector.shape_cast %27 : vector<8xf32> to vector<8x1xf32>
    %29 = vector.broadcast %28 : vector<8x1xf32> to vector<8x8xf32>
    %30 = arith.subf %26, %29 : vector<8x8xf32>
    %31 = math.exp %30 : vector<8x8xf32>
    %cst_23 = arith.constant dense<0.000000e+00> : vector<8xf32>
    %32 = vector.multi_reduction <add>, %31, %cst_23 [1] : vector<8x8xf32> to vector<8xf32>
    %33 = vector.shape_cast %32 : vector<8xf32> to vector<8x1xf32>
    %34 = tpu.reciprocal %33 {approx = true} : vector<8x1xf32> -> vector<8x1xf32>
    %35 = vector.broadcast %34 : vector<8x1xf32> to vector<8x8xf32>
    %36 = arith.mulf %31, %35 : vector<8x8xf32>
    %cst_24 = arith.constant dense<0.000000e+00> : vector<8x16xf32>
    %37 = tpu.matmul %36, %23, %cst_24 {dimension_numbers = #tpu.dot_dimension_numbers<[1], [0], [0], [1], [0, 0, 1, 1], [], []>} : vector<8x8xf32>, vector<8x16xf32>, vector<8x16xf32> -> vector<8x16xf32>
    %38 = vector.extract_strided_slice %19 {offsets = [0, 0], sizes = [16, 64], strides = [1, 1]} : vector<64x64xf32> to vector<16x64xf32>
    %cst_25 = arith.constant dense<0.000000e+00> : vector<8x64xf32>
    %39 = tpu.matmul %37, %38, %cst_25 {dimension_numbers = #tpu.dot_dimension_numbers<[1], [0], [0], [1], [0, 0, 1, 1], [], []>} : vector<8x16xf32>, vector<16x64xf32>, vector<8x64xf32> -> vector<8x64xf32>
    %40 = arith.addf %20, %39 : vector<8x64xf32>
    %41 = vector.extract_strided_slice %17 {offsets = [0, 16], sizes = [8, 16], strides = [1, 1]} : vector<16x192xf32> to vector<8x16xf32>
    %42 = vector.extract_strided_slice %17 {offsets = [0, 80], sizes = [8, 16], strides = [1, 1]} : vector<16x192xf32> to vector<8x16xf32>
    %43 = vector.extract_strided_slice %17 {offsets = [0, 144], sizes = [8, 16], strides = [1, 1]} : vector<16x192xf32> to vector<8x16xf32>
    %cst_26 = arith.constant dense<0.000000e+00> : vector<8x8xf32>
    %44 = tpu.matmul %41, %42, %cst_26 {dimension_numbers = #tpu.dot_dimension_numbers<[1], [1], [0], [0], [0, 0, 1, 0], [], []>} : vector<8x16xf32>, vector<8x16xf32>, vector<8x8xf32> -> vector<8x8xf32>
    %45 = vector.broadcast %1 : f32 to vector<8x8xf32>
    %46 = arith.mulf %44, %45 : vector<8x8xf32>
    %cst_27 = arith.constant dense<0xFF800000> : vector<8xf32>
    %47 = vector.multi_reduction <maximumf>, %46, %cst_27 [1] : vector<8x8xf32> to vector<8xf32>
    %48 = vector.shape_cast %47 : vector<8xf32> to vector<8x1xf32>
    %49 = vector.broadcast %48 : vector<8x1xf32> to vector<8x8xf32>
    %50 = arith.subf %46, %49 : vector<8x8xf32>
    %51 = math.exp %50 : vector<8x8xf32>
    %cst_28 = arith.constant dense<0.000000e+00> : vector<8xf32>
    %52 = vector.multi_reduction <add>, %51, %cst_28 [1] : vector<8x8xf32> to vector<8xf32>
    %53 = vector.shape_cast %52 : vector<8xf32> to vector<8x1xf32>
    %54 = tpu.reciprocal %53 {approx = true} : vector<8x1xf32> -> vector<8x1xf32>
    %55 = vector.broadcast %54 : vector<8x1xf32> to vector<8x8xf32>
    %56 = arith.mulf %51, %55 : vector<8x8xf32>
    %cst_29 = arith.constant dense<0.000000e+00> : vector<8x16xf32>
    %57 = tpu.matmul %56, %43, %cst_29 {dimension_numbers = #tpu.dot_dimension_numbers<[1], [0], [0], [1], [0, 0, 1, 1], [], []>} : vector<8x8xf32>, vector<8x16xf32>, vector<8x16xf32> -> vector<8x16xf32>
    %58 = vector.extract_strided_slice %19 {offsets = [16, 0], sizes = [16, 64], strides = [1, 1]} : vector<64x64xf32> to vector<16x64xf32>
    %cst_30 = arith.constant dense<0.000000e+00> : vector<8x64xf32>
    %59 = tpu.matmul %57, %58, %cst_30 {dimension_numbers = #tpu.dot_dimension_numbers<[1], [0], [0], [1], [0, 0, 1, 1], [], []>} : vector<8x16xf32>, vector<16x64xf32>, vector<8x64xf32> -> vector<8x64xf32>
    %60 = arith.addf %40, %59 : vector<8x64xf32>
    %61 = vector.extract_strided_slice %17 {offsets = [0, 32], sizes = [8, 16], strides = [1, 1]} : vector<16x192xf32> to vector<8x16xf32>
    %62 = vector.extract_strided_slice %17 {offsets = [0, 96], sizes = [8, 16], strides = [1, 1]} : vector<16x192xf32> to vector<8x16xf32>
    %63 = vector.extract_strided_slice %17 {offsets = [0, 160], sizes = [8, 16], strides = [1, 1]} : vector<16x192xf32> to vector<8x16xf32>
    %cst_31 = arith.constant dense<0.000000e+00> : vector<8x8xf32>
    %64 = tpu.matmul %61, %62, %cst_31 {dimension_numbers = #tpu.dot_dimension_numbers<[1], [1], [0], [0], [0, 0, 1, 0], [], []>} : vector<8x16xf32>, vector<8x16xf32>, vector<8x8xf32> -> vector<8x8xf32>
    %65 = vector.broadcast %1 : f32 to vector<8x8xf32>
    %66 = arith.mulf %64, %65 : vector<8x8xf32>
    %cst_32 = arith.constant dense<0xFF800000> : vector<8xf32>
    %67 = vector.multi_reduction <maximumf>, %66, %cst_32 [1] : vector<8x8xf32> to vector<8xf32>
    %68 = vector.shape_cast %67 : vector<8xf32> to vector<8x1xf32>
    %69 = vector.broadcast %68 : vector<8x1xf32> to vector<8x8xf32>
    %70 = arith.subf %66, %69 : vector<8x8xf32>
    %71 = math.exp %70 : vector<8x8xf32>
    %cst_33 = arith.constant dense<0.000000e+00> : vector<8xf32>
    %72 = vector.multi_reduction <add>, %71, %cst_33 [1] : vector<8x8xf32> to vector<8xf32>
    %73 = vector.shape_cast %72 : vector<8xf32> to vector<8x1xf32>
    %74 = tpu.reciprocal %73 {approx = true} : vector<8x1xf32> -> vector<8x1xf32>
    %75 = vector.broadcast %74 : vector<8x1xf32> to vector<8x8xf32>
    %76 = arith.mulf %71, %75 : vector<8x8xf32>
    %cst_34 = arith.constant dense<0.000000e+00> : vector<8x16xf32>
    %77 = tpu.matmul %76, %63, %cst_34 {dimension_numbers = #tpu.dot_dimension_numbers<[1], [0], [0], [1], [0, 0, 1, 1], [], []>} : vector<8x8xf32>, vector<8x16xf32>, vector<8x16xf32> -> vector<8x16xf32>
    %78 = vector.extract_strided_slice %19 {offsets = [32, 0], sizes = [16, 64], strides = [1, 1]} : vector<64x64xf32> to vector<16x64xf32>
    %cst_35 = arith.constant dense<0.000000e+00> : vector<8x64xf32>
    %79 = tpu.matmul %77, %78, %cst_35 {dimension_numbers = #tpu.dot_dimension_numbers<[1], [0], [0], [1], [0, 0, 1, 1], [], []>} : vector<8x16xf32>, vector<16x64xf32>, vector<8x64xf32> -> vector<8x64xf32>
    %80 = arith.addf %60, %79 : vector<8x64xf32>
    %81 = vector.extract_strided_slice %17 {offsets = [0, 48], sizes = [8, 16], strides = [1, 1]} : vector<16x192xf32> to vector<8x16xf32>
    %82 = vector.extract_strided_slice %17 {offsets = [0, 112], sizes = [8, 16], strides = [1, 1]} : vector<16x192xf32> to vector<8x16xf32>
    %83 = vector.extract_strided_slice %17 {offsets = [0, 176], sizes = [8, 16], strides = [1, 1]} : vector<16x192xf32> to vector<8x16xf32>
    %cst_36 = arith.constant dense<0.000000e+00> : vector<8x8xf32>
    %84 = tpu.matmul %81, %82, %cst_36 {dimension_numbers = #tpu.dot_dimension_numbers<[1], [1], [0], [0], [0, 0, 1, 0], [], []>} : vector<8x16xf32>, vector<8x16xf32>, vector<8x8xf32> -> vector<8x8xf32>
    %85 = vector.broadcast %1 : f32 to vector<8x8xf32>
    %86 = arith.mulf %84, %85 : vector<8x8xf32>
    %cst_37 = arith.constant dense<0xFF800000> : vector<8xf32>
    %87 = vector.multi_reduction <maximumf>, %86, %cst_37 [1] : vector<8x8xf32> to vector<8xf32>
    %88 = vector.shape_cast %87 : vector<8xf32> to vector<8x1xf32>
    %89 = vector.broadcast %88 : vector<8x1xf32> to vector<8x8xf32>
    %90 = arith.subf %86, %89 : vector<8x8xf32>
    %91 = math.exp %90 : vector<8x8xf32>
    %cst_38 = arith.constant dense<0.000000e+00> : vector<8xf32>
    %92 = vector.multi_reduction <add>, %91, %cst_38 [1] : vector<8x8xf32> to vector<8xf32>
    %93 = vector.shape_cast %92 : vector<8xf32> to vector<8x1xf32>
    %94 = tpu.reciprocal %93 {approx = true} : vector<8x1xf32> -> vector<8x1xf32>
    %95 = vector.broadcast %94 : vector<8x1xf32> to vector<8x8xf32>
    %96 = arith.mulf %91, %95 : vector<8x8xf32>
    %cst_39 = arith.constant dense<0.000000e+00> : vector<8x16xf32>
    %97 = tpu.matmul %96, %83, %cst_39 {dimension_numbers = #tpu.dot_dimension_numbers<[1], [0], [0], [1], [0, 0, 1, 1], [], []>} : vector<8x8xf32>, vector<8x16xf32>, vector<8x16xf32> -> vector<8x16xf32>
    %98 = vector.extract_strided_slice %19 {offsets = [48, 0], sizes = [16, 64], strides = [1, 1]} : vector<64x64xf32> to vector<16x64xf32>
    %cst_40 = arith.constant dense<0.000000e+00> : vector<8x64xf32>
    %99 = tpu.matmul %97, %98, %cst_40 {dimension_numbers = #tpu.dot_dimension_numbers<[1], [0], [0], [1], [0, 0, 1, 1], [], []>} : vector<8x16xf32>, vector<16x64xf32>, vector<8x64xf32> -> vector<8x64xf32>
    %100 = arith.addf %80, %99 : vector<8x64xf32>
    %c0_41 = arith.constant 0 : index
    %c0_42 = arith.constant 0 : index
    %101 = vector.load %arg19[%c0_41, %c0_42] : memref<16x64xf32, #tpu.memory_space<vmem>>, vector<8x64xf32>
    tpu.vector_store %arg19[%c0_41, %c0_42], %100 {strides = array<i32>} : memref<16x64xf32, #tpu.memory_space<vmem>>, vector<8x64xf32>,
    %cst_43 = arith.constant 0.000000e+00 : f32
    %102 = vector.broadcast %cst_43 : f32 to vector<8x64xf32>
    %103 = vector.extract_strided_slice %17 {offsets = [8, 0], sizes = [8, 16], strides = [1, 1]} : vector<16x192xf32> to vector<8x16xf32>
    %104 = vector.extract_strided_slice %17 {offsets = [8, 64], sizes = [8, 16], strides = [1, 1]} : vector<16x192xf32> to vector<8x16xf32>
    %105 = vector.extract_strided_slice %17 {offsets = [8, 128], sizes = [8, 16], strides = [1, 1]} : vector<16x192xf32> to vector<8x16xf32>
    %cst_44 = arith.constant dense<0.000000e+00> : vector<8x8xf32>
    %106 = tpu.matmul %103, %104, %cst_44 {dimension_numbers = #tpu.dot_dimension_numbers<[1], [1], [0], [0], [0, 0, 1, 0], [], []>} : vector<8x16xf32>, vector<8x16xf32>, vector<8x8xf32> -> vector<8x8xf32>
    %107 = vector.broadcast %1 : f32 to vector<8x8xf32>
    %108 = arith.mulf %106, %107 : vector<8x8xf32>
    %cst_45 = arith.constant dense<0xFF800000> : vector<8xf32>
    %109 = vector.multi_reduction <maximumf>, %108, %cst_45 [1] : vector<8x8xf32> to vector<8xf32>
    %110 = vector.shape_cast %109 : vector<8xf32> to vector<8x1xf32>
    %111 = vector.broadcast %110 : vector<8x1xf32> to vector<8x8xf32>
    %112 = arith.subf %108, %111 : vector<8x8xf32>
    %113 = math.exp %112 : vector<8x8xf32>
    %cst_46 = arith.constant dense<0.000000e+00> : vector<8xf32>
    %114 = vector.multi_reduction <add>, %113, %cst_46 [1] : vector<8x8xf32> to vector<8xf32>
    %115 = vector.shape_cast %114 : vector<8xf32> to vector<8x1xf32>
    %116 = tpu.reciprocal %115 {approx = true} : vector<8x1xf32> -> vector<8x1xf32>
    %117 = vector.broadcast %116 : vector<8x1xf32> to vector<8x8xf32>
    %118 = arith.mulf %113, %117 : vector<8x8xf32>
    %cst_47 = arith.constant dense<0.000000e+00> : vector<8x16xf32>
    %119 = tpu.matmul %118, %105, %cst_47 {dimension_numbers = #tpu.dot_dimension_numbers<[1], [0], [0], [1], [0, 0, 1, 1], [], []>} : vector<8x8xf32>, vector<8x16xf32>, vector<8x16xf32> -> vector<8x16xf32>
    %120 = vector.extract_strided_slice %19 {offsets = [0, 0], sizes = [16, 64], strides = [1, 1]} : vector<64x64xf32> to vector<16x64xf32>
    %cst_48 = arith.constant dense<0.000000e+00> : vector<8x64xf32>
    %121 = tpu.matmul %119, %120, %cst_48 {dimension_numbers = #tpu.dot_dimension_numbers<[1], [0], [0], [1], [0, 0, 1, 1], [], []>} : vector<8x16xf32>, vector<16x64xf32>, vector<8x64xf32> -> vector<8x64xf32>
    %122 = arith.addf %102, %121 : vector<8x64xf32>
    %123 = vector.extract_strided_slice %17 {offsets = [8, 16], sizes = [8, 16], strides = [1, 1]} : vector<16x192xf32> to vector<8x16xf32>
    %124 = vector.extract_strided_slice %17 {offsets = [8, 80], sizes = [8, 16], strides = [1, 1]} : vector<16x192xf32> to vector<8x16xf32>
    %125 = vector.extract_strided_slice %17 {offsets = [8, 144], sizes = [8, 16], strides = [1, 1]} : vector<16x192xf32> to vector<8x16xf32>
    %cst_49 = arith.constant dense<0.000000e+00> : vector<8x8xf32>
    %126 = tpu.matmul %123, %124, %cst_49 {dimension_numbers = #tpu.dot_dimension_numbers<[1], [1], [0], [0], [0, 0, 1, 0], [], []>} : vector<8x16xf32>, vector<8x16xf32>, vector<8x8xf32> -> vector<8x8xf32>
    %127 = vector.broadcast %1 : f32 to vector<8x8xf32>
    %128 = arith.mulf %126, %127 : vector<8x8xf32>
    %cst_50 = arith.constant dense<0xFF800000> : vector<8xf32>
    %129 = vector.multi_reduction <maximumf>, %128, %cst_50 [1] : vector<8x8xf32> to vector<8xf32>
    %130 = vector.shape_cast %129 : vector<8xf32> to vector<8x1xf32>
    %131 = vector.broadcast %130 : vector<8x1xf32> to vector<8x8xf32>
    %132 = arith.subf %128, %131 : vector<8x8xf32>
    %133 = math.exp %132 : vector<8x8xf32>
    %cst_51 = arith.constant dense<0.000000e+00> : vector<8xf32>
    %134 = vector.multi_reduction <add>, %133, %cst_51 [1] : vector<8x8xf32> to vector<8xf32>
    %135 = vector.shape_cast %134 : vector<8xf32> to vector<8x1xf32>
    %136 = tpu.reciprocal %135 {approx = true} : vector<8x1xf32> -> vector<8x1xf32>
    %137 = vector.broadcast %136 : vector<8x1xf32> to vector<8x8xf32>
    %138 = arith.mulf %133, %137 : vector<8x8xf32>
    %cst_52 = arith.constant dense<0.000000e+00> : vector<8x16xf32>
    %139 = tpu.matmul %138, %125, %cst_52 {dimension_numbers = #tpu.dot_dimension_numbers<[1], [0], [0], [1], [0, 0, 1, 1], [], []>} : vector<8x8xf32>, vector<8x16xf32>, vector<8x16xf32> -> vector<8x16xf32>
    %140 = vector.extract_strided_slice %19 {offsets = [16, 0], sizes = [16, 64], strides = [1, 1]} : vector<64x64xf32> to vector<16x64xf32>
    %cst_53 = arith.constant dense<0.000000e+00> : vector<8x64xf32>
    %141 = tpu.matmul %139, %140, %cst_53 {dimension_numbers = #tpu.dot_dimension_numbers<[1], [0], [0], [1], [0, 0, 1, 1], [], []>} : vector<8x16xf32>, vector<16x64xf32>, vector<8x64xf32> -> vector<8x64xf32>
    %142 = arith.addf %122, %141 : vector<8x64xf32>
    %143 = vector.extract_strided_slice %17 {offsets = [8, 32], sizes = [8, 16], strides = [1, 1]} : vector<16x192xf32> to vector<8x16xf32>
    %144 = vector.extract_strided_slice %17 {offsets = [8, 96], sizes = [8, 16], strides = [1, 1]} : vector<16x192xf32> to vector<8x16xf32>
    %145 = vector.extract_strided_slice %17 {offsets = [8, 160], sizes = [8, 16], strides = [1, 1]} : vector<16x192xf32> to vector<8x16xf32>
    %cst_54 = arith.constant dense<0.000000e+00> : vector<8x8xf32>
    %146 = tpu.matmul %143, %144, %cst_54 {dimension_numbers = #tpu.dot_dimension_numbers<[1], [1], [0], [0], [0, 0, 1, 0], [], []>} : vector<8x16xf32>, vector<8x16xf32>, vector<8x8xf32> -> vector<8x8xf32>
    %147 = vector.broadcast %1 : f32 to vector<8x8xf32>
    %148 = arith.mulf %146, %147 : vector<8x8xf32>
    %cst_55 = arith.constant dense<0xFF800000> : vector<8xf32>
    %149 = vector.multi_reduction <maximumf>, %148, %cst_55 [1] : vector<8x8xf32> to vector<8xf32>
    %150 = vector.shape_cast %149 : vector<8xf32> to vector<8x1xf32>
    %151 = vector.broadcast %150 : vector<8x1xf32> to vector<8x8xf32>
    %152 = arith.subf %148, %151 : vector<8x8xf32>
    %153 = math.exp %152 : vector<8x8xf32>
    %cst_56 = arith.constant dense<0.000000e+00> : vector<8xf32>
    %154 = vector.multi_reduction <add>, %153, %cst_56 [1] : vector<8x8xf32> to vector<8xf32>
    %155 = vector.shape_cast %154 : vector<8xf32> to vector<8x1xf32>
    %156 = tpu.reciprocal %155 {approx = true} : vector<8x1xf32> -> vector<8x1xf32>
    %157 = vector.broadcast %156 : vector<8x1xf32> to vector<8x8xf32>
    %158 = arith.mulf %153, %157 : vector<8x8xf32>
    %cst_57 = arith.constant dense<0.000000e+00> : vector<8x16xf32>
    %159 = tpu.matmul %158, %145, %cst_57 {dimension_numbers = #tpu.dot_dimension_numbers<[1], [0], [0], [1], [0, 0, 1, 1], [], []>} : vector<8x8xf32>, vector<8x16xf32>, vector<8x16xf32> -> vector<8x16xf32>
    %160 = vector.extract_strided_slice %19 {offsets = [32, 0], sizes = [16, 64], strides = [1, 1]} : vector<64x64xf32> to vector<16x64xf32>
    %cst_58 = arith.constant dense<0.000000e+00> : vector<8x64xf32>
    %161 = tpu.matmul %159, %160, %cst_58 {dimension_numbers = #tpu.dot_dimension_numbers<[1], [0], [0], [1], [0, 0, 1, 1], [], []>} : vector<8x16xf32>, vector<16x64xf32>, vector<8x64xf32> -> vector<8x64xf32>
    %162 = arith.addf %142, %161 : vector<8x64xf32>
    %163 = vector.extract_strided_slice %17 {offsets = [8, 48], sizes = [8, 16], strides = [1, 1]} : vector<16x192xf32> to vector<8x16xf32>
    %164 = vector.extract_strided_slice %17 {offsets = [8, 112], sizes = [8, 16], strides = [1, 1]} : vector<16x192xf32> to vector<8x16xf32>
    %165 = vector.extract_strided_slice %17 {offsets = [8, 176], sizes = [8, 16], strides = [1, 1]} : vector<16x192xf32> to vector<8x16xf32>
    %cst_59 = arith.constant dense<0.000000e+00> : vector<8x8xf32>
    %166 = tpu.matmul %163, %164, %cst_59 {dimension_numbers = #tpu.dot_dimension_numbers<[1], [1], [0], [0], [0, 0, 1, 0], [], []>} : vector<8x16xf32>, vector<8x16xf32>, vector<8x8xf32> -> vector<8x8xf32>
    %167 = vector.broadcast %1 : f32 to vector<8x8xf32>
    %168 = arith.mulf %166, %167 : vector<8x8xf32>
    %cst_60 = arith.constant dense<0xFF800000> : vector<8xf32>
    %169 = vector.multi_reduction <maximumf>, %168, %cst_60 [1] : vector<8x8xf32> to vector<8xf32>
    %170 = vector.shape_cast %169 : vector<8xf32> to vector<8x1xf32>
    %171 = vector.broadcast %170 : vector<8x1xf32> to vector<8x8xf32>
    %172 = arith.subf %168, %171 : vector<8x8xf32>
    %173 = math.exp %172 : vector<8x8xf32>
    %cst_61 = arith.constant dense<0.000000e+00> : vector<8xf32>
    %174 = vector.multi_reduction <add>, %173, %cst_61 [1] : vector<8x8xf32> to vector<8xf32>
    %175 = vector.shape_cast %174 : vector<8xf32> to vector<8x1xf32>
    %176 = tpu.reciprocal %175 {approx = true} : vector<8x1xf32> -> vector<8x1xf32>
    %177 = vector.broadcast %176 : vector<8x1xf32> to vector<8x8xf32>
    %178 = arith.mulf %173, %177 : vector<8x8xf32>
    %cst_62 = arith.constant dense<0.000000e+00> : vector<8x16xf32>
    %179 = tpu.matmul %178, %165, %cst_62 {dimension_numbers = #tpu.dot_dimension_numbers<[1], [0], [0], [1], [0, 0, 1, 1], [], []>} : vector<8x8xf32>, vector<8x16xf32>, vector<8x16xf32> -> vector<8x16xf32>
    %180 = vector.extract_strided_slice %19 {offsets = [48, 0], sizes = [16, 64], strides = [1, 1]} : vector<64x64xf32> to vector<16x64xf32>
    %cst_63 = arith.constant dense<0.000000e+00> : vector<8x64xf32>
    %181 = tpu.matmul %179, %180, %cst_63 {dimension_numbers = #tpu.dot_dimension_numbers<[1], [0], [0], [1], [0, 0, 1, 1], [], []>} : vector<8x16xf32>, vector<16x64xf32>, vector<8x64xf32> -> vector<8x64xf32>
    %182 = arith.addf %162, %181 : vector<8x64xf32>
    %c8 = arith.constant 8 : index
    %c0_64 = arith.constant 0 : index
    %183 = vector.load %arg19[%c8, %c0_64] : memref<16x64xf32, #tpu.memory_space<vmem>>, vector<8x64xf32>
    tpu.vector_store %arg19[%c8, %c0_64], %182 {strides = array<i32>} : memref<16x64xf32, #tpu.memory_space<vmem>>, vector<8x64xf32>,
    %c0_65 = arith.constant 0 : index
    %c0_66 = arith.constant 0 : index
    %184 = vector.load %arg19[%c0_65, %c0_66] : memref<16x64xf32, #tpu.memory_space<vmem>>, vector<16x64xf32>
    %c0_67 = arith.constant 0 : index
    %c0_68 = arith.constant 0 : index
    %c0_69 = arith.constant 0 : index
    %185 = vector.load %arg7[%c0_67, %c0_68, %c0_69] : memref<2x1x64xf32, #tpu.memory_space<vmem>>, vector<1x1x64xf32>
    %186 = vector.shape_cast %185 : vector<1x1x64xf32> to vector<1x64xf32>
    %187 = vector.broadcast %186 : vector<1x64xf32> to vector<16x64xf32>
    %188 = arith.addf %184, %187 : vector<16x64xf32>
    %189 = arith.addf %10, %188 : vector<16x64xf32>
    %c0_70 = arith.constant 0 : index
    %c0_71 = arith.constant 0 : index
    %c0_72 = arith.constant 0 : index
    %190 = vector.load %arg8[%c0_70, %c0_71, %c0_72] : memref<2x1x64xf32, #tpu.memory_space<vmem>>, vector<1x1x64xf32>
    %191 = vector.shape_cast %190 : vector<1x1x64xf32> to vector<1x64xf32>
    %c0_73 = arith.constant 0 : index
    %c0_74 = arith.constant 0 : index
    %c0_75 = arith.constant 0 : index
    %192 = vector.load %arg9[%c0_73, %c0_74, %c0_75] : memref<2x1x64xf32, #tpu.memory_space<vmem>>, vector<1x1x64xf32>
    %193 = vector.shape_cast %192 : vector<1x1x64xf32> to vector<1x64xf32>
    %cst_76 = arith.constant dense<0.000000e+00> : vector<16xf32>
    %194 = vector.multi_reduction <add>, %189, %cst_76 [1] : vector<16x64xf32> to vector<16xf32>
    %195 = vector.shape_cast %194 : vector<16xf32> to vector<16x1xf32>
    %cst_77 = arith.constant 6.400000e+01 : f32
    %196 = vector.broadcast %cst_77 : f32 to vector<16x1xf32>
    %197 = arith.divf %195, %196 : vector<16x1xf32>
    %198 = vector.broadcast %197 : vector<16x1xf32> to vector<16x64xf32>
    %199 = arith.subf %189, %198 : vector<16x64xf32>
    %200 = arith.mulf %199, %199 : vector<16x64xf32>
    %cst_78 = arith.constant dense<0.000000e+00> : vector<16xf32>
    %201 = vector.multi_reduction <add>, %200, %cst_78 [1] : vector<16x64xf32> to vector<16xf32>
    %202 = vector.shape_cast %201 : vector<16xf32> to vector<16x1xf32>
    %cst_79 = arith.constant 6.400000e+01 : f32
    %203 = vector.broadcast %cst_79 : f32 to vector<16x1xf32>
    %204 = arith.divf %202, %203 : vector<16x1xf32>
    %205 = vector.broadcast %197 : vector<16x1xf32> to vector<16x64xf32>
    %206 = arith.subf %189, %205 : vector<16x64xf32>
    %cst_80 = arith.constant 9.99999974E-6 : f32
    %207 = vector.broadcast %cst_80 : f32 to vector<16x1xf32>
    %208 = arith.addf %204, %207 : vector<16x1xf32>
    %209 = math.sqrt %208 : vector<16x1xf32>
    %210 = vector.broadcast %209 : vector<16x1xf32> to vector<16x64xf32>
    %211 = arith.divf %206, %210 : vector<16x64xf32>
    %212 = vector.broadcast %191 : vector<1x64xf32> to vector<16x64xf32>
    %213 = arith.mulf %211, %212 : vector<16x64xf32>
    %214 = vector.broadcast %193 : vector<1x64xf32> to vector<16x64xf32>
    %215 = arith.addf %213, %214 : vector<16x64xf32>
    %c0_81 = arith.constant 0 : index
    %c0_82 = arith.constant 0 : index
    %c0_83 = arith.constant 0 : index
    %216 = vector.load %arg10[%c0_81, %c0_82, %c0_83] : memref<2x64x128xf32, #tpu.memory_space<vmem>>, vector<1x64x128xf32>
    %217 = vector.shape_cast %216 : vector<1x64x128xf32> to vector<64x128xf32>
    %cst_84 = arith.constant dense<0.000000e+00> : vector<16x128xf32>
    %218 = tpu.matmul %215, %217, %cst_84 {dimension_numbers = #tpu.dot_dimension_numbers<[1], [0], [0], [1], [0, 0, 1, 1], [], []>} : vector<16x64xf32>, vector<64x128xf32>, vector<16x128xf32> -> vector<16x128xf32>
    %c0_85 = arith.constant 0 : index
    %c0_86 = arith.constant 0 : index
    %c0_87 = arith.constant 0 : index
    %219 = vector.load %arg11[%c0_85, %c0_86, %c0_87] : memref<2x1x128xf32, #tpu.memory_space<vmem>>, vector<1x1x128xf32>
    %220 = vector.shape_cast %219 : vector<1x1x128xf32> to vector<1x128xf32>
    %221 = vector.broadcast %220 : vector<1x128xf32> to vector<16x128xf32>
    %222 = arith.addf %218, %221 : vector<16x128xf32>
    %cst_88 = arith.constant 0.000000e+00 : f32
    %223 = vector.broadcast %cst_88 : f32 to vector<16x128xf32>
    %224 = arith.maximumf %222, %223 : vector<16x128xf32>
    %c0_89 = arith.constant 0 : index
    %c0_90 = arith.constant 0 : index
    %c0_91 = arith.constant 0 : index
    %225 = vector.load %arg12[%c0_89, %c0_90, %c0_91] : memref<2x128x64xf32, #tpu.memory_space<vmem>>, vector<1x128x64xf32>
    %226 = vector.shape_cast %225 : vector<1x128x64xf32> to vector<128x64xf32>
    %cst_92 = arith.constant dense<0.000000e+00> : vector<16x64xf32>
    %227 = tpu.matmul %224, %226, %cst_92 {dimension_numbers = #tpu.dot_dimension_numbers<[1], [0], [0], [1], [0, 0, 1, 1], [], []>} : vector<16x128xf32>, vector<128x64xf32>, vector<16x64xf32> -> vector<16x64xf32>
    %c0_93 = arith.constant 0 : index
    %c0_94 = arith.constant 0 : index
    %c0_95 = arith.constant 0 : index
    %228 = vector.load %arg13[%c0_93, %c0_94, %c0_95] : memref<2x1x64xf32, #tpu.memory_space<vmem>>, vector<1x1x64xf32>
    %229 = vector.shape_cast %228 : vector<1x1x64xf32> to vector<1x64xf32>
    %230 = vector.broadcast %229 : vector<1x64xf32> to vector<16x64xf32>
    %231 = arith.addf %227, %230 : vector<16x64xf32>
    %232 = arith.addf %215, %231 : vector<16x64xf32>
    %c0_96 = arith.constant 0 : index
    %c0_97 = arith.constant 0 : index
    %c0_98 = arith.constant 0 : index
    %233 = vector.load %arg14[%c0_96, %c0_97, %c0_98] : memref<2x1x64xf32, #tpu.memory_space<vmem>>, vector<1x1x64xf32>
    %234 = vector.shape_cast %233 : vector<1x1x64xf32> to vector<1x64xf32>
    %c0_99 = arith.constant 0 : index
    %c0_100 = arith.constant 0 : index
    %c0_101 = arith.constant 0 : index
    %235 = vector.load %arg15[%c0_99, %c0_100, %c0_101] : memref<2x1x64xf32, #tpu.memory_space<vmem>>, vector<1x1x64xf32>
    %236 = vector.shape_cast %235 : vector<1x1x64xf32> to vector<1x64xf32>
    %cst_102 = arith.constant dense<0.000000e+00> : vector<16xf32>
    %237 = vector.multi_reduction <add>, %232, %cst_102 [1] : vector<16x64xf32> to vector<16xf32>
    %238 = vector.shape_cast %237 : vector<16xf32> to vector<16x1xf32>
    %cst_103 = arith.constant 6.400000e+01 : f32
    %239 = vector.broadcast %cst_103 : f32 to vector<16x1xf32>
    %240 = arith.divf %238, %239 : vector<16x1xf32>
    %241 = vector.broadcast %240 : vector<16x1xf32> to vector<16x64xf32>
    %242 = arith.subf %232, %241 : vector<16x64xf32>
    %243 = arith.mulf %242, %242 : vector<16x64xf32>
    %cst_104 = arith.constant dense<0.000000e+00> : vector<16xf32>
    %244 = vector.multi_reduction <add>, %243, %cst_104 [1] : vector<16x64xf32> to vector<16xf32>
    %245 = vector.shape_cast %244 : vector<16xf32> to vector<16x1xf32>
    %cst_105 = arith.constant 6.400000e+01 : f32
    %246 = vector.broadcast %cst_105 : f32 to vector<16x1xf32>
    %247 = arith.divf %245, %246 : vector<16x1xf32>
    %248 = vector.broadcast %240 : vector<16x1xf32> to vector<16x64xf32>
    %249 = arith.subf %232, %248 : vector<16x64xf32>
    %cst_106 = arith.constant 9.99999974E-6 : f32
    %250 = vector.broadcast %cst_106 : f32 to vector<16x1xf32>
    %251 = arith.addf %247, %250 : vector<16x1xf32>
    %252 = math.sqrt %251 : vector<16x1xf32>
    %253 = vector.broadcast %252 : vector<16x1xf32> to vector<16x64xf32>
    %254 = arith.divf %249, %253 : vector<16x64xf32>
    %255 = vector.broadcast %234 : vector<1x64xf32> to vector<16x64xf32>
    %256 = arith.mulf %254, %255 : vector<16x64xf32>
    %257 = vector.broadcast %236 : vector<1x64xf32> to vector<16x64xf32>
    %258 = arith.addf %256, %257 : vector<16x64xf32>
    %c1 = arith.constant 1 : index
    %c0_107 = arith.constant 0 : index
    %c0_108 = arith.constant 0 : index
    %259 = vector.load %arg4[%c1, %c0_107, %c0_108] : memref<2x64x192xf32, #tpu.memory_space<vmem>>, vector<1x64x192xf32>
    %260 = vector.shape_cast %259 : vector<1x64x192xf32> to vector<64x192xf32>
    %cst_109 = arith.constant dense<0.000000e+00> : vector<16x192xf32>
    %261 = tpu.matmul %258, %260, %cst_109 {dimension_numbers = #tpu.dot_dimension_numbers<[1], [0], [0], [1], [0, 0, 1, 1], [], []>} : vector<16x64xf32>, vector<64x192xf32>, vector<16x192xf32> -> vector<16x192xf32>
    %c1_110 = arith.constant 1 : index
    %c0_111 = arith.constant 0 : index
    %c0_112 = arith.constant 0 : index
    %262 = vector.load %arg5[%c1_110, %c0_111, %c0_112] : memref<2x1x192xf32, #tpu.memory_space<vmem>>, vector<1x1x192xf32>
    %263 = vector.shape_cast %262 : vector<1x1x192xf32> to vector<1x192xf32>
    %264 = vector.broadcast %263 : vector<1x192xf32> to vector<16x192xf32>
    %265 = arith.addf %261, %264 : vector<16x192xf32>
    %c1_113 = arith.constant 1 : index
    %c0_114 = arith.constant 0 : index
    %c0_115 = arith.constant 0 : index
    %266 = vector.load %arg6[%c1_113, %c0_114, %c0_115] : memref<2x64x64xf32, #tpu.memory_space<vmem>>, vector<1x64x64xf32>
    %267 = vector.shape_cast %266 : vector<1x64x64xf32> to vector<64x64xf32>
    %cst_116 = arith.constant 0.000000e+00 : f32
    %268 = vector.broadcast %cst_116 : f32 to vector<8x64xf32>
    %269 = vector.extract_strided_slice %265 {offsets = [0, 0], sizes = [8, 16], strides = [1, 1]} : vector<16x192xf32> to vector<8x16xf32>
    %270 = vector.extract_strided_slice %265 {offsets = [0, 64], sizes = [8, 16], strides = [1, 1]} : vector<16x192xf32> to vector<8x16xf32>
    %271 = vector.extract_strided_slice %265 {offsets = [0, 128], sizes = [8, 16], strides = [1, 1]} : vector<16x192xf32> to vector<8x16xf32>
    %cst_117 = arith.constant dense<0.000000e+00> : vector<8x8xf32>
    %272 = tpu.matmul %269, %270, %cst_117 {dimension_numbers = #tpu.dot_dimension_numbers<[1], [1], [0], [0], [0, 0, 1, 0], [], []>} : vector<8x16xf32>, vector<8x16xf32>, vector<8x8xf32> -> vector<8x8xf32>
    %273 = vector.broadcast %1 : f32 to vector<8x8xf32>
    %274 = arith.mulf %272, %273 : vector<8x8xf32>
    %cst_118 = arith.constant dense<0xFF800000> : vector<8xf32>
    %275 = vector.multi_reduction <maximumf>, %274, %cst_118 [1] : vector<8x8xf32> to vector<8xf32>
    %276 = vector.shape_cast %275 : vector<8xf32> to vector<8x1xf32>
    %277 = vector.broadcast %276 : vector<8x1xf32> to vector<8x8xf32>
    %278 = arith.subf %274, %277 : vector<8x8xf32>
    %279 = math.exp %278 : vector<8x8xf32>
    %cst_119 = arith.constant dense<0.000000e+00> : vector<8xf32>
    %280 = vector.multi_reduction <add>, %279, %cst_119 [1] : vector<8x8xf32> to vector<8xf32>
    %281 = vector.shape_cast %280 : vector<8xf32> to vector<8x1xf32>
    %282 = tpu.reciprocal %281 {approx = true} : vector<8x1xf32> -> vector<8x1xf32>
    %283 = vector.broadcast %282 : vector<8x1xf32> to vector<8x8xf32>
    %284 = arith.mulf %279, %283 : vector<8x8xf32>
    %cst_120 = arith.constant dense<0.000000e+00> : vector<8x16xf32>
    %285 = tpu.matmul %284, %271, %cst_120 {dimension_numbers = #tpu.dot_dimension_numbers<[1], [0], [0], [1], [0, 0, 1, 1], [], []>} : vector<8x8xf32>, vector<8x16xf32>, vector<8x16xf32> -> vector<8x16xf32>
    %286 = vector.extract_strided_slice %267 {offsets = [0, 0], sizes = [16, 64], strides = [1, 1]} : vector<64x64xf32> to vector<16x64xf32>
    %cst_121 = arith.constant dense<0.000000e+00> : vector<8x64xf32>
    %287 = tpu.matmul %285, %286, %cst_121 {dimension_numbers = #tpu.dot_dimension_numbers<[1], [0], [0], [1], [0, 0, 1, 1], [], []>} : vector<8x16xf32>, vector<16x64xf32>, vector<8x64xf32> -> vector<8x64xf32>
    %288 = arith.addf %268, %287 : vector<8x64xf32>
    %289 = vector.extract_strided_slice %265 {offsets = [0, 16], sizes = [8, 16], strides = [1, 1]} : vector<16x192xf32> to vector<8x16xf32>
    %290 = vector.extract_strided_slice %265 {offsets = [0, 80], sizes = [8, 16], strides = [1, 1]} : vector<16x192xf32> to vector<8x16xf32>
    %291 = vector.extract_strided_slice %265 {offsets = [0, 144], sizes = [8, 16], strides = [1, 1]} : vector<16x192xf32> to vector<8x16xf32>
    %cst_122 = arith.constant dense<0.000000e+00> : vector<8x8xf32>
    %292 = tpu.matmul %289, %290, %cst_122 {dimension_numbers = #tpu.dot_dimension_numbers<[1], [1], [0], [0], [0, 0, 1, 0], [], []>} : vector<8x16xf32>, vector<8x16xf32>, vector<8x8xf32> -> vector<8x8xf32>
    %293 = vector.broadcast %1 : f32 to vector<8x8xf32>
    %294 = arith.mulf %292, %293 : vector<8x8xf32>
    %cst_123 = arith.constant dense<0xFF800000> : vector<8xf32>
    %295 = vector.multi_reduction <maximumf>, %294, %cst_123 [1] : vector<8x8xf32> to vector<8xf32>
    %296 = vector.shape_cast %295 : vector<8xf32> to vector<8x1xf32>
    %297 = vector.broadcast %296 : vector<8x1xf32> to vector<8x8xf32>
    %298 = arith.subf %294, %297 : vector<8x8xf32>
    %299 = math.exp %298 : vector<8x8xf32>
    %cst_124 = arith.constant dense<0.000000e+00> : vector<8xf32>
    %300 = vector.multi_reduction <add>, %299, %cst_124 [1] : vector<8x8xf32> to vector<8xf32>
    %301 = vector.shape_cast %300 : vector<8xf32> to vector<8x1xf32>
    %302 = tpu.reciprocal %301 {approx = true} : vector<8x1xf32> -> vector<8x1xf32>
    %303 = vector.broadcast %302 : vector<8x1xf32> to vector<8x8xf32>
    %304 = arith.mulf %299, %303 : vector<8x8xf32>
    %cst_125 = arith.constant dense<0.000000e+00> : vector<8x16xf32>
    %305 = tpu.matmul %304, %291, %cst_125 {dimension_numbers = #tpu.dot_dimension_numbers<[1], [0], [0], [1], [0, 0, 1, 1], [], []>} : vector<8x8xf32>, vector<8x16xf32>, vector<8x16xf32> -> vector<8x16xf32>
    %306 = vector.extract_strided_slice %267 {offsets = [16, 0], sizes = [16, 64], strides = [1, 1]} : vector<64x64xf32> to vector<16x64xf32>
    %cst_126 = arith.constant dense<0.000000e+00> : vector<8x64xf32>
    %307 = tpu.matmul %305, %306, %cst_126 {dimension_numbers = #tpu.dot_dimension_numbers<[1], [0], [0], [1], [0, 0, 1, 1], [], []>} : vector<8x16xf32>, vector<16x64xf32>, vector<8x64xf32> -> vector<8x64xf32>
    %308 = arith.addf %288, %307 : vector<8x64xf32>
    %309 = vector.extract_strided_slice %265 {offsets = [0, 32], sizes = [8, 16], strides = [1, 1]} : vector<16x192xf32> to vector<8x16xf32>
    %310 = vector.extract_strided_slice %265 {offsets = [0, 96], sizes = [8, 16], strides = [1, 1]} : vector<16x192xf32> to vector<8x16xf32>
    %311 = vector.extract_strided_slice %265 {offsets = [0, 160], sizes = [8, 16], strides = [1, 1]} : vector<16x192xf32> to vector<8x16xf32>
    %cst_127 = arith.constant dense<0.000000e+00> : vector<8x8xf32>
    %312 = tpu.matmul %309, %310, %cst_127 {dimension_numbers = #tpu.dot_dimension_numbers<[1], [1], [0], [0], [0, 0, 1, 0], [], []>} : vector<8x16xf32>, vector<8x16xf32>, vector<8x8xf32> -> vector<8x8xf32>
    %313 = vector.broadcast %1 : f32 to vector<8x8xf32>
    %314 = arith.mulf %312, %313 : vector<8x8xf32>
    %cst_128 = arith.constant dense<0xFF800000> : vector<8xf32>
    %315 = vector.multi_reduction <maximumf>, %314, %cst_128 [1] : vector<8x8xf32> to vector<8xf32>
    %316 = vector.shape_cast %315 : vector<8xf32> to vector<8x1xf32>
    %317 = vector.broadcast %316 : vector<8x1xf32> to vector<8x8xf32>
    %318 = arith.subf %314, %317 : vector<8x8xf32>
    %319 = math.exp %318 : vector<8x8xf32>
    %cst_129 = arith.constant dense<0.000000e+00> : vector<8xf32>
    %320 = vector.multi_reduction <add>, %319, %cst_129 [1] : vector<8x8xf32> to vector<8xf32>
    %321 = vector.shape_cast %320 : vector<8xf32> to vector<8x1xf32>
    %322 = tpu.reciprocal %321 {approx = true} : vector<8x1xf32> -> vector<8x1xf32>
    %323 = vector.broadcast %322 : vector<8x1xf32> to vector<8x8xf32>
    %324 = arith.mulf %319, %323 : vector<8x8xf32>
    %cst_130 = arith.constant dense<0.000000e+00> : vector<8x16xf32>
    %325 = tpu.matmul %324, %311, %cst_130 {dimension_numbers = #tpu.dot_dimension_numbers<[1], [0], [0], [1], [0, 0, 1, 1], [], []>} : vector<8x8xf32>, vector<8x16xf32>, vector<8x16xf32> -> vector<8x16xf32>
    %326 = vector.extract_strided_slice %267 {offsets = [32, 0], sizes = [16, 64], strides = [1, 1]} : vector<64x64xf32> to vector<16x64xf32>
    %cst_131 = arith.constant dense<0.000000e+00> : vector<8x64xf32>
    %327 = tpu.matmul %325, %326, %cst_131 {dimension_numbers = #tpu.dot_dimension_numbers<[1], [0], [0], [1], [0, 0, 1, 1], [], []>} : vector<8x16xf32>, vector<16x64xf32>, vector<8x64xf32> -> vector<8x64xf32>
    %328 = arith.addf %308, %327 : vector<8x64xf32>
    %329 = vector.extract_strided_slice %265 {offsets = [0, 48], sizes = [8, 16], strides = [1, 1]} : vector<16x192xf32> to vector<8x16xf32>
    %330 = vector.extract_strided_slice %265 {offsets = [0, 112], sizes = [8, 16], strides = [1, 1]} : vector<16x192xf32> to vector<8x16xf32>
    %331 = vector.extract_strided_slice %265 {offsets = [0, 176], sizes = [8, 16], strides = [1, 1]} : vector<16x192xf32> to vector<8x16xf32>
    %cst_132 = arith.constant dense<0.000000e+00> : vector<8x8xf32>
    %332 = tpu.matmul %329, %330, %cst_132 {dimension_numbers = #tpu.dot_dimension_numbers<[1], [1], [0], [0], [0, 0, 1, 0], [], []>} : vector<8x16xf32>, vector<8x16xf32>, vector<8x8xf32> -> vector<8x8xf32>
    %333 = vector.broadcast %1 : f32 to vector<8x8xf32>
    %334 = arith.mulf %332, %333 : vector<8x8xf32>
    %cst_133 = arith.constant dense<0xFF800000> : vector<8xf32>
    %335 = vector.multi_reduction <maximumf>, %334, %cst_133 [1] : vector<8x8xf32> to vector<8xf32>
    %336 = vector.shape_cast %335 : vector<8xf32> to vector<8x1xf32>
    %337 = vector.broadcast %336 : vector<8x1xf32> to vector<8x8xf32>
    %338 = arith.subf %334, %337 : vector<8x8xf32>
    %339 = math.exp %338 : vector<8x8xf32>
    %cst_134 = arith.constant dense<0.000000e+00> : vector<8xf32>
    %340 = vector.multi_reduction <add>, %339, %cst_134 [1] : vector<8x8xf32> to vector<8xf32>
    %341 = vector.shape_cast %340 : vector<8xf32> to vector<8x1xf32>
    %342 = tpu.reciprocal %341 {approx = true} : vector<8x1xf32> -> vector<8x1xf32>
    %343 = vector.broadcast %342 : vector<8x1xf32> to vector<8x8xf32>
    %344 = arith.mulf %339, %343 : vector<8x8xf32>
    %cst_135 = arith.constant dense<0.000000e+00> : vector<8x16xf32>
    %345 = tpu.matmul %344, %331, %cst_135 {dimension_numbers = #tpu.dot_dimension_numbers<[1], [0], [0], [1], [0, 0, 1, 1], [], []>} : vector<8x8xf32>, vector<8x16xf32>, vector<8x16xf32> -> vector<8x16xf32>
    %346 = vector.extract_strided_slice %267 {offsets = [48, 0], sizes = [16, 64], strides = [1, 1]} : vector<64x64xf32> to vector<16x64xf32>
    %cst_136 = arith.constant dense<0.000000e+00> : vector<8x64xf32>
    %347 = tpu.matmul %345, %346, %cst_136 {dimension_numbers = #tpu.dot_dimension_numbers<[1], [0], [0], [1], [0, 0, 1, 1], [], []>} : vector<8x16xf32>, vector<16x64xf32>, vector<8x64xf32> -> vector<8x64xf32>
    %348 = arith.addf %328, %347 : vector<8x64xf32>
    %c0_137 = arith.constant 0 : index
    %c0_138 = arith.constant 0 : index
    %349 = vector.load %arg19[%c0_137, %c0_138] : memref<16x64xf32, #tpu.memory_space<vmem>>, vector<8x64xf32>
    tpu.vector_store %arg19[%c0_137, %c0_138], %348 {strides = array<i32>} : memref<16x64xf32, #tpu.memory_space<vmem>>, vector<8x64xf32>,
    %cst_139 = arith.constant 0.000000e+00 : f32
    %350 = vector.broadcast %cst_139 : f32 to vector<8x64xf32>
    %351 = vector.extract_strided_slice %265 {offsets = [8, 0], sizes = [8, 16], strides = [1, 1]} : vector<16x192xf32> to vector<8x16xf32>
    %352 = vector.extract_strided_slice %265 {offsets = [8, 64], sizes = [8, 16], strides = [1, 1]} : vector<16x192xf32> to vector<8x16xf32>
    %353 = vector.extract_strided_slice %265 {offsets = [8, 128], sizes = [8, 16], strides = [1, 1]} : vector<16x192xf32> to vector<8x16xf32>
    %cst_140 = arith.constant dense<0.000000e+00> : vector<8x8xf32>
    %354 = tpu.matmul %351, %352, %cst_140 {dimension_numbers = #tpu.dot_dimension_numbers<[1], [1], [0], [0], [0, 0, 1, 0], [], []>} : vector<8x16xf32>, vector<8x16xf32>, vector<8x8xf32> -> vector<8x8xf32>
    %355 = vector.broadcast %1 : f32 to vector<8x8xf32>
    %356 = arith.mulf %354, %355 : vector<8x8xf32>
    %cst_141 = arith.constant dense<0xFF800000> : vector<8xf32>
    %357 = vector.multi_reduction <maximumf>, %356, %cst_141 [1] : vector<8x8xf32> to vector<8xf32>
    %358 = vector.shape_cast %357 : vector<8xf32> to vector<8x1xf32>
    %359 = vector.broadcast %358 : vector<8x1xf32> to vector<8x8xf32>
    %360 = arith.subf %356, %359 : vector<8x8xf32>
    %361 = math.exp %360 : vector<8x8xf32>
    %cst_142 = arith.constant dense<0.000000e+00> : vector<8xf32>
    %362 = vector.multi_reduction <add>, %361, %cst_142 [1] : vector<8x8xf32> to vector<8xf32>
    %363 = vector.shape_cast %362 : vector<8xf32> to vector<8x1xf32>
    %364 = tpu.reciprocal %363 {approx = true} : vector<8x1xf32> -> vector<8x1xf32>
    %365 = vector.broadcast %364 : vector<8x1xf32> to vector<8x8xf32>
    %366 = arith.mulf %361, %365 : vector<8x8xf32>
    %cst_143 = arith.constant dense<0.000000e+00> : vector<8x16xf32>
    %367 = tpu.matmul %366, %353, %cst_143 {dimension_numbers = #tpu.dot_dimension_numbers<[1], [0], [0], [1], [0, 0, 1, 1], [], []>} : vector<8x8xf32>, vector<8x16xf32>, vector<8x16xf32> -> vector<8x16xf32>
    %368 = vector.extract_strided_slice %267 {offsets = [0, 0], sizes = [16, 64], strides = [1, 1]} : vector<64x64xf32> to vector<16x64xf32>
    %cst_144 = arith.constant dense<0.000000e+00> : vector<8x64xf32>
    %369 = tpu.matmul %367, %368, %cst_144 {dimension_numbers = #tpu.dot_dimension_numbers<[1], [0], [0], [1], [0, 0, 1, 1], [], []>} : vector<8x16xf32>, vector<16x64xf32>, vector<8x64xf32> -> vector<8x64xf32>
    %370 = arith.addf %350, %369 : vector<8x64xf32>
    %371 = vector.extract_strided_slice %265 {offsets = [8, 16], sizes = [8, 16], strides = [1, 1]} : vector<16x192xf32> to vector<8x16xf32>
    %372 = vector.extract_strided_slice %265 {offsets = [8, 80], sizes = [8, 16], strides = [1, 1]} : vector<16x192xf32> to vector<8x16xf32>
    %373 = vector.extract_strided_slice %265 {offsets = [8, 144], sizes = [8, 16], strides = [1, 1]} : vector<16x192xf32> to vector<8x16xf32>
    %cst_145 = arith.constant dense<0.000000e+00> : vector<8x8xf32>
    %374 = tpu.matmul %371, %372, %cst_145 {dimension_numbers = #tpu.dot_dimension_numbers<[1], [1], [0], [0], [0, 0, 1, 0], [], []>} : vector<8x16xf32>, vector<8x16xf32>, vector<8x8xf32> -> vector<8x8xf32>
    %375 = vector.broadcast %1 : f32 to vector<8x8xf32>
    %376 = arith.mulf %374, %375 : vector<8x8xf32>
    %cst_146 = arith.constant dense<0xFF800000> : vector<8xf32>
    %377 = vector.multi_reduction <maximumf>, %376, %cst_146 [1] : vector<8x8xf32> to vector<8xf32>
    %378 = vector.shape_cast %377 : vector<8xf32> to vector<8x1xf32>
    %379 = vector.broadcast %378 : vector<8x1xf32> to vector<8x8xf32>
    %380 = arith.subf %376, %379 : vector<8x8xf32>
    %381 = math.exp %380 : vector<8x8xf32>
    %cst_147 = arith.constant dense<0.000000e+00> : vector<8xf32>
    %382 = vector.multi_reduction <add>, %381, %cst_147 [1] : vector<8x8xf32> to vector<8xf32>
    %383 = vector.shape_cast %382 : vector<8xf32> to vector<8x1xf32>
    %384 = tpu.reciprocal %383 {approx = true} : vector<8x1xf32> -> vector<8x1xf32>
    %385 = vector.broadcast %384 : vector<8x1xf32> to vector<8x8xf32>
    %386 = arith.mulf %381, %385 : vector<8x8xf32>
    %cst_148 = arith.constant dense<0.000000e+00> : vector<8x16xf32>
    %387 = tpu.matmul %386, %373, %cst_148 {dimension_numbers = #tpu.dot_dimension_numbers<[1], [0], [0], [1], [0, 0, 1, 1], [], []>} : vector<8x8xf32>, vector<8x16xf32>, vector<8x16xf32> -> vector<8x16xf32>
    %388 = vector.extract_strided_slice %267 {offsets = [16, 0], sizes = [16, 64], strides = [1, 1]} : vector<64x64xf32> to vector<16x64xf32>
    %cst_149 = arith.constant dense<0.000000e+00> : vector<8x64xf32>
    %389 = tpu.matmul %387, %388, %cst_149 {dimension_numbers = #tpu.dot_dimension_numbers<[1], [0], [0], [1], [0, 0, 1, 1], [], []>} : vector<8x16xf32>, vector<16x64xf32>, vector<8x64xf32> -> vector<8x64xf32>
    %390 = arith.addf %370, %389 : vector<8x64xf32>
    %391 = vector.extract_strided_slice %265 {offsets = [8, 32], sizes = [8, 16], strides = [1, 1]} : vector<16x192xf32> to vector<8x16xf32>
    %392 = vector.extract_strided_slice %265 {offsets = [8, 96], sizes = [8, 16], strides = [1, 1]} : vector<16x192xf32> to vector<8x16xf32>
    %393 = vector.extract_strided_slice %265 {offsets = [8, 160], sizes = [8, 16], strides = [1, 1]} : vector<16x192xf32> to vector<8x16xf32>
    %cst_150 = arith.constant dense<0.000000e+00> : vector<8x8xf32>
    %394 = tpu.matmul %391, %392, %cst_150 {dimension_numbers = #tpu.dot_dimension_numbers<[1], [1], [0], [0], [0, 0, 1, 0], [], []>} : vector<8x16xf32>, vector<8x16xf32>, vector<8x8xf32> -> vector<8x8xf32>
    %395 = vector.broadcast %1 : f32 to vector<8x8xf32>
    %396 = arith.mulf %394, %395 : vector<8x8xf32>
    %cst_151 = arith.constant dense<0xFF800000> : vector<8xf32>
    %397 = vector.multi_reduction <maximumf>, %396, %cst_151 [1] : vector<8x8xf32> to vector<8xf32>
    %398 = vector.shape_cast %397 : vector<8xf32> to vector<8x1xf32>
    %399 = vector.broadcast %398 : vector<8x1xf32> to vector<8x8xf32>
    %400 = arith.subf %396, %399 : vector<8x8xf32>
    %401 = math.exp %400 : vector<8x8xf32>
    %cst_152 = arith.constant dense<0.000000e+00> : vector<8xf32>
    %402 = vector.multi_reduction <add>, %401, %cst_152 [1] : vector<8x8xf32> to vector<8xf32>
    %403 = vector.shape_cast %402 : vector<8xf32> to vector<8x1xf32>
    %404 = tpu.reciprocal %403 {approx = true} : vector<8x1xf32> -> vector<8x1xf32>
    %405 = vector.broadcast %404 : vector<8x1xf32> to vector<8x8xf32>
    %406 = arith.mulf %401, %405 : vector<8x8xf32>
    %cst_153 = arith.constant dense<0.000000e+00> : vector<8x16xf32>
    %407 = tpu.matmul %406, %393, %cst_153 {dimension_numbers = #tpu.dot_dimension_numbers<[1], [0], [0], [1], [0, 0, 1, 1], [], []>} : vector<8x8xf32>, vector<8x16xf32>, vector<8x16xf32> -> vector<8x16xf32>
    %408 = vector.extract_strided_slice %267 {offsets = [32, 0], sizes = [16, 64], strides = [1, 1]} : vector<64x64xf32> to vector<16x64xf32>
    %cst_154 = arith.constant dense<0.000000e+00> : vector<8x64xf32>
    %409 = tpu.matmul %407, %408, %cst_154 {dimension_numbers = #tpu.dot_dimension_numbers<[1], [0], [0], [1], [0, 0, 1, 1], [], []>} : vector<8x16xf32>, vector<16x64xf32>, vector<8x64xf32> -> vector<8x64xf32>
    %410 = arith.addf %390, %409 : vector<8x64xf32>
    %411 = vector.extract_strided_slice %265 {offsets = [8, 48], sizes = [8, 16], strides = [1, 1]} : vector<16x192xf32> to vector<8x16xf32>
    %412 = vector.extract_strided_slice %265 {offsets = [8, 112], sizes = [8, 16], strides = [1, 1]} : vector<16x192xf32> to vector<8x16xf32>
    %413 = vector.extract_strided_slice %265 {offsets = [8, 176], sizes = [8, 16], strides = [1, 1]} : vector<16x192xf32> to vector<8x16xf32>
    %cst_155 = arith.constant dense<0.000000e+00> : vector<8x8xf32>
    %414 = tpu.matmul %411, %412, %cst_155 {dimension_numbers = #tpu.dot_dimension_numbers<[1], [1], [0], [0], [0, 0, 1, 0], [], []>} : vector<8x16xf32>, vector<8x16xf32>, vector<8x8xf32> -> vector<8x8xf32>
    %415 = vector.broadcast %1 : f32 to vector<8x8xf32>
    %416 = arith.mulf %414, %415 : vector<8x8xf32>
    %cst_156 = arith.constant dense<0xFF800000> : vector<8xf32>
    %417 = vector.multi_reduction <maximumf>, %416, %cst_156 [1] : vector<8x8xf32> to vector<8xf32>
    %418 = vector.shape_cast %417 : vector<8xf32> to vector<8x1xf32>
    %419 = vector.broadcast %418 : vector<8x1xf32> to vector<8x8xf32>
    %420 = arith.subf %416, %419 : vector<8x8xf32>
    %421 = math.exp %420 : vector<8x8xf32>
    %cst_157 = arith.constant dense<0.000000e+00> : vector<8xf32>
    %422 = vector.multi_reduction <add>, %421, %cst_157 [1] : vector<8x8xf32> to vector<8xf32>
    %423 = vector.shape_cast %422 : vector<8xf32> to vector<8x1xf32>
    %424 = tpu.reciprocal %423 {approx = true} : vector<8x1xf32> -> vector<8x1xf32>
    %425 = vector.broadcast %424 : vector<8x1xf32> to vector<8x8xf32>
    %426 = arith.mulf %421, %425 : vector<8x8xf32>
    %cst_158 = arith.constant dense<0.000000e+00> : vector<8x16xf32>
    %427 = tpu.matmul %426, %413, %cst_158 {dimension_numbers = #tpu.dot_dimension_numbers<[1], [0], [0], [1], [0, 0, 1, 1], [], []>} : vector<8x8xf32>, vector<8x16xf32>, vector<8x16xf32> -> vector<8x16xf32>
    %428 = vector.extract_strided_slice %267 {offsets = [48, 0], sizes = [16, 64], strides = [1, 1]} : vector<64x64xf32> to vector<16x64xf32>
    %cst_159 = arith.constant dense<0.000000e+00> : vector<8x64xf32>
    %429 = tpu.matmul %427, %428, %cst_159 {dimension_numbers = #tpu.dot_dimension_numbers<[1], [0], [0], [1], [0, 0, 1, 1], [], []>} : vector<8x16xf32>, vector<16x64xf32>, vector<8x64xf32> -> vector<8x64xf32>
    %430 = arith.addf %410, %429 : vector<8x64xf32>
    %c8_160 = arith.constant 8 : index
    %c0_161 = arith.constant 0 : index
    %431 = vector.load %arg19[%c8_160, %c0_161] : memref<16x64xf32, #tpu.memory_space<vmem>>, vector<8x64xf32>
    tpu.vector_store %arg19[%c8_160, %c0_161], %430 {strides = array<i32>} : memref<16x64xf32, #tpu.memory_space<vmem>>, vector<8x64xf32>,
    %c0_162 = arith.constant 0 : index
    %c0_163 = arith.constant 0 : index
    %432 = vector.load %arg19[%c0_162, %c0_163] : memref<16x64xf32, #tpu.memory_space<vmem>>, vector<16x64xf32>
    %c1_164 = arith.constant 1 : index
    %c0_165 = arith.constant 0 : index
    %c0_166 = arith.constant 0 : index
    %433 = vector.load %arg7[%c1_164, %c0_165, %c0_166] : memref<2x1x64xf32, #tpu.memory_space<vmem>>, vector<1x1x64xf32>
    %434 = vector.shape_cast %433 : vector<1x1x64xf32> to vector<1x64xf32>
    %435 = vector.broadcast %434 : vector<1x64xf32> to vector<16x64xf32>
    %436 = arith.addf %432, %435 : vector<16x64xf32>
    %437 = arith.addf %258, %436 : vector<16x64xf32>
    %c1_167 = arith.constant 1 : index
    %c0_168 = arith.constant 0 : index
    %c0_169 = arith.constant 0 : index
    %438 = vector.load %arg8[%c1_167, %c0_168, %c0_169] : memref<2x1x64xf32, #tpu.memory_space<vmem>>, vector<1x1x64xf32>
    %439 = vector.shape_cast %438 : vector<1x1x64xf32> to vector<1x64xf32>
    %c1_170 = arith.constant 1 : index
    %c0_171 = arith.constant 0 : index
    %c0_172 = arith.constant 0 : index
    %440 = vector.load %arg9[%c1_170, %c0_171, %c0_172] : memref<2x1x64xf32, #tpu.memory_space<vmem>>, vector<1x1x64xf32>
    %441 = vector.shape_cast %440 : vector<1x1x64xf32> to vector<1x64xf32>
    %cst_173 = arith.constant dense<0.000000e+00> : vector<16xf32>
    %442 = vector.multi_reduction <add>, %437, %cst_173 [1] : vector<16x64xf32> to vector<16xf32>
    %443 = vector.shape_cast %442 : vector<16xf32> to vector<16x1xf32>
    %cst_174 = arith.constant 6.400000e+01 : f32
    %444 = vector.broadcast %cst_174 : f32 to vector<16x1xf32>
    %445 = arith.divf %443, %444 : vector<16x1xf32>
    %446 = vector.broadcast %445 : vector<16x1xf32> to vector<16x64xf32>
    %447 = arith.subf %437, %446 : vector<16x64xf32>
    %448 = arith.mulf %447, %447 : vector<16x64xf32>
    %cst_175 = arith.constant dense<0.000000e+00> : vector<16xf32>
    %449 = vector.multi_reduction <add>, %448, %cst_175 [1] : vector<16x64xf32> to vector<16xf32>
    %450 = vector.shape_cast %449 : vector<16xf32> to vector<16x1xf32>
    %cst_176 = arith.constant 6.400000e+01 : f32
    %451 = vector.broadcast %cst_176 : f32 to vector<16x1xf32>
    %452 = arith.divf %450, %451 : vector<16x1xf32>
    %453 = vector.broadcast %445 : vector<16x1xf32> to vector<16x64xf32>
    %454 = arith.subf %437, %453 : vector<16x64xf32>
    %cst_177 = arith.constant 9.99999974E-6 : f32
    %455 = vector.broadcast %cst_177 : f32 to vector<16x1xf32>
    %456 = arith.addf %452, %455 : vector<16x1xf32>
    %457 = math.sqrt %456 : vector<16x1xf32>
    %458 = vector.broadcast %457 : vector<16x1xf32> to vector<16x64xf32>
    %459 = arith.divf %454, %458 : vector<16x64xf32>
    %460 = vector.broadcast %439 : vector<1x64xf32> to vector<16x64xf32>
    %461 = arith.mulf %459, %460 : vector<16x64xf32>
    %462 = vector.broadcast %441 : vector<1x64xf32> to vector<16x64xf32>
    %463 = arith.addf %461, %462 : vector<16x64xf32>
    %c1_178 = arith.constant 1 : index
    %c0_179 = arith.constant 0 : index
    %c0_180 = arith.constant 0 : index
    %464 = vector.load %arg10[%c1_178, %c0_179, %c0_180] : memref<2x64x128xf32, #tpu.memory_space<vmem>>, vector<1x64x128xf32>
    %465 = vector.shape_cast %464 : vector<1x64x128xf32> to vector<64x128xf32>
    %cst_181 = arith.constant dense<0.000000e+00> : vector<16x128xf32>
    %466 = tpu.matmul %463, %465, %cst_181 {dimension_numbers = #tpu.dot_dimension_numbers<[1], [0], [0], [1], [0, 0, 1, 1], [], []>} : vector<16x64xf32>, vector<64x128xf32>, vector<16x128xf32> -> vector<16x128xf32>
    %c1_182 = arith.constant 1 : index
    %c0_183 = arith.constant 0 : index
    %c0_184 = arith.constant 0 : index
    %467 = vector.load %arg11[%c1_182, %c0_183, %c0_184] : memref<2x1x128xf32, #tpu.memory_space<vmem>>, vector<1x1x128xf32>
    %468 = vector.shape_cast %467 : vector<1x1x128xf32> to vector<1x128xf32>
    %469 = vector.broadcast %468 : vector<1x128xf32> to vector<16x128xf32>
    %470 = arith.addf %466, %469 : vector<16x128xf32>
    %cst_185 = arith.constant 0.000000e+00 : f32
    %471 = vector.broadcast %cst_185 : f32 to vector<16x128xf32>
    %472 = arith.maximumf %470, %471 : vector<16x128xf32>
    %c1_186 = arith.constant 1 : index
    %c0_187 = arith.constant 0 : index
    %c0_188 = arith.constant 0 : index
    %473 = vector.load %arg12[%c1_186, %c0_187, %c0_188] : memref<2x128x64xf32, #tpu.memory_space<vmem>>, vector<1x128x64xf32>
    %474 = vector.shape_cast %473 : vector<1x128x64xf32> to vector<128x64xf32>
    %cst_189 = arith.constant dense<0.000000e+00> : vector<16x64xf32>
    %475 = tpu.matmul %472, %474, %cst_189 {dimension_numbers = #tpu.dot_dimension_numbers<[1], [0], [0], [1], [0, 0, 1, 1], [], []>} : vector<16x128xf32>, vector<128x64xf32>, vector<16x64xf32> -> vector<16x64xf32>
    %c1_190 = arith.constant 1 : index
    %c0_191 = arith.constant 0 : index
    %c0_192 = arith.constant 0 : index
    %476 = vector.load %arg13[%c1_190, %c0_191, %c0_192] : memref<2x1x64xf32, #tpu.memory_space<vmem>>, vector<1x1x64xf32>
    %477 = vector.shape_cast %476 : vector<1x1x64xf32> to vector<1x64xf32>
    %478 = vector.broadcast %477 : vector<1x64xf32> to vector<16x64xf32>
    %479 = arith.addf %475, %478 : vector<16x64xf32>
    %480 = arith.addf %463, %479 : vector<16x64xf32>
    %c1_193 = arith.constant 1 : index
    %c0_194 = arith.constant 0 : index
    %c0_195 = arith.constant 0 : index
    %481 = vector.load %arg14[%c1_193, %c0_194, %c0_195] : memref<2x1x64xf32, #tpu.memory_space<vmem>>, vector<1x1x64xf32>
    %482 = vector.shape_cast %481 : vector<1x1x64xf32> to vector<1x64xf32>
    %c1_196 = arith.constant 1 : index
    %c0_197 = arith.constant 0 : index
    %c0_198 = arith.constant 0 : index
    %483 = vector.load %arg15[%c1_196, %c0_197, %c0_198] : memref<2x1x64xf32, #tpu.memory_space<vmem>>, vector<1x1x64xf32>
    %484 = vector.shape_cast %483 : vector<1x1x64xf32> to vector<1x64xf32>
    %cst_199 = arith.constant dense<0.000000e+00> : vector<16xf32>
    %485 = vector.multi_reduction <add>, %480, %cst_199 [1] : vector<16x64xf32> to vector<16xf32>
    %486 = vector.shape_cast %485 : vector<16xf32> to vector<16x1xf32>
    %cst_200 = arith.constant 6.400000e+01 : f32
    %487 = vector.broadcast %cst_200 : f32 to vector<16x1xf32>
    %488 = arith.divf %486, %487 : vector<16x1xf32>
    %489 = vector.broadcast %488 : vector<16x1xf32> to vector<16x64xf32>
    %490 = arith.subf %480, %489 : vector<16x64xf32>
    %491 = arith.mulf %490, %490 : vector<16x64xf32>
    %cst_201 = arith.constant dense<0.000000e+00> : vector<16xf32>
    %492 = vector.multi_reduction <add>, %491, %cst_201 [1] : vector<16x64xf32> to vector<16xf32>
    %493 = vector.shape_cast %492 : vector<16xf32> to vector<16x1xf32>
    %cst_202 = arith.constant 6.400000e+01 : f32
    %494 = vector.broadcast %cst_202 : f32 to vector<16x1xf32>
    %495 = arith.divf %493, %494 : vector<16x1xf32>
    %496 = vector.broadcast %488 : vector<16x1xf32> to vector<16x64xf32>
    %497 = arith.subf %480, %496 : vector<16x64xf32>
    %cst_203 = arith.constant 9.99999974E-6 : f32
    %498 = vector.broadcast %cst_203 : f32 to vector<16x1xf32>
    %499 = arith.addf %495, %498 : vector<16x1xf32>
    %500 = math.sqrt %499 : vector<16x1xf32>
    %501 = vector.broadcast %500 : vector<16x1xf32> to vector<16x64xf32>
    %502 = arith.divf %497, %501 : vector<16x64xf32>
    %503 = vector.broadcast %482 : vector<1x64xf32> to vector<16x64xf32>
    %504 = arith.mulf %502, %503 : vector<16x64xf32>
    %505 = vector.broadcast %484 : vector<1x64xf32> to vector<16x64xf32>
    %506 = arith.addf %504, %505 : vector<16x64xf32>
    %507 = vector.extract_strided_slice %506 {offsets = [7, 0], sizes = [1, 64], strides = [1, 1]} : vector<16x64xf32> to vector<1x64xf32>
    %508 = vector.extract_strided_slice %506 {offsets = [15, 0], sizes = [1, 64], strides = [1, 1]} : vector<16x64xf32> to vector<1x64xf32>
    %509 = tpu.concatenate %507, %508 in 0 : vector<1x64xf32>, vector<1x64xf32> -> vector<2x64xf32>
    %c0_204 = arith.constant 0 : index
    %c0_205 = arith.constant 0 : index
    %510 = vector.load %arg16[%c0_204, %c0_205] : memref<1x64xf32, #tpu.memory_space<vmem>>, vector<1x64xf32>
    %511 = vector.broadcast %510 : vector<1x64xf32> to vector<2x64xf32>
    %512 = arith.mulf %509, %511 : vector<2x64xf32>
    %cst_206 = arith.constant dense<0.000000e+00> : vector<2xf32>
    %513 = vector.multi_reduction <add>, %512, %cst_206 [1] : vector<2x64xf32> to vector<2xf32>
    %514 = vector.shape_cast %513 : vector<2xf32> to vector<2x1xf32>
    %c0_207 = arith.constant 0 : index
    %c0_208 = arith.constant 0 : index
    %515 = vector.load %arg17[%c0_207, %c0_208] : memref<1x1xf32, #tpu.memory_space<vmem>>, vector<1x1xf32>
    %516 = vector.broadcast %515 : vector<1x1xf32> to vector<2x1xf32>
    %517 = arith.addf %514, %516 : vector<2x1xf32>
    %c0_209 = arith.constant 0 : index
    %c0_210 = arith.constant 0 : index
    %518 = vector.load %arg18[%c0_209, %c0_210] : memref<2x1xf32, #tpu.memory_space<vmem>>, vector<2x1xf32>
    tpu.vector_store %arg18[%c0_209, %c0_210], %517 {strides = array<i32>} : memref<2x1xf32, #tpu.memory_space<vmem>>, vector<2x1xf32>,
    return
  }
}

</mosaic_0001>

<bundles_post_ra>
// kernel: tpu_custom_call.1
= control target key start
LH: loop header
LB: loop body
LE: loop exit
PB: predicated region body
PF: predicated region fallthrough
CT: control target
= control target key end

     0   :  { %s7054_s0 = inlined_call_operand.vmem [shape: f32[2,8,16], index: 0, kind: input, shape index: {}]   ;;  %s7055_s1 = inlined_call_operand.hbm [shape: f32[16,64], index: 1, kind: input, shape index: {}]   ;;  %s7056_s2 = inlined_call_operand.hbm [shape: f32[16,64], index: 2, kind: input, shape index: {}]   ;;  %s7057_s3 = inlined_call_operand.hbm [shape: f32[1,64], index: 3, kind: input, shape index: {}]   ;;  %s7058_s4 = inlined_call_operand.vmem [shape: f32[2,64,192], index: 4, kind: input, shape index: {}]   ;;  %s7059_s5 = inlined_call_operand.vmem [shape: f32[2,1,192], index: 5, kind: input, shape index: {}]   ;;  %s7060_s6 = inlined_call_operand.vmem [shape: f32[2,64,64], index: 6, kind: input, shape index: {}]   ;;  %s7061_s7 = inlined_call_operand.vmem [shape: f32[2,1,64], index: 7, kind: input, shape index: {}]   ;;  %s7062_s8 = inlined_call_operand.vmem [shape: f32[2,1,64], index: 8, kind: input, shape index: {}]   ;;  %s7063_s9 = inlined_call_operand.vmem [shape: f32[2,1,64], index: 9, kind: input, shape index: {}]   ;;  %s7064_s10 = inlined_call_operand.hbm [shape: f32[2,64,128], index: 10, kind: input, shape index: {}]   ;;  %s7065_s11 = inlined_call_operand.vmem [shape: f32[2,1,128], index: 11, kind: input, shape index: {}]   ;;  %s7066_s12 = inlined_call_operand.vmem [shape: f32[2,128,64], index: 12, kind: input, shape index: {}]   ;;  %s7067_s13 = inlined_call_operand.vmem [shape: f32[2,1,64], index: 13, kind: input, shape index: {}]   ;;  %s7068_s14 = inlined_call_operand.vmem [shape: f32[2,1,64], index: 14, kind: input, shape index: {}]   ;;  %s7069_s15 = inlined_call_operand.vmem [shape: f32[2,1,64], index: 15, kind: input, shape index: {}]   ;;  %s7070_s16 = inlined_call_operand.vmem [shape: f32[1,64], index: 16, kind: input, shape index: {}]   ;;  %s7071_s17 = inlined_call_operand.<no memory space> [shape: f32[1,1], index: 17, kind: input, shape index: {}]   ;;  %s7072_s18 = inlined_call_operand.vmem [shape: f32[2,1], index: 18, kind: output, shape index: {}]  }
   0x1   :  { %7076 = sst [smem:[#allocation14_spill]] %s7054_s0  ;;  %v23_v0 = vstv %s7071_s17 }
   0x2   :  { %7077 = sst [smem:[#allocation15_spill]] %s7055_s1  ;;  %24 = vst [vmem:[#allocation3] sm:$0x1] %v23_v0 }
   0x3   :  { %7078 = sst [smem:[#allocation16_spill]] %s7056_s2 }
   0x4   :  { %7079 = sst [smem:[#allocation17_spill]] %s7072_s18 }
   0x5   :  { %25 = vsyncpa [#allocation5], 0 }
   0x6   :  { %26 = vsyncpa [#allocation7], 0 }
   0x7   :  { %27 = vsyncpa [#allocation10], 0  ;;  %s6095_s29 = smov [#allocation6]   ;;  %s6096_s0 = smov [#allocation4]  }
   0x8   :  { %s47_s30 = sshll.u32 %s6095_s29, 4  ;;  %s35_s19 = sshll.u32 %s6096_s0, 4  ;;  %s48_s30 = int_to_ptr.vmem [resolvable:$true] %s47_s30  ;;  %s6209_s19 = int_to_ptr.vmem [resolvable:$true] %s35_s19 }
   0x9   :  { %s7080_s21 = sld [smem:[#allocation16_spill]] }
   0xf   :  { %s6001_s22 = scalar_lea.hbm %s7080_s21, 256 }
  0x10   :  { %p6002_p0 = scmp.ne.s32.totalorder %s7080_s21, %s6001_s22  ;;  %p6005_p1 = scmp.lt.u32.totalorder %s6001_s22, %s7080_s21 }
  0x12   :  { %p6007_p2 = pnand %p6005_p1, %p6002_p0 }
  0x14   :  { %6010 = shalt.err (!%p6007_p2)
}
  0x15   :  { %s6011_s25 = scalar_lea.vmem %s48_s30, 256  ;;  %p6016_p4 = scmp.lt.s32.totalorder %s48_s30, %s48_s30 }
  0x16   :  { %p6012_p3 = scmp.ne.s32.totalorder %s48_s30, %s6011_s25  ;;  %p6017_p5 = scmp.lt.s32.totalorder %s6011_s25, %s6011_s25 }
  0x18   :  { %p6018_p6 = por %p6017_p5, %p6016_p4 }
  0x1a   :  { %p6019_p7 = pnand %p6018_p6, %p6012_p3 }
  0x1c   :  { %6022 = shalt.err (!%p6019_p7)
}
  0x1d   :  { %s6097_s26 = smov 128   ;;  %s6098_s27 = smov 8  }
  0x1e   :  { %53 = dma.hbm_to_vmem [thread:$0]  %s7080_s21, 256, %s48_s30, [#allocation7], %s6097_s26, %s6097_s26, %s6098_s27  }
  0x1f   :  { %s7081_s20 = sld [smem:[#allocation15_spill]] }
  0x25   :  { %s6023_s22 = scalar_lea.hbm %s7081_s20, 256 }
  0x26   :  { %p6024_p8 = scmp.ne.s32.totalorder %s7081_s20, %s6023_s22  ;;  %p6027_p9 = scmp.lt.u32.totalorder %s6023_s22, %s7081_s20 }
  0x28   :  { %p6029_p10 = pnand %p6027_p9, %p6024_p8 }
  0x2a   :  { %6032 = shalt.err (!%p6029_p10)
}
  0x2b   :  { %s6033_s25 = scalar_lea.vmem %s6209_s19, 256  ;;  %p6038_p12 = scmp.lt.s32.totalorder %s6209_s19, %s6209_s19 }
  0x2c   :  { %p6034_p11 = scmp.ne.s32.totalorder %s6209_s19, %s6033_s25  ;;  %p6039_p13 = scmp.lt.s32.totalorder %s6033_s25, %s6033_s25 }
  0x2e   :  { %p6040_p0 = por %p6039_p13, %p6038_p12 }
  0x30   :  { %p6041_p1 = pnand %p6040_p0, %p6034_p11 }
  0x32   :  { %6044 = shalt.err (!%p6041_p1)
}
  0x33   :  { %41 = dma.hbm_to_vmem [thread:$0]  %s7081_s20, 256, %s6209_s19, [#allocation5], %s6097_s26, %s6097_s26, %s6098_s27  }
  0x34   :  { %s6099_s28 = smov [#allocation8]   ;;  %s6100_s0 = smov [#allocation9]  }
  0x35   :  { %s60_s29 = sshll.u32 %s6099_s28, 4  ;;  %s81_s1 = sshll.u32 %s6100_s0, 4  ;;  %s61_s29 = int_to_ptr.vmem [resolvable:$true] %s60_s29  ;;  %s6246_s1 = int_to_ptr.vmem [resolvable:$true] %s81_s1 }
  0x36   :  { %s6045_s23 = scalar_lea.hbm %s7057_s3, 16 }
  0x37   :  { %p6046_p2 = scmp.ne.s32.totalorder %s7057_s3, %s6045_s23  ;;  %p6049_p3 = scmp.lt.u32.totalorder %s6045_s23, %s7057_s3 }
  0x39   :  { %p6051_p4 = pnand %p6049_p3, %p6046_p2 }
  0x3b   :  { %6054 = shalt.err (!%p6051_p4)
}
  0x3c   :  { %s6055_s19 = scalar_lea.vmem %s61_s29, 16  ;;  %s6059_s20 = scalar_lea.vmem %s61_s29, 32 }
  0x3d   :  { %p6056_p5 = scmp.ne.s32.totalorder %s61_s29, %s6055_s19  ;;  %p6060_p6 = scmp.lt.s32.totalorder %s61_s29, %s61_s29 }
  0x3e   :  { %p6061_p7 = scmp.lt.s32.totalorder %s6059_s20, %s6055_s19 }
  0x40   :  { %p6062_p8 = por %p6061_p7, %p6060_p6 }
  0x42   :  { %p6063_p9 = pnand %p6062_p8, %p6056_p5 }
  0x44   :  { %6066 = shalt.err (!%p6063_p9)
}
  0x45   :  { %63 = dma.hbm_to_vmem [thread:$0]  %s7057_s3, 16, %s61_s29, [#allocation7]  }
  0x46   :  { %s6067_s22 = scalar_lea.hbm %s7064_s10, 2048 }
  0x47   :  { %p6068_p10 = scmp.ne.s32.totalorder %s7064_s10, %s6067_s22  ;;  %p6071_p11 = scmp.lt.u32.totalorder %s6067_s22, %s7064_s10 }
  0x49   :  { %p6073_p12 = pnand %p6071_p11, %p6068_p10 }
  0x4b   :  { %6076 = shalt.err (!%p6073_p12)
}
  0x4c   :  { %s6077_s24 = scalar_lea.vmem %s6246_s1, 2048  ;;  %p6082_p0 = scmp.lt.s32.totalorder %s6246_s1, %s6246_s1 }
  0x4d   :  { %p6078_p13 = scmp.ne.s32.totalorder %s6246_s1, %s6077_s24  ;;  %p6083_p1 = scmp.lt.s32.totalorder %s6077_s24, %s6077_s24 }
  0x4f   :  { %p6084_p2 = por %p6083_p1, %p6082_p0 }
  0x51   :  { %p6085_p3 = pnand %p6084_p2, %p6078_p13 }
  0x53   :  { %6088 = shalt.err (!%p6085_p3)
}
  0x54   :  { %87 = dma.hbm_to_vmem [thread:$0]  %s7064_s10, 2048, %s6246_s1, [#allocation10], %s6097_s26, %s6097_s26, %s6098_s27  }
  0x55   :  { %6089 = dma.done.wait [#allocation5], 256  }
  0x56   :  { %6090 = vsyncadd [#allocation5], 4294967040 }
  0x57   :  { %6091 = dma.done.wait [#allocation7], 272  }
  0x58   :  { %6092 = vsyncadd [#allocation7], 4294967024 }
  0x59   :  { %6093 = dma.done.wait [#allocation10], 2048  }
  0x5a   :  { %6094 = vsyncadd [#allocation10], 4294965248  ;;  %vm125_vm0 = vcmask 130048   ;;  %v116_v1 = vld [vmem:[#allocation6] sm:$0xff]  ;;  %v117_v2 = vld [vmem:[#allocation6 + $0x8] sm:$0xff]  ;;  %s7082_s20 = sld [smem:[#allocation14_spill]]  ;;  %v229_v40 = vlaneseq }
  0x5b   :  { %v5677_v4 = vpack.c.bf16 %v117_v2, %v116_v1  ;;  %v212_v5 = vld [vmem:[%s7058_s4 + $0x8] sm:$0xff]  ;;  %v214_v6 = vld [vmem:[%s7058_s4 + $0x18] sm:$0xff]  ;;  %v211_v8 = vld [vmem:[%s7058_s4] sm:$0xff]  ;;  %v6101_v30 = vmov 0.0   ;;  %vm239_vm1 = vcmask 523264   ;;  %vm6102_vm2 = vmmov 0  }
  0x5c   :  { %v5681_v7 = vpack.c.bf16 %v214_v6, %v212_v5  ;;  %v213_v9 = vld [vmem:[%s7058_s4 + $0x10] sm:$0xff]  ;;  %v216_v10 = vld [vmem:[%s7058_s4 + $0x28] sm:$0xff]  ;;  %v218_v12 = vld [vmem:[%s7058_s4 + $0x38] sm:$0xff]  ;;  %316 = vmatprep.mubr.f32.mxu1 %v6101_v30  ;;  %v6348_v41 = vshrl.u32 %v229_v40, 7  ;;  %s6103_s19 = smov 96   ;;  %s6104_s30 = smov 64  }
  0x5d   :  { %5678 = vmatprep.subr.bf16.mxu0 %v5677_v4  ;;  %v5683_v11 = vpack.c.bf16 %v213_v9, %v211_v8  ;;  %v215_v13 = vld [vmem:[%s7058_s4 + $0x20] sm:$0xff]  ;;  %v217_v14 = vld [vmem:[%s7058_s4 + $0x30] sm:$0xff]  ;;  %v5685_v16 = vpack.c.bf16 %v218_v12, %v216_v10  ;;  %v220_v17 = vld [vmem:[%s7058_s4 + $0x48] sm:$0xff]  ;;  %s6105_s21 = smov 32   ;;  %vm409_vm3 = vcmask 64512   ;;  %s6106_s10 = smov 112  }
  0x5e   :  { %5680 = vmatpush3.bf16.msra.mxu0 %v5677_v4  ;;  %5857 = vmatprep.subr.bf16.mxu1 %v5681_v7  ;;  %v222_v18 = vld [vmem:[%s7058_s4 + $0x58] sm:$0xff]  ;;  %v5687_v19 = vpack.c.bf16 %v217_v14, %v215_v13  ;;  %v219_v21 = vld [vmem:[%s7058_s4 + $0x40] sm:$0xff]  ;;  %v221_v22 = vld [vmem:[%s7058_s4 + $0x50] sm:$0xff]  ;;  %v231_v42 = vsub.s32 0, %v6348_v41  ;;  %v235_v44 = vsub.s32 1, %v6348_v41  ;;  %s6107_s26 = smov 16  }
  0x5f   :  { %5682 = vmatprep.subr.bf16.mxu0 %v5681_v7  ;;  %5861 = vmatpush1.bf16.msra.mxu1 %v5683_v11  ;;  %v5689_v20 = vpack.c.bf16 %v222_v18, %v220_v17  ;;  %v5691_v23 = vpack.c.bf16 %v221_v22, %v219_v21  ;;  %v224_v24 = vld [vmem:[%s7058_s4 + $0x68] sm:$0xff]  ;;  %v226_v25 = vld [vmem:[%s7058_s4 + $0x78] sm:$0xff]  ;;  %v223_v27 = vld [vmem:[%s7058_s4 + $0x60] sm:$0xff]  ;;  %s6108_s27 = smov 80   ;;  %s6109_s1 = smov 48  }
  0x60   :  { %v114_v3 = vld [vmem:[%s7082_s20] sm:$0xff]  ;;  %v115_v15 = vld [vmem:[%s7082_s20 + $0x8] sm:$0xff]  ;;  %5858 = vmatprep.subr.bf16.mxu1 %v5685_v16  ;;  %v5693_v26 = vpack.c.bf16 %v226_v25, %v224_v24  ;;  %v225_v28 = vld [vmem:[%s7058_s4 + $0x70] sm:$0xff]  ;;  %s7083_s24 = sld [smem:[#allocation17_spill]] }
  0x61   :  { %5294 = vmatprep.mubr.msk.f32.mxu0 %vm125_vm0, %v114_v3  ;;  %v5695_v29 = vpack.c.bf16 %v225_v28, %v223_v27  ;;  %v4979_v31 = vld [vmem:[#allocation8] ss:$0 sm:$0xff]  ;;  %v208_v33 = vld [vmem:[#allocation4 + $0x8] sm:$0xff] }
  0x62   :  { %5295 = vmatmul.mubr.msk.f32.vlgmr.msra.gmra.mrb[0].mxu0 %vm125_vm0, %v115_v15  ;;  %v207_v36 = vld [vmem:[#allocation4] sm:$0xff]  ;;  %v227_v43 = vld [vmem:[%s7059_s5] sm:$0x3] }
  0x63   :  { %5684 = vmatpush1.bf16.msra.mxu0 %v5683_v11  ;;  %5862 = vmatpush1.bf16.msra.mxu1 %v5687_v19  ;;  %v232_v45 = vrot.slane %v227_v43, %v231_v42  ;;  %v236_v46 = vrot.slane %v227_v43, %v235_v44 }
  0x64   :  { %5686 = vmatprep.subr.bf16.mxu0 %v5685_v16  ;;  %5859 = vmatprep.subr.bf16.mxu1 %v5689_v20 }
  0x65   :  { %310 = vmatprep.mubr.f32.mxu0 %v6101_v30 }
  0x67   :  { %5688 = vmatpush1.bf16.msra.mxu0 %v5687_v19  ;;  %5863 = vmatpush1.bf16.msra.mxu1 %v5691_v23 }
  0x68   :  { %5690 = vmatprep.subr.bf16.mxu0 %v5689_v20  ;;  %5860 = vmatprep.subr.bf16.mxu1 %v5693_v26 }
  0x6b   :  { %5692 = vmatpush1.bf16.msra.mxu0 %v5691_v23  ;;  %5864 = vmatpush1.bf16.msra.mxu1 %v5695_v29 }
  0x6c   :  { %5694 = vmatprep.subr.bf16.mxu0 %v5693_v26  ;;  %5331 = vmatprep.subr.mxu1 %v6101_v30 }
  0x6f   :  { %5696 = vmatpush1.bf16.msra.mxu0 %v5695_v29 }
  0x70   :  { %5297 = vmatprep.subr.mxu0 %v6101_v30 }
 0x135   :  { %v5296_v32 = vpop.f32.mrb[0].mxu0 }
 0x136   :  { %v204_v34 = vadd.f32 %v5296_v32, %v4979_v31  ;;  %v198_v35 = vpop.f32.mrb[1].mxu0 }
 0x137   :  { %v199_v37 = vadd.f32 %v4979_v31, %v198_v35 }
 0x138   :  { %v6340_v38 = vadd.f32 %v208_v33, %v204_v34 }
 0x139   :  { %v6342_v39 = vadd.f32 %v207_v36, %v199_v37 }
 0x13a   :  { %4983 = vmatmul.mubr.msk.f32.vlgmr.msra.gmra.mrb[0].mxu1 %vm239_vm1, %v6340_v38 }
 0x13b   :  { %4982 = vmatmul.mubr.msk.f32.vlgmr.msra.gmra.mrb[2].mxu0 %vm239_vm1, %v6342_v39  ;;  %5333 = vmatprep.mubr.msk.f32.mxu1 %vm6102_vm2, %v6101_v30 }
 0x13c   :  { %5299 = vmatprep.mubr.msk.f32.mxu0 %vm6102_vm2, %v6101_v30 }
 0x20d   :  { %v318_v47 = vpop.f32.mrb[0].mxu1 }
 0x20e   :  { %v6363_v48 = vadd.f32 %v318_v47, %v232_v45  ;;  %v312_v49 = vpop.f32.mrb[2].mxu0  ;;  %v320_v50 = vpop.f32.mrb[1].mxu1 }
 0x20f   :  { %v313_v51 = vadd.f32 %v312_v49, %v232_v45  ;;  %v6365_v52 = vadd.f32 %v320_v50, %v236_v46  ;;  %v314_v53 = vpop.f32.mrb[3].mxu0 }
 0x210   :  { %v6372_v55 = vadd.f32 %v314_v53, %v236_v46 }
 0x211   :  { %807 = vrot.lane.b32.xlu1 %v313_v51, %s6103_s19  ;;  %332 = vrot.lane.b32.xlu0 %v313_v51, %s6104_s30 }
 0x215   :  { %809 = vrot.lane.b32.xlu0 %v313_v51, %s6105_s21 }
 0x283   :  { %v333_v54 = vpop.permute.xlu0 %332  ;;  %v808_v57 = vpop.permute.xlu1 %807 }
 0x284   :  { %5298 = vmatpush3.xpose.msk.msra.mxu0 %vm125_vm0, %v333_v54 }
 0x285   :  { %5302 = vmatprep.subr.mxu0 %v6101_v30 }
 0x287   :  { %5300 = vmatmul.mubr.msk.f32.vlgmr.msra.gmra.mrb[4].mxu0 %vm125_vm0, %v313_v51  ;;  %v810_v56 = vpop.permute.xlu0 %809 }
 0x288   :  { %5303 = vmatpush3.msra.mxu0 %v6372_v55  ;;  %5332 = vmatpush3.xpose.msk.msra.mxu1 %vm125_vm0, %v810_v56 }
 0x289   :  { %5304 = vmatprep.mubr.msk.f32.mxu0 %vm6102_vm2, %v6101_v30  ;;  %5307 = vmatprep.subr.mxu0 %v6101_v30 }
 0x28a   :  { %5336 = vmatprep.subr.mxu1 %v6101_v30 }
 0x28b   :  { %5334 = vmatmul.mubr.msk.f32.vlgmr.msra.gmra.mrb[2].mxu1 %vm125_vm0, %v808_v57 }
 0x28c   :  { %5338 = vmatprep.mubr.msk.f32.mxu1 %vm6102_vm2, %v6101_v30 }
 0x35a   :  { %v404_v58 = vpop.f32.mrb[4].mxu0 }
 0x35b   :  { %v408_v59 = vmul.f32 0.25, %v404_v58  ;;  %v5301_v60 = vpop.f32.mrb[5].mxu0 }
 0x35d   :  { %v410_v61 = vsel %vm409_vm3, %v408_v59, -inf }
 0x35e   :  { %411 = vmax.xlane.f32.xlu1 %v410_v61  ;;  %v881_v62 = vpop.f32.mrb[2].mxu1 }
 0x35f   :  { %v5335_v63 = vpop.f32.mrb[3].mxu1  ;;  %v885_v0 = vmul.f32 0.25, %v881_v62 }
 0x360   :  { %v325_v63 = vld [vmem:[%s7060_s6 + $0x10] sm:$0xff] }
 0x361   :  { %v886_v1 = vsel %vm409_vm3, %v885_v0, -inf }
 0x36f   :  { %494 = vrot.lane.b32.xlu1 %v313_v51, %s6106_s10 }
 0x393   :  { %887 = vmax.xlane.f32.xlu1 %v886_v1  ;;  %v6110_v1 = vmov 0.0|0.0  }
 0x3a4   :  { %1049 = vrot.lane.b32.xlu1 %v313_v51, %s6107_s26 }
 0x3a8   :  { %1047 = vrot.lane.b32.xlu1 %v313_v51, %s6108_s27 }
 0x3eb   :  { %v412_v2 = vpop.xlane.xlu1 %411 }
 0x3ec   :  { %v413_v3 = vsub.f32 %v408_v59, %v412_v2  ;;  %v323_v2 = vld [vmem:[%s7060_s6] sm:$0xff] }
 0x3ee   :  { %v414_v4 = vmul.f32 1.442695, %v413_v3  ;;  %v324_v3 = vld [vmem:[%s7060_s6 + $0x8] sm:$0xff] }
 0x3ef   :  { %v495_v7 = vpop.permute.xlu1 %494 }
 0x3f0   :  { %5905 = vpow2.f32 %v414_v4  ;;  %v6457_v4 = vpack.c.bf16 %v324_v3, %v323_v2 }
 0x3fa   :  { %v5906_v5 = vpop.eup %5905 }
 0x3fb   :  { %v416_v6 = vsel %vm409_vm3, %v5906_v5, 0.0 }
 0x3fc   :  { %417 = vadd.xlane.f32.xlu0 %v416_v6 }
 0x412   :  { %496 = vrot.lane.b32.xlu0 %v313_v51, %s6109_s1 }
 0x420   :  { %v888_v8 = vpop.xlane.xlu1 %887 }
 0x421   :  { %v889_v9 = vsub.f32 %v885_v0, %v888_v8  ;;  %v326_v0 = vld [vmem:[%s7060_s6 + $0x18] sm:$0xff]  ;;  %v327_v8 = vld [vmem:[%s7060_s6 + $0x20] sm:$0xff] }
 0x423   :  { %v890_v10 = vmul.f32 1.442695, %v889_v9  ;;  %v328_v9 = vld [vmem:[%s7060_s6 + $0x28] sm:$0xff] }
 0x424   :  { %v1050_v20 = vpop.permute.xlu1 %1049 }
 0x425   :  { %5907 = vpow2.f32 %v890_v10  ;;  %v6470_v10 = vpack.c.bf16 %v328_v9, %v327_v8 }
 0x428   :  { %v1048_v22 = vpop.permute.xlu1 %1047 }
 0x42f   :  { %v5908_v11 = vpop.eup %5907 }
 0x430   :  { %v892_v12 = vsel %vm409_vm3, %v5908_v11, 0.0 }
 0x431   :  { %893 = vadd.xlane.f32.xlu0 %v892_v12  ;;  %v330_v12 = vld [vmem:[%s7060_s6 + $0x38] sm:$0xff] }
 0x447   :  { %897 = vrot.lane.b32.xlu0 %v6372_v55, %s6103_s19 }
 0x489   :  { %v418_v13 = vpop.xlane.xlu0 %417 }
 0x48a   :  { %5909 = vrcp.f32 %v418_v13 }
 0x48d   :  { %v497_v16 = vpop.permute.xlu0 %496 }
 0x494   :  { %v5910_v14 = vpop.eup %5909 }
 0x495   :  { %v420_v15 = vmul.f32 %v5910_v14, %v5906_v5 }
 0x497   :  { %5305 = vmatmul.mubr.msk.f32.vlgmr.msra.gmra.mrb[6].mxu0 %vm409_vm3, %v420_v15 }
 0x498   :  { %5308 = vmatpush3.xpose.msk.msra.mxu0 %vm125_vm0, %v497_v16  ;;  %5309 = vmatprep.mubr.msk.f32.mxu0 %vm6102_vm2, %v6101_v30 }
 0x499   :  { %5312 = vmatprep.subr.mxu0 %v6101_v30 }
 0x49b   :  { %5310 = vmatmul.mubr.msk.f32.vlgmr.msra.gmra.mrb[8].mxu0 %vm125_vm0, %v495_v7 }
 0x49c   :  { %5314 = vmatprep.mubr.msk.f32.mxu0 %vm6102_vm2, %v6101_v30 }
 0x4be   :  { %v894_v17 = vpop.xlane.xlu0 %893 }
 0x4bf   :  { %5911 = vrcp.f32 %v894_v17 }
 0x4c2   :  { %v898_v18 = vpop.permute.xlu0 %897 }
 0x4c3   :  { %5337 = vmatpush3.msra.mxu1 %v898_v18 }
 0x4c4   :  { %5348 = vmatprep.subr.mxu1 %v6101_v30 }
 0x4c9   :  { %v5912_v19 = vpop.eup %5911 }
 0x4ca   :  { %v896_v21 = vmul.f32 %v5912_v19, %v5908_v11  ;;  %v329_v11 = vld [vmem:[%s7060_s6 + $0x30] sm:$0xff] }
 0x4cb   :  { %v6488_v15 = vpack.c.bf16 %v330_v12, %v329_v11 }
 0x4cc   :  { %5339 = vmatmul.mubr.msk.f32.vlgmr.msra.gmra.mrb[4].mxu1 %vm409_vm3, %v896_v21 }
 0x4cd   :  { %5349 = vmatpush3.xpose.msk.msra.mxu1 %vm125_vm0, %v1050_v20  ;;  %5350 = vmatprep.mubr.msk.f32.mxu1 %vm6102_vm2, %v6101_v30 }
 0x4ce   :  { %5365 = vmatprep.subr.mxu1 %v6101_v30 }
 0x4d0   :  { %5351 = vmatmul.mubr.msk.f32.vlgmr.msra.gmra.mrb[6].mxu1 %vm125_vm0, %v1048_v22 }
 0x4d1   :  { %5367 = vmatprep.mubr.msk.f32.mxu1 %vm6102_vm2, %v6101_v30 }
 0x56a   :  { %v6411_v23 = vpop.f32.mrb[6].mxu0 }
 0x56b   :  { %v5306_v24 = vpop.f32.mrb[7].mxu0 }
 0x56e   :  { %v568_v25 = vpop.f32.mrb[8].mxu0 }
 0x56f   :  { %v572_v26 = vmul.f32 0.25, %v568_v25  ;;  %v5311_v27 = vpop.f32.mrb[9].mxu0 }
 0x571   :  { %v573_v28 = vsel %vm409_vm3, %v572_v26, -inf }
 0x572   :  { %574 = vmax.xlane.f32.xlu0 %v573_v28 }
 0x588   :  { %585 = vrot.lane.b32.xlu0 %v6372_v55, %s6106_s10 }
 0x58c   :  { %1289 = vrot.lane.b32.xlu0 %v6363_v48, %s6104_s30 }
 0x590   :  { %1452 = vrot.lane.b32.xlu0 %v6363_v48, %s6109_s1 }
 0x594   :  { %1450 = vrot.lane.b32.xlu0 %v6363_v48, %s6106_s10 }
 0x59f   :  { %v6422_v29 = vpop.f32.mrb[4].mxu1 }
 0x5a0   :  { %v5340_v31 = vpop.f32.mrb[5].mxu1 }
 0x5a3   :  { %v1121_v32 = vpop.f32.mrb[6].mxu1 }
 0x5a4   :  { %v5352_v33 = vpop.f32.mrb[7].mxu1  ;;  %v1125_v45 = vmul.f32 0.25, %v1121_v32 }
 0x5a6   :  { %v1126_v47 = vsel %vm409_vm3, %v1125_v45, -inf }
 0x5ff   :  { %v575_v34 = vpop.xlane.xlu0 %574 }
 0x600   :  { %v576_v35 = vsub.f32 %v572_v26, %v575_v34 }
 0x602   :  { %v577_v36 = vmul.f32 1.442695, %v576_v35 }
 0x603   :  { %v586_v37 = vpop.permute.xlu0 %585 }
 0x604   :  { %5913 = vpow2.f32 %v577_v36  ;;  %5313 = vmatpush3.msra.mxu0 %v586_v37 }
 0x605   :  { %5697 = vmatprep.subr.bf16.mxu0 %v6110_v1 }
 0x607   :  { %v1290_v40 = vpop.permute.xlu0 %1289 }
 0x608   :  { %5366 = vmatpush3.xpose.msk.msra.mxu1 %vm125_vm0, %v1290_v40 }
 0x609   :  { %5370 = vmatprep.subr.mxu1 %v6101_v30 }
 0x60b   :  { %5368 = vmatmul.mubr.msk.f32.vlgmr.msra.gmra.mrb[8].mxu1 %vm125_vm0, %v6363_v48  ;;  %v1453_v17 = vpop.permute.xlu0 %1452 }
 0x60c   :  { %5371 = vmatpush3.msra.mxu1 %v6365_v52  ;;  %5372 = vmatprep.mubr.msk.f32.mxu1 %vm6102_vm2, %v6101_v30 }
 0x60d   :  { %5380 = vmatprep.subr.mxu1 %v6101_v30 }
 0x60e   :  { %v5914_v43 = vpop.eup %5913 }
 0x60f   :  { %v579_v46 = vsel %vm409_vm3, %v5914_v43, 0.0  ;;  %v1451_v20 = vpop.permute.xlu0 %1450 }
 0x610   :  { %580 = vadd.xlane.f32.xlu1 %v579_v46 }
 0x614   :  { %1127 = vmax.xlane.f32.xlu1 %v1126_v47 }
 0x69d   :  { %v581_v49 = vpop.xlane.xlu1 %580 }
 0x69e   :  { %5915 = vrcp.f32 %v581_v49 }
 0x6a1   :  { %v1128_v50 = vpop.xlane.xlu1 %1127 }
 0x6a2   :  { %v1129_v51 = vsub.f32 %v1125_v45, %v1128_v50 }
 0x6a4   :  { %v1130_v53 = vmul.f32 1.442695, %v1129_v51 }
 0x6a6   :  { %5917 = vpow2.f32 %v1130_v53 }
 0x6a8   :  { %v5916_v54 = vpop.eup %5915 }
 0x6a9   :  { %v583_v56 = vmul.f32 %v5916_v54, %v5914_v43 }
 0x6ab   :  { %5315 = vmatmul.mubr.msk.f32.vlgmr.msra.gmra.mrb[10].mxu0 %vm409_vm3, %v583_v56 }
 0x6ac   :  { %5321 = vmatprep.mubr.msk.f32.mxu0 %vm6102_vm2, %v6101_v30 }
 0x6b0   :  { %v5918_v57 = vpop.eup %5917 }
 0x6b1   :  { %v1132_v58 = vsel %vm409_vm3, %v5918_v57, 0.0 }
 0x6b2   :  { %1133 = vadd.xlane.f32.xlu1 %v1132_v58 }
 0x6c3   :  { %1137 = vrot.lane.b32.xlu1 %v6372_v55, %s6108_s27  ;;  %v5698_v55 = vpack.c.bf16 %v326_v0, %v325_v63 }
 0x6c5   :  { %5699 = vmatpush3.bf16.msra.mxu0 %v5698_v55 }
 0x6c6   :  { %5700 = vmatprep.subr.bf16.mxu0 %v6110_v1 }
 0x6de   :  { %v1361_v59 = vpop.f32.mrb[8].mxu1 }
 0x6df   :  { %v5369_v60 = vpop.f32.mrb[9].mxu1  ;;  %v1365_v61 = vmul.f32 0.25, %v1361_v59 }
 0x6e1   :  { %v1366_v62 = vsel %vm409_vm3, %v1365_v61, -inf }
 0x6e7   :  { %1367 = vmax.xlane.f32.xlu1 %v1366_v62 }
 0x6f8   :  { %1765 = vrot.lane.b32.xlu1 %v6363_v48, %s6105_s21 }
 0x73f   :  { %v1134_v7 = vpop.xlane.xlu1 %1133 }
 0x740   :  { %5919 = vrcp.f32 %v1134_v7 }
 0x743   :  { %v1138_v14 = vpop.permute.xlu1 %1137 }
 0x74a   :  { %v5920_v13 = vpop.eup %5919 }
 0x74b   :  { %v1136_v16 = vmul.f32 %v5920_v13, %v5918_v57 }
 0x774   :  { %v1368_v21 = vpop.xlane.xlu1 %1367 }
 0x775   :  { %v1369_v22 = vsub.f32 %v1365_v61, %v1368_v21 }
 0x778   :  { %v1766_v47 = vpop.permute.xlu1 %1765 }
 0x77e   :  { %v657_v5 = vpop.f32.mrb[10].mxu0 }
 0x77f   :  { %v5316_v6 = vpop.f32.mrb[11].mxu0  ;;  %5322 = vmatmul.mubr.msk.f32.vlgmr.msra.gmra.mrb[12].mxu0 %vm125_vm0, %v657_v5 }
 0x780   :  { %5702 = vmatpush3.bf16.msra.mxu0 %v6457_v4  ;;  %5328 = vmatprep.mubr.msk.f32.mxu0 %vm6102_vm2, %v6101_v30 }
 0x781   :  { %5703 = vmatprep.subr.bf16.mxu0 %v6110_v1 }
 0x787   :  { %5329 = vmatmul.mubr.msk.f32.vlgmr.msra.gmra.mrb[12].mxu0 %vm125_vm0, %v6411_v23  ;;  %v1370_v23 = vmul.f32 1.442695, %v1369_v22 }
 0x788   :  { %5705 = vmatpush3.bf16.msra.mxu0 %v6470_v10  ;;  %5345 = vmatprep.mubr.msk.f32.mxu0 %vm6102_vm2, %v6101_v30 }
 0x789   :  { %5353 = vmatprep.subr.mxu0 %v6101_v30  ;;  %5921 = vpow2.f32 %v1370_v23 }
 0x78f   :  { %5346 = vmatmul.mubr.msk.f32.vlgmr.msra.gmra.mrb[12].mxu0 %vm125_vm0, %v6422_v29 }
 0x790   :  { %5354 = vmatpush3.msra.mxu0 %v1138_v14  ;;  %5355 = vmatprep.mubr.msk.f32.mxu0 %vm6102_vm2, %v6101_v30 }
 0x791   :  { %5706 = vmatprep.subr.bf16.mxu0 %v6110_v1 }
 0x793   :  { %5356 = vmatmul.mubr.msk.f32.vlgmr.msra.gmra.mrb[14].mxu0 %vm409_vm3, %v1136_v16  ;;  %v5922_v31 = vpop.eup %5921 }
 0x794   :  { %5708 = vmatpush3.bf16.msra.mxu0 %v6488_v15  ;;  %5362 = vmatprep.mubr.msk.f32.mxu0 %vm6102_vm2, %v6101_v30  ;;  %v1372_v32 = vsel %vm409_vm3, %v5922_v31, 0.0 }
 0x795   :  { %5375 = vmatprep.subr.mxu0 %v6101_v30 }
 0x866   :  { %v1209_v18 = vpop.f32.mrb[14].mxu0 }
 0x867   :  { %v5357_v19 = vpop.f32.mrb[15].mxu0  ;;  %5363 = vmatmul.mubr.msk.f32.vlgmr.msra.gmra.mrb[12].mxu0 %vm125_vm0, %v1209_v18 }
 0x868   :  { %5376 = vmatpush3.xpose.msk.msra.mxu0 %vm125_vm0, %v1453_v17  ;;  %5377 = vmatprep.mubr.msk.f32.mxu0 %vm6102_vm2, %v6101_v30 }
 0x869   :  { %5709 = vmatprep.subr.bf16.mxu0 %v6110_v1 }
 0x86b   :  { %5378 = vmatmul.mubr.msk.f32.vlgmr.msra.gmra.mrb[16].mxu0 %vm125_vm0, %v1451_v20 }
 0x86c   :  { %5711 = vmatpush3.bf16.msra.mxu0 %v5698_v55  ;;  %5389 = vmatprep.mubr.msk.f32.mxu0 %vm6102_vm2, %v6101_v30 }
 0x86d   :  { %5712 = vmatprep.subr.bf16.mxu0 %v6110_v1 }
 0x93a   :  { %v1282_v24 = vpop.f32.mrb[12].mxu0 }
 0x93b   :  { %1287 = vst.msk [vmem:[#allocation2] sm:$0xff] %vm239_vm1, %v1282_v24  ;;  %v5364_v25 = vpop.f32.mrb[13].mxu0 }
 0x93e   :  { %v1524_v26 = vpop.f32.mrb[16].mxu0 }
 0x93f   :  { %v1528_v27 = vmul.f32 0.25, %v1524_v26  ;;  %v5379_v28 = vpop.f32.mrb[17].mxu0 }
 0x941   :  { %v1529_v29 = vsel %vm409_vm3, %v1528_v27, -inf }
 0x942   :  { %1530 = vmax.xlane.f32.xlu0 %v1529_v29  ;;  %v2244_v11 = vld [vmem:[#allocation2] sm:$0xff] }
 0x946   :  { %1373 = vadd.xlane.f32.xlu0 %v1372_v32 }
 0x95c   :  { %1541 = vrot.lane.b32.xlu0 %v6365_v52, %s6106_s10 }
 0x9cf   :  { %v1531_v33 = vpop.xlane.xlu0 %1530 }
 0x9d0   :  { %v1532_v34 = vsub.f32 %v1528_v27, %v1531_v33 }
 0x9d2   :  { %v1533_v35 = vmul.f32 1.442695, %v1532_v34 }
 0x9d3   :  { %v1374_v36 = vpop.xlane.xlu0 %1373 }
 0x9d4   :  { %5923 = vpow2.f32 %v1533_v35 }
 0x9d5   :  { %5925 = vrcp.f32 %v1374_v36 }
 0x9d7   :  { %v1542_v46 = vpop.permute.xlu0 %1541 }
 0x9de   :  { %v5924_v37 = vpop.eup %5923 }
 0x9df   :  { %v5926_v40 = vpop.eup %5925  ;;  %v1535_v43 = vsel %vm409_vm3, %v5924_v37, 0.0 }
 0x9e0   :  { %v1376_v45 = vmul.f32 %v5926_v40, %v5922_v31  ;;  %1536 = vadd.xlane.f32.xlu1 %v1535_v43 }
 0x9e2   :  { %5373 = vmatmul.mubr.msk.f32.vlgmr.msra.gmra.mrb[10].mxu1 %vm409_vm3, %v1376_v45 }
 0x9e3   :  { %5381 = vmatpush3.msra.mxu1 %v1542_v46  ;;  %5382 = vmatprep.mubr.msk.f32.mxu1 %vm6102_vm2, %v6101_v30 }
 0x9e4   :  { %5399 = vmatprep.subr.mxu1 %v6101_v30 }
 0x9f1   :  { %1763 = vrot.lane.b32.xlu1 %v6363_v48, %s6103_s19 }
 0xa6d   :  { %v1537_v49 = vpop.xlane.xlu1 %1536 }
 0xa6e   :  { %5927 = vrcp.f32 %v1537_v49 }
 0xa71   :  { %v1764_v53 = vpop.permute.xlu1 %1763 }
 0xa78   :  { %v5928_v50 = vpop.eup %5927 }
 0xa79   :  { %v1539_v51 = vmul.f32 %v5928_v50, %v5924_v37 }
 0xa7b   :  { %5383 = vmatmul.mubr.msk.f32.vlgmr.msra.gmra.mrb[12].mxu1 %vm409_vm3, %v1539_v51 }
 0xa7c   :  { %5400 = vmatpush3.xpose.msk.msra.mxu1 %vm125_vm0, %v1766_v47  ;;  %5401 = vmatprep.mubr.msk.f32.mxu1 %vm6102_vm2, %v6101_v30 }
 0xa7d   :  { %5404 = vmatprep.subr.mxu1 %v6101_v30 }
 0xa7f   :  { %5402 = vmatmul.mubr.msk.f32.vlgmr.msra.gmra.mrb[14].mxu1 %vm125_vm0, %v1764_v53 }
 0xa80   :  { %5406 = vmatprep.mubr.msk.f32.mxu1 %vm6102_vm2, %v6101_v30 }
 0xab5   :  { %v1446_v54 = vpop.f32.mrb[10].mxu1 }
 0xab6   :  { %v5374_v56 = vpop.f32.mrb[11].mxu1 }
 0xb4e   :  { %v1613_v57 = vpop.f32.mrb[12].mxu1 }
 0xb4f   :  { %v5384_v58 = vpop.f32.mrb[13].mxu1  ;;  %5390 = vmatmul.mubr.msk.f32.vlgmr.msra.gmra.mrb[18].mxu0 %vm125_vm0, %v1613_v57 }
 0xb50   :  { %5714 = vmatpush3.bf16.msra.mxu0 %v6457_v4  ;;  %5396 = vmatprep.mubr.msk.f32.mxu0 %vm6102_vm2, %v6101_v30 }
 0xb51   :  { %5715 = vmatprep.subr.bf16.mxu0 %v6110_v1 }
 0xb52   :  { %v1837_v59 = vpop.f32.mrb[14].mxu1 }
 0xb53   :  { %v1841_v60 = vmul.f32 0.25, %v1837_v59  ;;  %v5403_v61 = vpop.f32.mrb[15].mxu1 }
 0xb55   :  { %v1842_v62 = vsel %vm409_vm3, %v1841_v60, -inf }
 0xb56   :  { %1843 = vmax.xlane.f32.xlu0 %v1842_v62  ;;  %v6579_v62 = vld [vmem:[%s7062_s8] ss:$0 sm:$0xff] }
 0xb57   :  { %5397 = vmatmul.mubr.msk.f32.vlgmr.msra.gmra.mrb[18].mxu0 %vm125_vm0, %v1446_v54 }
 0xb58   :  { %5717 = vmatpush3.bf16.msra.mxu0 %v6470_v10  ;;  %5413 = vmatprep.mubr.msk.f32.mxu0 %vm6102_vm2, %v6101_v30 }
 0xb59   :  { %5421 = vmatprep.subr.mxu0 %v6101_v30 }
 0xb6c   :  { %1853 = vrot.lane.b32.xlu0 %v6365_v52, %s6103_s19 }
 0xb70   :  { %2003 = vrot.lane.b32.xlu0 %v6363_v48, %s6108_s27 }
 0xbe3   :  { %v1844_v63 = vpop.xlane.xlu0 %1843 }
 0xbe4   :  { %v1845_v0 = vsub.f32 %v1841_v60, %v1844_v63 }
 0xbe6   :  { %v1846_v55 = vmul.f32 1.442695, %v1845_v0  ;;  %v6584_v0 = vld [vmem:[%s7063_s9] ss:$0 sm:$0xff] }
 0xbe7   :  { %v1854_v2 = vpop.permute.xlu0 %1853 }
 0xbe8   :  { %5929 = vpow2.f32 %v1846_v55  ;;  %5405 = vmatpush3.msra.mxu1 %v1854_v2 }
 0xbe9   :  { %5416 = vmatprep.subr.mxu1 %v6101_v30 }
 0xbeb   :  { %v2004_v9 = vpop.permute.xlu0 %2003 }
 0xbf2   :  { %v5930_v3 = vpop.eup %5929 }
 0xbf3   :  { %v1848_v4 = vsel %vm409_vm3, %v5930_v3, 0.0 }
 0xbf4   :  { %1849 = vadd.xlane.f32.xlu1 %v1848_v4  ;;  %v2317_v4 = vld [vmem:[#allocation9 + $0x8] sm:$0xff] }
 0xc05   :  { %2005 = vrot.lane.b32.xlu1 %v6363_v48, %s6107_s26  ;;  %v5016_v48 = vld [vmem:[%s7061_s7] ss:$0 sm:$0xff] }
 0xc06   :  { %v2253_v13 = vadd.f32 %v5016_v48, %v2244_v11 }
 0xc08   :  { %v2255_v19 = vadd.f32 %v2253_v13, %v6342_v39 }
 0xc0a   :  { %v2259_v20 = vsel %vm239_vm1, %v2255_v19, 0.0 }
 0xc81   :  { %v1850_v5 = vpop.xlane.xlu1 %1849 }
 0xc82   :  { %5931 = vrcp.f32 %v1850_v5  ;;  %v2318_v5 = vld [vmem:[#allocation9 + $0x10] sm:$0xff] }
 0xc85   :  { %v2006_v8 = vpop.permute.xlu1 %2005 }
 0xc8c   :  { %v5932_v6 = vpop.eup %5931 }
 0xc8d   :  { %v1852_v7 = vmul.f32 %v5932_v6, %v5930_v3  ;;  %v2316_v3 = vld [vmem:[#allocation9] sm:$0xff] }
 0xc8e   :  { %v5721_v6 = vpack.c.bf16 %v2317_v4, %v2316_v3 }
 0xc8f   :  { %5407 = vmatmul.mubr.msk.f32.vlgmr.msra.gmra.mrb[16].mxu1 %vm409_vm3, %v1852_v7  ;;  %v2319_v7 = vld [vmem:[#allocation9 + $0x18] sm:$0xff] }
 0xc90   :  { %5417 = vmatpush3.xpose.msk.msra.mxu1 %vm125_vm0, %v2006_v8  ;;  %5418 = vmatprep.mubr.msk.f32.mxu1 %vm6102_vm2, %v6101_v30  ;;  %v5725_v8 = vpack.c.bf16 %v2319_v7, %v2318_v5 }
 0xc91   :  { %5722 = vmatprep.subr.bf16.mxu1 %v5721_v6 }
 0xc93   :  { %5419 = vmatmul.mubr.msk.f32.vlgmr.msra.gmra.mrb[18].mxu1 %vm125_vm0, %v2004_v9  ;;  %v2320_v9 = vld [vmem:[#allocation9 + $0x20] sm:$0xff] }
 0xc94   :  { %5724 = vmatpush3.bf16.msra.mxu1 %v5721_v6 }
 0xc95   :  { %5726 = vmatprep.subr.bf16.mxu1 %v5725_v8 }
 0xc98   :  { %5728 = vmatpush3.bf16.msra.mxu1 %v5725_v8 }
 0xd62   :  { %v1925_v10 = vpop.f32.mrb[16].mxu1 }
 0xd63   :  { %v5408_v12 = vpop.f32.mrb[17].mxu1  ;;  %5414 = vmatmul.mubr.msk.f32.vlgmr.msra.gmra.mrb[18].mxu0 %vm125_vm0, %v1925_v10  ;;  %v2321_v10 = vld [vmem:[#allocation9 + $0x28] sm:$0xff] }
 0xd64   :  { %5423 = vmatprep.mubr.msk.f32.mxu0 %vm6102_vm2, %v6101_v30  ;;  %v5729_v11 = vpack.c.bf16 %v2321_v10, %v2320_v9  ;;  %v2323_v12 = vld [vmem:[#allocation9 + $0x38] sm:$0xff] }
 0xd66   :  { %v2077_v14 = vpop.f32.mrb[18].mxu1  ;;  %5730 = vmatprep.subr.bf16.mxu1 %v5729_v11 }
 0xd67   :  { %v2081_v16 = vmul.f32 0.25, %v2077_v14  ;;  %v5420_v17 = vpop.f32.mrb[19].mxu1  ;;  %5732 = vmatpush3.bf16.msra.mxu1 %v5729_v11  ;;  %v2414_v14 = vld [vmem:[%s7066_s12] sm:$0xff] }
 0xd68   :  { %v2416_v17 = vld [vmem:[%s7066_s12 + $0x10] sm:$0xff] }
 0xd69   :  { %v2082_v18 = vsel %vm409_vm3, %v2081_v16, -inf }
 0xd6a   :  { %2083 = vmax.xlane.f32.xlu1 %v2082_v18 }
 0xd6e   :  { %2260 = vadd.xlane.f32.xlu1 %v2259_v20 }
 0xdf7   :  { %v2084_v21 = vpop.xlane.xlu1 %2083 }
 0xdf8   :  { %v2085_v22 = vsub.f32 %v2081_v16, %v2084_v21  ;;  %v2415_v16 = vld [vmem:[%s7066_s12 + $0x8] sm:$0xff]  ;;  %v2418_v21 = vld [vmem:[%s7066_s12 + $0x20] sm:$0xff] }
 0xdf9   :  { %v5737_v18 = vpack.c.bf16 %v2415_v16, %v2414_v14 }
 0xdfa   :  { %v2086_v23 = vmul.f32 1.442695, %v2085_v22  ;;  %v2419_v22 = vld [vmem:[%s7066_s12 + $0x28] sm:$0xff] }
 0xdfb   :  { %v2261_v33 = vpop.xlane.xlu1 %2260 }
 0xdfc   :  { %5933 = vpow2.f32 %v2086_v23  ;;  %v2266_v34 = vmul.f32 0.015625, %v2261_v33  ;;  %v5745_v23 = vpack.c.bf16 %v2419_v22, %v2418_v21  ;;  %v2427_v33 = vld [vmem:[%s7066_s12 + $0x68] sm:$0xff]  ;;  %v5025_v21 = vld [vmem:[%s7058_s4 + $0x80] sm:$0xff]  ;;  %v5027_v22 = vld [vmem:[%s7058_s4 + $0x90] sm:$0xff] }
 0xdfe   :  { %v2268_v36 = vsub.f32 %v2255_v19, %v2266_v34  ;;  %v2417_v19 = vld [vmem:[%s7066_s12 + $0x18] sm:$0xff] }
 0xdff   :  { %v5741_v20 = vpack.c.bf16 %v2417_v19, %v2416_v17  ;;  %v5028_v19 = vld [vmem:[%s7058_s4 + $0x98] sm:$0xff] }
 0xe00   :  { %v2270_v43 = vmul.f32 %v2268_v36, %v2268_v36 }
 0xe02   :  { %v2272_v45 = vsel %vm239_vm1, %v2270_v43, 0.0 }
 0xe06   :  { %v5934_v24 = vpop.eup %5933 }
 0xe07   :  { %v2088_v25 = vsel %vm409_vm3, %v5934_v24, 0.0 }
 0xe08   :  { %2089 = vadd.xlane.f32.xlu0 %v2088_v25  ;;  %v2421_v25 = vld [vmem:[%s7066_s12 + $0x38] sm:$0xff] }
 0xe1e   :  { %2093 = vrot.lane.b32.xlu0 %v6365_v52, %s6108_s27 }
 0xe95   :  { %v2090_v26 = vpop.xlane.xlu0 %2089 }
 0xe96   :  { %5935 = vrcp.f32 %v2090_v26 }
 0xe99   :  { %v2094_v27 = vpop.permute.xlu0 %2093 }
 0xe9a   :  { %5422 = vmatpush3.msra.mxu0 %v2094_v27  ;;  %v2422_v27 = vld [vmem:[%s7066_s12 + $0x40] sm:$0xff] }
 0xe9b   :  { %5718 = vmatprep.subr.bf16.mxu0 %v6110_v1 }
 0xea0   :  { %v5936_v39 = vpop.eup %5935 }
 0xea1   :  { %v2092_v28 = vmul.f32 %v5936_v39, %v5934_v24  ;;  %v2420_v24 = vld [vmem:[%s7066_s12 + $0x30] sm:$0xff]  ;;  %v2423_v39 = vld [vmem:[%s7066_s12 + $0x48] sm:$0xff] }
 0xea2   :  { %v5749_v26 = vpack.c.bf16 %v2421_v25, %v2420_v24  ;;  %v5030_v24 = vld [vmem:[%s7058_s4 + $0xa8] sm:$0xff]  ;;  %v5032_v25 = vld [vmem:[%s7058_s4 + $0xb8] sm:$0xff] }
 0xea3   :  { %5424 = vmatmul.mubr.msk.f32.vlgmr.msra.gmra.mrb[20].mxu0 %vm409_vm3, %v2092_v28  ;;  %v5753_v28 = vpack.c.bf16 %v2423_v39, %v2422_v27  ;;  %v5029_v27 = vld [vmem:[%s7058_s4 + $0xa0] sm:$0xff]  ;;  %v5031_v39 = vld [vmem:[%s7058_s4 + $0xb0] sm:$0xff] }
 0xea4   :  { %5720 = vmatpush3.bf16.msra.mxu0 %v6488_v15  ;;  %5430 = vmatprep.mubr.msk.f32.mxu0 %vm6102_vm2, %v6101_v30 }
 0xea5   :  { %5738 = vmatprep.subr.bf16.mxu0 %v5737_v18 }
 0xf76   :  { %v2165_v29 = vpop.f32.mrb[20].mxu0 }
 0xf77   :  { %v5425_v31 = vpop.f32.mrb[21].mxu0  ;;  %5431 = vmatmul.mubr.msk.f32.vlgmr.msra.gmra.mrb[18].mxu0 %vm125_vm0, %v2165_v29  ;;  %v2424_v29 = vld [vmem:[%s7066_s12 + $0x50] sm:$0xff] }
 0xf78   :  { %5740 = vmatpush3.bf16.msra.mxu0 %v5737_v18  ;;  %v2425_v31 = vld [vmem:[%s7066_s12 + $0x58] sm:$0xff]  ;;  %v5026_v18 = vld [vmem:[%s7058_s4 + $0x88] sm:$0xff] }
 0xf79   :  { %5742 = vmatprep.subr.bf16.mxu0 %v5741_v20 }
 0xf7c   :  { %5744 = vmatpush3.bf16.msra.mxu0 %v5741_v20  ;;  %v5769_v20 = vpack.c.bf16 %v5028_v19, %v5026_v18 }
 0xf7d   :  { %5746 = vmatprep.subr.bf16.mxu0 %v5745_v23 }
 0xf80   :  { %5748 = vmatpush3.bf16.msra.mxu0 %v5745_v23  ;;  %v5771_v23 = vpack.c.bf16 %v5027_v22, %v5025_v21 }
 0xf81   :  { %5750 = vmatprep.subr.bf16.mxu0 %v5749_v26 }
 0xf84   :  { %5752 = vmatpush3.bf16.msra.mxu0 %v5749_v26  ;;  %v5773_v26 = vpack.c.bf16 %v5032_v25, %v5030_v24 }
 0xf85   :  { %5754 = vmatprep.subr.bf16.mxu0 %v5753_v28 }
 0xf88   :  { %5756 = vmatpush3.bf16.msra.mxu0 %v5753_v28  ;;  %v5034_v28 = vld [vmem:[%s7058_s4 + $0xc8] sm:$0xff] }
0x104a   :  { %v2238_v52 = vpop.f32.mrb[18].mxu0 }
0x104b   :  { %2243 = vst.msk [vmem:[#allocation2 + $0x8] sm:$0xff] %vm239_vm1, %v2238_v52  ;;  %v5432_v32 = vpop.f32.mrb[19].mxu0  ;;  %v5757_v52 = vpack.c.bf16 %v2425_v31, %v2424_v29  ;;  %v5775_v29 = vpack.c.bf16 %v5031_v39, %v5029_v27  ;;  %v5036_v31 = vld [vmem:[%s7058_s4 + $0xd8] sm:$0xff] }
0x104c   :  { %v2426_v32 = vld [vmem:[%s7066_s12 + $0x60] sm:$0xff] }
0x104d   :  { %5758 = vmatprep.subr.bf16.mxu0 %v5757_v52  ;;  %v5761_v34 = vpack.c.bf16 %v2427_v33, %v2426_v32  ;;  %v5035_v32 = vld [vmem:[%s7058_s4 + $0xd0] sm:$0xff]  ;;  %v5777_v33 = vpack.c.bf16 %v5036_v31, %v5034_v28 }
0x104e   :  { %5760 = vmatpush3.bf16.msra.mxu0 %v5757_v52  ;;  %v5033_v52 = vld [vmem:[%s7058_s4 + $0xc0] sm:$0xff] }
0x104f   :  { %5762 = vmatprep.subr.bf16.mxu0 %v5761_v34 }
0x1052   :  { %v2245_v35 = vld [vmem:[#allocation2 + $0x8] sm:$0xff]  ;;  %5764 = vmatpush3.bf16.msra.mxu0 %v5761_v34 }
0x1053   :  { %v2254_v37 = vadd.f32 %v5016_v48, %v2245_v35  ;;  %v2322_v48 = vld [vmem:[#allocation9 + $0x30] sm:$0xff] }
0x1054   :  { %v5733_v13 = vpack.c.bf16 %v2323_v12, %v2322_v48  ;;  %v5038_v34 = vld [vmem:[%s7058_s4 + $0xe8] sm:$0xff] }
0x1055   :  { %v2256_v40 = vadd.f32 %v2254_v37, %v6340_v38 }
0x1056   :  { %5734 = vmatprep.subr.bf16.mxu1 %v5733_v13 }
0x1057   :  { %v2262_v15 = vsel %vm239_vm1, %v2256_v40, 0.0  ;;  %5736 = vmatpush3.bf16.msra.mxu1 %v5733_v13 }
0x1058   :  { %2263 = vadd.xlane.f32.xlu1 %v2262_v15  ;;  %5770 = vmatprep.subr.bf16.mxu1 %v5769_v20 }
0x105c   :  { %2273 = vadd.xlane.f32.xlu1 %v2272_v45 }
0x10e5   :  { %v2264_v46 = vpop.xlane.xlu1 %2263 }
0x10e6   :  { %v2267_v47 = vmul.f32 0.015625, %v2264_v46 }
0x10e8   :  { %v6571_v49 = vsub.f32 %v2256_v40, %v2267_v47 }
0x10e9   :  { %v2274_v50 = vpop.xlane.xlu1 %2273 }
0x10ea   :  { %v2278_v51 = vmul.f32 0.015625, %v2274_v50  ;;  %v2271_v53 = vmul.f32 %v6571_v49, %v6571_v49 }
0x10ec   :  { %v2280_v54 = vadd.f32 1e-05, %v2278_v51  ;;  %v2275_v56 = vsel %vm239_vm1, %v2271_v53, 0.0 }
0x10ed   :  { %2276 = vadd.xlane.f32.xlu1 %v2275_v56  ;;  %v2429_v56 = vld [vmem:[%s7066_s12 + $0x78] sm:$0xff] }
0x10ee   :  { %5937 = vrsqrt.f32 %v2280_v54  ;;  %vm2284_vm4 = vcmp.eq.f32.partialorder %v2280_v54, inf  ;;  %v2287_v58 = vand.u32 2147483648, %v2280_v54  ;;  %vm2286_vm5 = vcmp.eq.f32.partialorder %v2280_v54, 0.0 }
0x10f8   :  { %v5938_v38 = vpop.eup %5937 }
0x10f9   :  { %v2283_v57 = vmul.f32 %v5938_v38, %v2280_v54 }
0x10fb   :  { %v2285_v59 = vsel %vm2284_vm4, %v2280_v54, %v2283_v57  ;;  %v2428_v54 = vld [vmem:[%s7066_s12 + $0x70] sm:$0xff]  ;;  %vm4948_vm4 = vcmask 1040384  }
0x10fc   :  { %v2288_v60 = vsel %vm2286_vm5, %v2287_v58, %v2285_v59  ;;  %v5765_v38 = vpack.c.bf16 %v2429_v56, %v2428_v54  ;;  %vm4958_vm5 = vcmask 517120  }
0x10fd   :  { %5939 = vrcp.f32 %v2288_v60 }
0x10fe   :  { %5766 = vmatprep.subr.bf16.mxu0 %v5765_v38 }
0x10ff   :  { %5768 = vmatpush3.bf16.msra.mxu0 %v5765_v38 }
0x1100   :  { %5492 = vmatprep.subr.mxu0 %v6101_v30 }
0x1107   :  { %v5940_v61 = vpop.eup %5939 }
0x1108   :  { %v2297_v63 = vmul.f32 %v5940_v61, %v2268_v36 }
0x110a   :  { %v2306_v55 = vmul.f32 %v6579_v62, %v2297_v63  ;;  %v5022_v63 = vld [vmem:[%s7067_s13] ss:$0 sm:$0xff] }
0x110c   :  { %v6588_v2 = vadd.f32 %v6584_v0, %v2306_v55 }
0x110e   :  { %5449 = vmatprep.mubr.msk.f32.mxu1 %vm239_vm1, %v6588_v2 }
0x117a   :  { %v2277_v35 = vpop.xlane.xlu1 %2276 }
0x117b   :  { %v2279_v36 = vmul.f32 0.015625, %v2277_v35  ;;  %v5040_v35 = vld [vmem:[%s7058_s4 + $0xf8] sm:$0xff] }
0x117d   :  { %v2281_v37 = vadd.f32 1e-05, %v2279_v36  ;;  %v5779_v36 = vpack.c.bf16 %v5035_v32, %v5033_v52 }
0x117f   :  { %5941 = vrsqrt.f32 %v2281_v37  ;;  %vm2291_vm6 = vcmp.eq.f32.partialorder %v2281_v37, inf  ;;  %v2294_v43 = vand.u32 2147483648, %v2281_v37  ;;  %vm2293_vm7 = vcmp.eq.f32.partialorder %v2281_v37, 0.0 }
0x1189   :  { %v5942_v40 = vpop.eup %5941 }
0x118a   :  { %v2290_v15 = vmul.f32 %v5942_v40, %v2281_v37  ;;  %v5037_v40 = vld [vmem:[%s7058_s4 + $0xe0] sm:$0xff] }
0x118c   :  { %v2292_v45 = vsel %vm2291_vm6, %v2281_v37, %v2290_v15  ;;  %v5781_v37 = vpack.c.bf16 %v5040_v35, %v5038_v34  ;;  %v5039_v15 = vld [vmem:[%s7058_s4 + $0xf0] sm:$0xff]  ;;  %vm4970_vm6 = vcmask 1024  }
0x118d   :  { %v2295_v46 = vsel %vm2293_vm7, %v2294_v43, %v2292_v45  ;;  %v5783_v43 = vpack.c.bf16 %v5039_v15, %v5037_v40 }
0x118e   :  { %5943 = vrcp.f32 %v2295_v46 }
0x1198   :  { %v5944_v47 = vpop.eup %5943 }
0x1199   :  { %v2299_v50 = vmul.f32 %v5944_v47, %v6571_v49  ;;  %v5019_v49 = vld [vmem:[%s7065_s11] ss:$0 sm:$0xff] }
0x119b   :  { %v2307_v51 = vmul.f32 %v6579_v62, %v2299_v50 }
0x119d   :  { %v2315_v53 = vadd.f32 %v6584_v0, %v2307_v51 }
0x119f   :  { %5450 = vmatmul.mubr.msk.f32.vlgmr.msra.gmra.mrb[20].mxu1 %vm239_vm1, %v2315_v53 }
0x11a0   :  { %2672 = vmatprep.mubr.f32.mxu1 %v6101_v30  ;;  %5772 = vmatpush1.bf16.msra.mxu1 %v5771_v23 }
0x11a1   :  { %5774 = vmatprep.subr.bf16.mxu1 %v5773_v26 }
0x11a4   :  { %5776 = vmatpush1.bf16.msra.mxu1 %v5775_v29 }
0x11a5   :  { %5778 = vmatprep.subr.bf16.mxu1 %v5777_v33 }
0x11a8   :  { %5780 = vmatpush1.bf16.msra.mxu1 %v5779_v36 }
0x11a9   :  { %5782 = vmatprep.subr.bf16.mxu1 %v5781_v37 }
0x11ac   :  { %5784 = vmatpush1.bf16.msra.mxu1 %v5783_v43 }
0x11ad   :  { %5487 = vmatprep.subr.mxu1 %v6101_v30 }
0x1272   :  { %v5451_v57 = vpop.f32.mrb[20].mxu1 }
0x1273   :  { %v2409_v58 = vadd.f32 %v5451_v57, %v5019_v49  ;;  %v2403_v59 = vpop.f32.mrb[21].mxu1 }
0x1274   :  { %v2404_v60 = vadd.f32 %v5019_v49, %v2403_v59 }
0x1275   :  { %v2413_v62 = vmax.f32 %v2409_v58, 0.0 }
0x1276   :  { %v2412_v61 = vmax.f32 %v2404_v60, 0.0 }
0x1278   :  { %5484 = vmatprep.mubr.f32.mxu0 %v2412_v61 }
0x1279   :  { %5485 = vmatmul.mubr.f32.vlgmr.msra.gmra.mrb[22].mxu0 %v2413_v62 }
0x127a   :  { %5494 = vmatprep.mubr.msk.f32.mxu0 %vm6102_vm2, %v6101_v30 }
0x134c   :  { %v5486_v0 = vpop.f32.mrb[22].mxu0 }
0x134d   :  { %v2509_v55 = vadd.f32 %v5486_v0, %v5022_v63  ;;  %v2503_v3 = vpop.f32.mrb[23].mxu0  ;;  %v5023_v0 = vld [vmem:[%s7068_s14] ss:$0 sm:$0xff] }
0x134e   :  { %v2504_v4 = vadd.f32 %v5022_v63, %v2503_v3  ;;  %v5024_v3 = vld [vmem:[%s7069_s15] ss:$0 sm:$0xff] }
0x134f   :  { %v2513_v5 = vadd.f32 %v2509_v55, %v2315_v53 }
0x1350   :  { %v2512_v6 = vadd.f32 %v2504_v4, %v6588_v2 }
0x1351   :  { %v2519_v7 = vsel %vm239_vm1, %v2513_v5, 0.0 }
0x1352   :  { %2520 = vadd.xlane.f32.xlu0 %v2519_v7  ;;  %v2516_v8 = vsel %vm239_vm1, %v2512_v6, 0.0 }
0x1353   :  { %2517 = vadd.xlane.f32.xlu1 %v2516_v8 }
0x13df   :  { %v2521_v9 = vpop.xlane.xlu0 %2520 }
0x13e0   :  { %v2523_v10 = vmul.f32 0.015625, %v2521_v9  ;;  %v2518_v11 = vpop.xlane.xlu1 %2517 }
0x13e1   :  { %v2522_v48 = vmul.f32 0.015625, %v2518_v11 }
0x13e2   :  { %v6657_v12 = vsub.f32 %v2513_v5, %v2523_v10  ;;  %v5041_v10 = vld [vmem:[%s7059_s5 + $0x2] sm:$0x3] }
0x13e3   :  { %v6659_v13 = vsub.f32 %v2512_v6, %v2522_v48  ;;  %v2595_v11 = vrot.slane %v5041_v10, %v231_v42  ;;  %v2599_v48 = vrot.slane %v5041_v10, %v235_v44 }
0x13e4   :  { %v2527_v2 = vmul.f32 %v6657_v12, %v6657_v12 }
0x13e5   :  { %v2526_v14 = vmul.f32 %v6659_v13, %v6659_v13 }
0x13e6   :  { %v2531_v17 = vsel %vm239_vm1, %v2527_v2, 0.0 }
0x13e7   :  { %v2528_v16 = vsel %vm239_vm1, %v2526_v14, 0.0 }
0x13e8   :  { %2529 = vadd.xlane.f32.xlu1 %v2528_v16 }
0x13ec   :  { %2532 = vadd.xlane.f32.xlu1 %v2531_v17 }
0x1475   :  { %v2530_v45 = vpop.xlane.xlu1 %2529 }
0x1476   :  { %v2534_v46 = vmul.f32 0.015625, %v2530_v45 }
0x1478   :  { %v2536_v47 = vadd.f32 1e-05, %v2534_v46 }
0x1479   :  { %v2533_v50 = vpop.xlane.xlu1 %2532 }
0x147a   :  { %5945 = vrsqrt.f32 %v2536_v47  ;;  %v2535_v51 = vmul.f32 0.015625, %v2533_v50  ;;  %vm2540_vm8 = vcmp.eq.f32.partialorder %v2536_v47, inf  ;;  %v2543_v38 = vand.u32 2147483648, %v2536_v47 }
0x147b   :  { %vm2542_vm9 = vcmp.eq.f32.partialorder %v2536_v47, 0.0 }
0x147c   :  { %v2537_v53 = vadd.f32 1e-05, %v2535_v51 }
0x147e   :  { %5947 = vrsqrt.f32 %v2537_v53  ;;  %vm2547_vm10 = vcmp.eq.f32.partialorder %v2537_v53, inf  ;;  %v2550_v60 = vand.u32 2147483648, %v2537_v53  ;;  %vm2549_vm11 = vcmp.eq.f32.partialorder %v2537_v53, 0.0 }
0x1484   :  { %v5946_v54 = vpop.eup %5945 }
0x1485   :  { %v2539_v56 = vmul.f32 %v5946_v54, %v2536_v47  ;;  %v5047_v54 = vld [vmem:[%s7060_s6 + $0x58] sm:$0xff] }
0x1487   :  { %v2541_v49 = vsel %vm2540_vm8, %v2536_v47, %v2539_v56 }
0x1488   :  { %v2544_v57 = vsel %vm2542_vm9, %v2543_v38, %v2541_v49  ;;  %v5948_v58 = vpop.eup %5947  ;;  %v5044_v49 = vld [vmem:[%s7060_s6 + $0x40] sm:$0xff] }
0x1489   :  { %5949 = vrcp.f32 %v2544_v57  ;;  %v2546_v59 = vmul.f32 %v5948_v58, %v2537_v53  ;;  %v5045_v57 = vld [vmem:[%s7060_s6 + $0x48] sm:$0xff] }
0x148b   :  { %v2548_v61 = vsel %vm2547_vm10, %v2537_v53, %v2546_v59  ;;  %v5046_v53 = vld [vmem:[%s7060_s6 + $0x50] sm:$0xff]  ;;  %v6807_v59 = vpack.c.bf16 %v5045_v57, %v5044_v49 }
0x148c   :  { %v2551_v62 = vsel %vm2549_vm11, %v2550_v60, %v2548_v61  ;;  %v6797_v56 = vpack.c.bf16 %v5047_v54, %v5046_v53 }
0x148d   :  { %5951 = vrcp.f32 %v2551_v62 }
0x1493   :  { %v5950_v63 = vpop.eup %5949 }
0x1494   :  { %v2553_v55 = vmul.f32 %v5950_v63, %v6659_v13 }
0x1496   :  { %v2562_v4 = vmul.f32 %v5023_v0, %v2553_v55 }
0x1497   :  { %v5952_v5 = vpop.eup %5951 }
0x1498   :  { %v6723_v6 = vadd.f32 %v5024_v3, %v2562_v4  ;;  %v2555_v7 = vmul.f32 %v5952_v5, %v6657_v12 }
0x149a   :  { %5042 = vmatmul.mubr.msk.f32.vlgmr.msra.gmra.mrb[22].mxu1 %vm239_vm1, %v6723_v6  ;;  %v2563_v8 = vmul.f32 %v5023_v0, %v2555_v7 }
0x149b   :  { %2678 = vmatprep.mubr.f32.mxu1 %v6101_v30 }
0x149c   :  { %v6729_v9 = vadd.f32 %v5024_v3, %v2563_v8 }
0x149e   :  { %5043 = vmatmul.mubr.msk.f32.gmra.mrb[24].mxu1 %vm239_vm1, %v6729_v9 }
0x149f   :  { %5489 = vmatprep.mubr.msk.f32.mxu1 %vm6102_vm2, %v6101_v30 }
0x156d   :  { %v2674_v12 = vpop.f32.mrb[22].mxu1 }
0x156e   :  { %v6742_v13 = vadd.f32 %v2674_v12, %v2595_v11  ;;  %v2676_v14 = vpop.f32.mrb[23].mxu1 }
0x156f   :  { %v6744_v16 = vadd.f32 %v2676_v14, %v2599_v48 }
0x1570   :  { %2695 = vrot.lane.b32.xlu1 %v6742_v13, %s6104_s30 }
0x1571   :  { %5493 = vmatpush3.msra.mxu0 %v6744_v16  ;;  %v2680_v2 = vpop.f32.mrb[24].mxu1 }
0x1572   :  { %5502 = vmatprep.subr.mxu0 %v6101_v30  ;;  %v6750_v17 = vadd.f32 %v2680_v2, %v2595_v11  ;;  %v2682_v42 = vpop.f32.mrb[25].mxu1  ;;  %v5048_v11 = vld [vmem:[%s7060_s6 + $0x60] sm:$0xff] }
0x1573   :  { %v6752_v18 = vadd.f32 %v2682_v42, %v2599_v48  ;;  %v5049_v48 = vld [vmem:[%s7060_s6 + $0x68] sm:$0xff] }
0x1574   :  { %2858 = vrot.lane.b32.xlu1 %v6742_v13, %s6109_s1  ;;  %v6832_v12 = vpack.c.bf16 %v5049_v48, %v5048_v11 }
0x1578   :  { %2856 = vrot.lane.b32.xlu1 %v6742_v13, %s6106_s10 }
0x15e2   :  { %v2696_v41 = vpop.permute.xlu1 %2695 }
0x15e3   :  { %5488 = vmatpush3.xpose.msk.msra.mxu1 %vm125_vm0, %v2696_v41 }
0x15e4   :  { %5497 = vmatprep.subr.mxu1 %v6101_v30 }
0x15e6   :  { %5490 = vmatmul.mubr.msk.f32.vlgmr.msra.gmra.mrb[26].mxu1 %vm125_vm0, %v6742_v13  ;;  %v2859_v44 = vpop.permute.xlu1 %2858 }
0x15e7   :  { %5498 = vmatpush3.xpose.msk.msra.mxu1 %vm125_vm0, %v2859_v44  ;;  %5499 = vmatprep.mubr.msk.f32.mxu1 %vm6102_vm2, %v6101_v30 }
0x15e8   :  { %5785 = vmatprep.subr.bf16.mxu1 %v6110_v1 }
0x15ea   :  { %v2857_v19 = vpop.permute.xlu1 %2856 }
0x15eb   :  { %5500 = vmatmul.mubr.msk.f32.vlgmr.msra.gmra.mrb[28].mxu1 %vm125_vm0, %v2857_v19 }
0x15ec   :  { %5511 = vmatprep.mubr.msk.f32.mxu1 %vm6102_vm2, %v6101_v30  ;;  %5787 = vmatpush3.bf16.msra.mxu1 %v6797_v56 }
0x15ed   :  { %5788 = vmatprep.subr.bf16.mxu1 %v6110_v1 }
0x16b9   :  { %v2767_v20 = vpop.f32.mrb[26].mxu1 }
0x16ba   :  { %v2771_v21 = vmul.f32 0.25, %v2767_v20  ;;  %v5491_v22 = vpop.f32.mrb[27].mxu1 }
0x16bc   :  { %v2772_v23 = vsel %vm409_vm3, %v2771_v21, -inf }
0x16bd   :  { %2773 = vmax.xlane.f32.xlu0 %v2772_v23 }
0x16be   :  { %v2930_v24 = vpop.f32.mrb[28].mxu1 }
0x16bf   :  { %v2934_v25 = vmul.f32 0.25, %v2930_v24  ;;  %v5501_v26 = vpop.f32.mrb[29].mxu1 }
0x16c1   :  { %v2935_v27 = vsel %vm409_vm3, %v2934_v25, -inf }
0x16c2   :  { %2936 = vmax.xlane.f32.xlu1 %v2935_v27 }
0x16d3   :  { %2947 = vrot.lane.b32.xlu0 %v6744_v16, %s6106_s10  ;;  %3169 = vrot.lane.b32.xlu1 %v6742_v13, %s6103_s19 }
0x174a   :  { %v2774_v39 = vpop.xlane.xlu0 %2773 }
0x174b   :  { %v2775_v28 = vsub.f32 %v2771_v21, %v2774_v39 }
0x174d   :  { %v2776_v29 = vmul.f32 1.442695, %v2775_v28 }
0x174e   :  { %v2948_v37 = vpop.permute.xlu0 %2947 }
0x174f   :  { %5953 = vpow2.f32 %v2776_v29  ;;  %v2937_v31 = vpop.xlane.xlu1 %2936 }
0x1750   :  { %v2938_v52 = vsub.f32 %v2934_v25, %v2937_v31  ;;  %v5050_v31 = vld [vmem:[%s7060_s6 + $0x70] sm:$0xff] }
0x1752   :  { %v2939_v32 = vmul.f32 1.442695, %v2938_v52  ;;  %v5051_v52 = vld [vmem:[%s7060_s6 + $0x78] sm:$0xff] }
0x1753   :  { %v3170_v51 = vpop.permute.xlu1 %3169 }
0x1754   :  { %5955 = vpow2.f32 %v2939_v32 }
0x1759   :  { %v5954_v33 = vpop.eup %5953 }
0x175a   :  { %v2778_v34 = vsel %vm409_vm3, %v5954_v33, 0.0 }
0x175b   :  { %2779 = vadd.xlane.f32.xlu0 %v2778_v34 }
0x175e   :  { %v5956_v35 = vpop.eup %5955 }
0x175f   :  { %v2941_v36 = vsel %vm409_vm3, %v5956_v35, 0.0 }
0x1760   :  { %2942 = vadd.xlane.f32.xlu0 %v2941_v36 }
0x1776   :  { %3171 = vrot.lane.b32.xlu0 %v6742_v13, %s6105_s21 }
0x17e8   :  { %v2780_v40 = vpop.xlane.xlu0 %2779 }
0x17e9   :  { %5957 = vrcp.f32 %v2780_v40 }
0x17ed   :  { %v2943_v15 = vpop.xlane.xlu0 %2942 }
0x17ee   :  { %5959 = vrcp.f32 %v2943_v15 }
0x17f1   :  { %v3172_v50 = vpop.permute.xlu0 %3171 }
0x17f3   :  { %v5958_v43 = vpop.eup %5957 }
0x17f4   :  { %v2782_v45 = vmul.f32 %v5958_v43, %v5954_v33  ;;  %v6872_v33 = vpack.c.bf16 %v5051_v52, %v5050_v31 }
0x17f6   :  { %5495 = vmatmul.mubr.msk.f32.vlgmr.msra.gmra.mrb[24].mxu0 %vm409_vm3, %v2782_v45 }
0x17f7   :  { %5503 = vmatpush3.msra.mxu0 %v2948_v37  ;;  %5504 = vmatprep.mubr.msk.f32.mxu0 %vm6102_vm2, %v6101_v30 }
0x17f8   :  { %v5960_v46 = vpop.eup %5959  ;;  %5521 = vmatprep.subr.mxu0 %v6101_v30 }
0x17f9   :  { %v2945_v47 = vmul.f32 %v5960_v46, %v5956_v35 }
0x17fb   :  { %5505 = vmatmul.mubr.msk.f32.vlgmr.msra.gmra.mrb[26].mxu0 %vm409_vm3, %v2945_v47 }
0x17fc   :  { %5523 = vmatprep.mubr.msk.f32.mxu0 %vm6102_vm2, %v6101_v30 }
0x17fe   :  { %5522 = vmatpush3.xpose.msk.msra.mxu0 %vm125_vm0, %v3172_v50 }
0x17ff   :  { %5526 = vmatprep.subr.mxu0 %v6101_v30 }
0x1801   :  { %5524 = vmatmul.mubr.msk.f32.vlgmr.msra.gmra.mrb[28].mxu0 %vm125_vm0, %v3170_v51 }
0x1802   :  { %5528 = vmatprep.mubr.msk.f32.mxu0 %vm6102_vm2, %v6101_v30 }
0x18c9   :  { %v2852_v38 = vpop.f32.mrb[24].mxu0 }
0x18ca   :  { %v5496_v58 = vpop.f32.mrb[25].mxu0 }
0x18ce   :  { %v3019_v60 = vpop.f32.mrb[26].mxu0 }
0x18cf   :  { %v5506_v61 = vpop.f32.mrb[27].mxu0  ;;  %5512 = vmatmul.mubr.msk.f32.vlgmr.msra.gmra.mrb[30].mxu1 %vm125_vm0, %v3019_v60 }
0x18d0   :  { %5790 = vmatpush3.bf16.msra.mxu1 %v6807_v59  ;;  %5518 = vmatprep.mubr.msk.f32.mxu1 %vm6102_vm2, %v6101_v30 }
0x18d1   :  { %5791 = vmatprep.subr.bf16.mxu1 %v6110_v1 }
0x18d4   :  { %v3243_v62 = vpop.f32.mrb[28].mxu0 }
0x18d5   :  { %v3247_v63 = vmul.f32 0.25, %v3243_v62  ;;  %v5525_v0 = vpop.f32.mrb[29].mxu0 }
0x18d7   :  { %5519 = vmatmul.mubr.msk.f32.vlgmr.msra.gmra.mrb[30].mxu1 %vm125_vm0, %v2852_v38  ;;  %v3248_v55 = vsel %vm409_vm3, %v3247_v63, -inf }
0x18d8   :  { %3249 = vmax.xlane.f32.xlu0 %v3248_v55  ;;  %5535 = vmatprep.mubr.msk.f32.mxu1 %vm6102_vm2, %v6101_v30 }
0x18d9   :  { %5793 = vmatpush3.bf16.msra.mxu1 %v6832_v12 }
0x18da   :  { %5543 = vmatprep.subr.mxu1 %v6101_v30 }
0x18ee   :  { %3259 = vrot.lane.b32.xlu0 %v6744_v16, %s6103_s19 }
0x18f2   :  { %3409 = vrot.lane.b32.xlu0 %v6742_v13, %s6108_s27 }
0x1965   :  { %v3250_v3 = vpop.xlane.xlu0 %3249 }
0x1966   :  { %v3251_v4 = vsub.f32 %v3247_v63, %v3250_v3 }
0x1968   :  { %v3252_v5 = vmul.f32 1.442695, %v3251_v4 }
0x1969   :  { %v3260_v7 = vpop.permute.xlu0 %3259 }
0x196a   :  { %5961 = vpow2.f32 %v3252_v5  ;;  %5527 = vmatpush3.msra.mxu0 %v3260_v7 }
0x196b   :  { %5538 = vmatprep.subr.mxu0 %v6101_v30 }
0x1974   :  { %v5962_v8 = vpop.eup %5961 }
0x1975   :  { %v3254_v10 = vsel %vm409_vm3, %v5962_v8, 0.0 }
0x1976   :  { %3255 = vadd.xlane.f32.xlu1 %v3254_v10 }
0x1987   :  { %3411 = vrot.lane.b32.xlu1 %v6742_v13, %s6107_s26  ;;  %v3410_v13 = vpop.permute.xlu0 %3409 }
0x1a03   :  { %v3256_v14 = vpop.xlane.xlu1 %3255 }
0x1a04   :  { %5963 = vrcp.f32 %v3256_v14 }
0x1a07   :  { %v3412_v41 = vpop.permute.xlu1 %3411 }
0x1a0e   :  { %v5964_v2 = vpop.eup %5963 }
0x1a0f   :  { %v3258_v42 = vmul.f32 %v5964_v2, %v5962_v8 }
0x1a11   :  { %5529 = vmatmul.mubr.msk.f32.vlgmr.msra.gmra.mrb[30].mxu0 %vm409_vm3, %v3258_v42 }
0x1a12   :  { %5539 = vmatpush3.xpose.msk.msra.mxu0 %vm125_vm0, %v3412_v41  ;;  %5540 = vmatprep.mubr.msk.f32.mxu0 %vm6102_vm2, %v6101_v30 }
0x1a13   :  { %5555 = vmatprep.subr.mxu0 %v6101_v30 }
0x1a15   :  { %5541 = vmatmul.mubr.msk.f32.vlgmr.msra.gmra.mrb[32].mxu0 %vm125_vm0, %v3410_v13 }
0x1a16   :  { %5557 = vmatprep.mubr.msk.f32.mxu0 %vm6102_vm2, %v6101_v30 }
0x1ae4   :  { %v3331_v44 = vpop.f32.mrb[30].mxu0 }
0x1ae5   :  { %v5530_v19 = vpop.f32.mrb[31].mxu0  ;;  %5536 = vmatmul.mubr.msk.f32.vlgmr.msra.gmra.mrb[30].mxu1 %vm125_vm0, %v3331_v44 }
0x1ae6   :  { %5545 = vmatprep.mubr.msk.f32.mxu1 %vm6102_vm2, %v6101_v30 }
0x1ae8   :  { %v3483_v20 = vpop.f32.mrb[32].mxu0 }
0x1ae9   :  { %v3487_v21 = vmul.f32 0.25, %v3483_v20  ;;  %v5542_v22 = vpop.f32.mrb[33].mxu0 }
0x1aeb   :  { %v3488_v23 = vsel %vm409_vm3, %v3487_v21, -inf }
0x1aec   :  { %3489 = vmax.xlane.f32.xlu0 %v3488_v23 }
0x1b02   :  { %3499 = vrot.lane.b32.xlu0 %v6744_v16, %s6108_s27 }
0x1b06   :  { %3814 = vrot.lane.b32.xlu0 %v6750_v17, %s6109_s1 }
0x1b0a   :  { %3812 = vrot.lane.b32.xlu0 %v6750_v17, %s6106_s10 }
0x1b79   :  { %v3490_v24 = vpop.xlane.xlu0 %3489 }
0x1b7a   :  { %v3491_v25 = vsub.f32 %v3487_v21, %v3490_v24 }
0x1b7c   :  { %v3492_v26 = vmul.f32 1.442695, %v3491_v25 }
0x1b7d   :  { %v3500_v27 = vpop.permute.xlu0 %3499 }
0x1b7e   :  { %5965 = vpow2.f32 %v3492_v26  ;;  %5544 = vmatpush3.msra.mxu1 %v3500_v27 }
0x1b7f   :  { %5794 = vmatprep.subr.bf16.mxu1 %v6110_v1 }
0x1b81   :  { %v3815_v15 = vpop.permute.xlu0 %3814 }
0x1b85   :  { %v3813_v46 = vpop.permute.xlu0 %3812 }
0x1b88   :  { %v5966_v39 = vpop.eup %5965 }
0x1b89   :  { %v3494_v28 = vsel %vm409_vm3, %v5966_v39, 0.0 }
0x1b8a   :  { %3495 = vadd.xlane.f32.xlu1 %v3494_v28 }
0x1b9b   :  { %3651 = vrot.lane.b32.xlu1 %v6750_v17, %s6104_s30 }
0x1c17   :  { %v3496_v16 = vpop.xlane.xlu1 %3495 }
0x1c18   :  { %5967 = vrcp.f32 %v3496_v16 }
0x1c1b   :  { %v3652_v29 = vpop.permute.xlu1 %3651 }
0x1c1c   :  { %5556 = vmatpush3.xpose.msk.msra.mxu0 %vm125_vm0, %v3652_v29 }
0x1c1d   :  { %5560 = vmatprep.subr.mxu0 %v6101_v30 }
0x1c1f   :  { %5558 = vmatmul.mubr.msk.f32.vlgmr.msra.gmra.mrb[34].mxu0 %vm125_vm0, %v6750_v17 }
0x1c20   :  { %5561 = vmatpush3.msra.mxu0 %v6752_v18  ;;  %5562 = vmatprep.mubr.msk.f32.mxu0 %vm6102_vm2, %v6101_v30 }
0x1c21   :  { %5570 = vmatprep.subr.mxu0 %v6101_v30 }
0x1c22   :  { %v5968_v32 = vpop.eup %5967 }
0x1c23   :  { %v3498_v34 = vmul.f32 %v5968_v32, %v5966_v39 }
0x1c25   :  { %5546 = vmatmul.mubr.msk.f32.vlgmr.msra.gmra.mrb[32].mxu1 %vm409_vm3, %v3498_v34 }
0x1c26   :  { %5796 = vmatpush3.bf16.msra.mxu1 %v6872_v33  ;;  %5552 = vmatprep.mubr.msk.f32.mxu1 %vm6102_vm2, %v6101_v30 }
0x1c27   :  { %5565 = vmatprep.subr.mxu1 %v6101_v30 }
0x1cf2   :  { %v3723_v35 = vpop.f32.mrb[34].mxu0 }
0x1cf3   :  { %v3727_v36 = vmul.f32 0.25, %v3723_v35  ;;  %v5559_v37 = vpop.f32.mrb[35].mxu0 }
0x1cf5   :  { %v3728_v40 = vsel %vm409_vm3, %v3727_v36, -inf }
0x1cf6   :  { %3729 = vmax.xlane.f32.xlu0 %v3728_v40 }
0x1cf8   :  { %v3571_v43 = vpop.f32.mrb[32].mxu1 }
0x1cf9   :  { %v5547_v45 = vpop.f32.mrb[33].mxu1  ;;  %5553 = vmatmul.mubr.msk.f32.vlgmr.msra.gmra.mrb[30].mxu1 %vm125_vm0, %v3571_v43 }
0x1cfa   :  { %5566 = vmatpush3.xpose.msk.msra.mxu1 %vm125_vm0, %v3815_v15  ;;  %5567 = vmatprep.mubr.msk.f32.mxu1 %vm6102_vm2, %v6101_v30 }
0x1cfb   :  { %5797 = vmatprep.subr.bf16.mxu1 %v6110_v1 }
0x1cfd   :  { %5568 = vmatmul.mubr.msk.f32.vlgmr.msra.gmra.mrb[34].mxu1 %vm125_vm0, %v3813_v46 }
0x1cfe   :  { %5799 = vmatpush3.bf16.msra.mxu1 %v6797_v56  ;;  %5579 = vmatprep.mubr.msk.f32.mxu1 %vm6102_vm2, %v6101_v30 }
0x1cff   :  { %5800 = vmatprep.subr.bf16.mxu1 %v6110_v1 }
0x1d83   :  { %v3730_v47 = vpop.xlane.xlu0 %3729 }
0x1d84   :  { %v3731_v50 = vsub.f32 %v3727_v36, %v3730_v47 }
0x1d86   :  { %v3732_v51 = vmul.f32 1.442695, %v3731_v50 }
0x1d88   :  { %5969 = vpow2.f32 %v3732_v51 }
0x1d92   :  { %v5970_v53 = vpop.eup %5969 }
0x1d93   :  { %v3734_v54 = vsel %vm409_vm3, %v5970_v53, 0.0 }
0x1d94   :  { %3735 = vadd.xlane.f32.xlu0 %v3734_v54 }
0x1dcc   :  { %v3644_v38 = vpop.f32.mrb[30].mxu1 }
0x1dcd   :  { %3649 = vst.msk [vmem:[#allocation2] sm:$0xff] %vm239_vm1, %v3644_v38  ;;  %v5554_v49 = vpop.f32.mrb[31].mxu1 }
0x1dd0   :  { %v3886_v57 = vpop.f32.mrb[34].mxu1 }
0x1dd1   :  { %v3890_v58 = vmul.f32 0.25, %v3886_v57  ;;  %v5569_v56 = vpop.f32.mrb[35].mxu1 }
0x1dd3   :  { %v3891_v60 = vsel %vm409_vm3, %v3890_v58, -inf }
0x1dd4   :  { %3892 = vmax.xlane.f32.xlu1 %v3891_v60  ;;  %v4606_v31 = vld [vmem:[#allocation2] sm:$0xff] }
0x1de5   :  { %4127 = vrot.lane.b32.xlu1 %v6750_v17, %s6105_s21 }
0x1de9   :  { %4125 = vrot.lane.b32.xlu1 %v6750_v17, %s6103_s19 }
0x1e21   :  { %v3736_v61 = vpop.xlane.xlu0 %3735 }
0x1e22   :  { %5971 = vrcp.f32 %v3736_v61 }
0x1e2c   :  { %v5972_v62 = vpop.eup %5971 }
0x1e2d   :  { %v3738_v63 = vmul.f32 %v5972_v62, %v5970_v53 }
0x1e2f   :  { %5563 = vmatmul.mubr.msk.f32.vlgmr.msra.gmra.mrb[36].mxu0 %vm409_vm3, %v3738_v63 }
0x1e30   :  { %5572 = vmatprep.mubr.msk.f32.mxu0 %vm6102_vm2, %v6101_v30 }
0x1e61   :  { %v3893_v0 = vpop.xlane.xlu1 %3892 }
0x1e62   :  { %v3894_v55 = vsub.f32 %v3890_v58, %v3893_v0 }
0x1e64   :  { %v3895_v3 = vmul.f32 1.442695, %v3894_v55 }
0x1e65   :  { %v4128_v14 = vpop.permute.xlu1 %4127 }
0x1e66   :  { %5973 = vpow2.f32 %v3895_v3 }
0x1e69   :  { %v4126_v42 = vpop.permute.xlu1 %4125 }
0x1e70   :  { %v5974_v4 = vpop.eup %5973 }
0x1e71   :  { %v3897_v5 = vsel %vm409_vm3, %v5974_v4, 0.0 }
0x1e72   :  { %3898 = vadd.xlane.f32.xlu0 %v3897_v5 }
0x1e88   :  { %3903 = vrot.lane.b32.xlu0 %v6752_v18, %s6106_s10 }
0x1eff   :  { %v3899_v7 = vpop.xlane.xlu0 %3898 }
0x1f00   :  { %5975 = vrcp.f32 %v3899_v7 }
0x1f02   :  { %v3808_v8 = vpop.f32.mrb[36].mxu0 }
0x1f03   :  { %v5564_v10 = vpop.f32.mrb[37].mxu0  ;;  %v3904_v11 = vpop.permute.xlu0 %3903 }
0x1f04   :  { %5571 = vmatpush3.msra.mxu0 %v3904_v11 }
0x1f05   :  { %5589 = vmatprep.subr.mxu0 %v6101_v30 }
0x1f0a   :  { %v5976_v48 = vpop.eup %5975 }
0x1f0b   :  { %v3901_v2 = vmul.f32 %v5976_v48, %v5974_v4 }
0x1f0d   :  { %5573 = vmatmul.mubr.msk.f32.vlgmr.msra.gmra.mrb[38].mxu0 %vm409_vm3, %v3901_v2 }
0x1f0e   :  { %5590 = vmatpush3.xpose.msk.msra.mxu0 %vm125_vm0, %v4128_v14  ;;  %5591 = vmatprep.mubr.msk.f32.mxu0 %vm6102_vm2, %v6101_v30 }
0x1f0f   :  { %5594 = vmatprep.subr.mxu0 %v6101_v30 }
0x1f11   :  { %5592 = vmatmul.mubr.msk.f32.vlgmr.msra.gmra.mrb[40].mxu0 %vm125_vm0, %v4126_v42 }
0x1f12   :  { %5596 = vmatprep.mubr.msk.f32.mxu0 %vm6102_vm2, %v6101_v30 }
0x1fe0   :  { %v3975_v41 = vpop.f32.mrb[38].mxu0 }
0x1fe1   :  { %v5574_v13 = vpop.f32.mrb[39].mxu0  ;;  %5580 = vmatmul.mubr.msk.f32.vlgmr.msra.gmra.mrb[36].mxu1 %vm125_vm0, %v3975_v41  ;;  %v6966_v41 = vld [vmem:[%s7062_s8 + $0x1] ss:$0 sm:$0xff] }
0x1fe2   :  { %5802 = vmatpush3.bf16.msra.mxu1 %v6807_v59  ;;  %5586 = vmatprep.mubr.msk.f32.mxu1 %vm6102_vm2, %v6101_v30 }
0x1fe3   :  { %5803 = vmatprep.subr.bf16.mxu1 %v6110_v1 }
0x1fe4   :  { %v4199_v44 = vpop.f32.mrb[40].mxu0 }
0x1fe5   :  { %v4203_v19 = vmul.f32 0.25, %v4199_v44  ;;  %v5593_v20 = vpop.f32.mrb[41].mxu0  ;;  %v6971_v44 = vld [vmem:[%s7063_s9 + $0x1] ss:$0 sm:$0xff] }
0x1fe7   :  { %v4204_v21 = vsel %vm409_vm3, %v4203_v19, -inf }
0x1fe8   :  { %4205 = vmax.xlane.f32.xlu0 %v4204_v21  ;;  %v4681_v21 = vld [vmem:[#allocation9 + $0x40] sm:$0xff] }
0x1fe9   :  { %5587 = vmatmul.mubr.msk.f32.vlgmr.msra.gmra.mrb[36].mxu1 %vm125_vm0, %v3808_v8 }
0x1fea   :  { %5805 = vmatpush3.bf16.msra.mxu1 %v6832_v12  ;;  %5603 = vmatprep.mubr.msk.f32.mxu1 %vm6102_vm2, %v6101_v30 }
0x1feb   :  { %5611 = vmatprep.subr.mxu1 %v6101_v30 }
0x1ffe   :  { %4215 = vrot.lane.b32.xlu0 %v6752_v18, %s6103_s19 }
0x2002   :  { %4365 = vrot.lane.b32.xlu0 %v6750_v17, %s6108_s27 }
0x2075   :  { %v4206_v59 = vpop.xlane.xlu0 %4205 }
0x2076   :  { %v4207_v22 = vsub.f32 %v4203_v19, %v4206_v59  ;;  %v4682_v59 = vld [vmem:[#allocation9 + $0x48] sm:$0xff] }
0x2078   :  { %v4208_v23 = vmul.f32 1.442695, %v4207_v22  ;;  %v5809_v22 = vpack.c.bf16 %v4682_v59, %v4681_v21 }
0x2079   :  { %v4216_v24 = vpop.permute.xlu0 %4215 }
0x207a   :  { %5977 = vpow2.f32 %v4208_v23  ;;  %5595 = vmatpush3.msra.mxu0 %v4216_v24  ;;  %v4683_v23 = vld [vmem:[#allocation9 + $0x50] sm:$0xff]  ;;  %v4684_v24 = vld [vmem:[#allocation9 + $0x58] sm:$0xff] }
0x207b   :  { %5606 = vmatprep.subr.mxu0 %v6101_v30 }
0x207d   :  { %v4366_v16 = vpop.permute.xlu0 %4365 }
0x2084   :  { %v5978_v12 = vpop.eup %5977 }
0x2085   :  { %v4210_v25 = vsel %vm409_vm3, %v5978_v12, 0.0 }
0x2086   :  { %4211 = vadd.xlane.f32.xlu1 %v4210_v25  ;;  %v4685_v25 = vld [vmem:[#allocation9 + $0x60] sm:$0xff] }
0x2097   :  { %4367 = vrot.lane.b32.xlu1 %v6750_v17, %s6107_s26  ;;  %v5085_v17 = vld [vmem:[%s7061_s7 + $0x1] ss:$0 sm:$0xff] }
0x2098   :  { %v4616_v32 = vadd.f32 %v5085_v17, %v4606_v31  ;;  %v5095_v31 = vld [vmem:[%s7066_s12 + $0x88] sm:$0xff] }
0x209a   :  { %v4618_v40 = vadd.f32 %v4616_v32, %v6723_v6  ;;  %v5097_v32 = vld [vmem:[%s7066_s12 + $0x98] sm:$0xff] }
0x209c   :  { %v4624_v15 = vsel %vm239_vm1, %v4618_v40, 0.0 }
0x2113   :  { %v4212_v26 = vpop.xlane.xlu1 %4211 }
0x2114   :  { %5979 = vrcp.f32 %v4212_v26  ;;  %v4686_v26 = vld [vmem:[#allocation9 + $0x68] sm:$0xff] }
0x2117   :  { %v4368_v28 = vpop.permute.xlu1 %4367 }
0x211e   :  { %v5980_v27 = vpop.eup %5979 }
0x211f   :  { %v4214_v39 = vmul.f32 %v5980_v27, %v5978_v12  ;;  %v5813_v12 = vpack.c.bf16 %v4684_v24, %v4683_v23  ;;  %v5817_v27 = vpack.c.bf16 %v4686_v26, %v4685_v25 }
0x2121   :  { %5597 = vmatmul.mubr.msk.f32.vlgmr.msra.gmra.mrb[42].mxu0 %vm409_vm3, %v4214_v39  ;;  %v4687_v39 = vld [vmem:[#allocation9 + $0x70] sm:$0xff] }
0x2122   :  { %5607 = vmatpush3.xpose.msk.msra.mxu0 %vm125_vm0, %v4368_v28  ;;  %5608 = vmatprep.mubr.msk.f32.mxu0 %vm6102_vm2, %v6101_v30  ;;  %v4688_v28 = vld [vmem:[#allocation9 + $0x78] sm:$0xff] }
0x2123   :  { %5810 = vmatprep.subr.bf16.mxu0 %v5809_v22 }
0x2125   :  { %5609 = vmatmul.mubr.msk.f32.vlgmr.msra.gmra.mrb[44].mxu0 %vm125_vm0, %v4366_v16  ;;  %v5821_v16 = vpack.c.bf16 %v4688_v28, %v4687_v39 }
0x2126   :  { %5812 = vmatpush3.bf16.msra.mxu0 %v5809_v22 }
0x2127   :  { %5814 = vmatprep.subr.bf16.mxu0 %v5813_v12 }
0x212a   :  { %5816 = vmatpush3.bf16.msra.mxu0 %v5813_v12 }
0x212b   :  { %5818 = vmatprep.subr.bf16.mxu0 %v5817_v27 }
0x212e   :  { %5820 = vmatpush3.bf16.msra.mxu0 %v5817_v27 }
0x212f   :  { %5822 = vmatprep.subr.bf16.mxu0 %v5821_v16 }
0x2132   :  { %5824 = vmatpush3.bf16.msra.mxu0 %v5821_v16 }
0x21f4   :  { %v4287_v29 = vpop.f32.mrb[42].mxu0 }
0x21f5   :  { %v5598_v52 = vpop.f32.mrb[43].mxu0  ;;  %5604 = vmatmul.mubr.msk.f32.vlgmr.msra.gmra.mrb[36].mxu1 %vm125_vm0, %v4287_v29  ;;  %v5094_v29 = vld [vmem:[%s7066_s12 + $0x80] sm:$0xff] }
0x21f6   :  { %5613 = vmatprep.mubr.msk.f32.mxu1 %vm6102_vm2, %v6101_v30  ;;  %v5825_v52 = vpack.c.bf16 %v5095_v31, %v5094_v29 }
0x21f8   :  { %v4439_v34 = vpop.f32.mrb[44].mxu0 }
0x21f9   :  { %v4443_v35 = vmul.f32 0.25, %v4439_v34  ;;  %v5610_v36 = vpop.f32.mrb[45].mxu0 }
0x21fa   :  { %v5099_v36 = vld [vmem:[%s7066_s12 + $0xa8] sm:$0xff] }
0x21fb   :  { %v4444_v37 = vsel %vm409_vm3, %v4443_v35, -inf }
0x21fc   :  { %4445 = vmax.xlane.f32.xlu1 %v4444_v37 }
0x2200   :  { %4625 = vadd.xlane.f32.xlu1 %v4624_v15  ;;  %v5101_v15 = vld [vmem:[%s7066_s12 + $0xb8] sm:$0xff] }
0x2289   :  { %v4446_v43 = vpop.xlane.xlu1 %4445 }
0x228a   :  { %v4447_v45 = vsub.f32 %v4443_v35, %v4446_v43  ;;  %v5098_v35 = vld [vmem:[%s7066_s12 + $0xa0] sm:$0xff] }
0x228b   :  { %v5833_v37 = vpack.c.bf16 %v5099_v36, %v5098_v35 }
0x228c   :  { %v4448_v46 = vmul.f32 1.442695, %v4447_v45  ;;  %v5102_v45 = vld [vmem:[%s7066_s12 + $0xc0] sm:$0xff] }
0x228d   :  { %v4626_v58 = vpop.xlane.xlu1 %4625 }
0x228e   :  { %5981 = vpow2.f32 %v4448_v46  ;;  %v4630_v56 = vmul.f32 0.015625, %v4626_v58  ;;  %v5103_v46 = vld [vmem:[%s7066_s12 + $0xc8] sm:$0xff] }
0x2290   :  { %v4632_v60 = vsub.f32 %v4618_v40, %v4630_v56  ;;  %v5100_v40 = vld [vmem:[%s7066_s12 + $0xb0] sm:$0xff] }
0x2291   :  { %v5837_v43 = vpack.c.bf16 %v5101_v15, %v5100_v40 }
0x2292   :  { %v4634_v63 = vmul.f32 %v4632_v60, %v4632_v60 }
0x2298   :  { %v5982_v47 = vpop.eup %5981 }
0x2299   :  { %v4450_v50 = vsel %vm409_vm3, %v5982_v47, 0.0 }
0x229a   :  { %4451 = vadd.xlane.f32.xlu0 %v4450_v50  ;;  %v5104_v50 = vld [vmem:[%s7066_s12 + $0xd0] sm:$0xff] }
0x22b0   :  { %4455 = vrot.lane.b32.xlu0 %v6752_v18, %s6108_s27 }
0x2327   :  { %v4452_v51 = vpop.xlane.xlu0 %4451 }
0x2328   :  { %5983 = vrcp.f32 %v4452_v51  ;;  %v5105_v51 = vld [vmem:[%s7066_s12 + $0xd8] sm:$0xff] }
0x232b   :  { %v4456_v53 = vpop.permute.xlu0 %4455 }
0x232c   :  { %5612 = vmatpush3.msra.mxu1 %v4456_v53  ;;  %v5845_v53 = vpack.c.bf16 %v5105_v51, %v5104_v50  ;;  %v5114_v50 = vld [vmem:[%s7068_s14 + $0x1] ss:$0 sm:$0xff] }
0x232d   :  { %5806 = vmatprep.subr.bf16.mxu1 %v6110_v1 }
0x2332   :  { %v5984_v6 = vpop.eup %5983 }
0x2333   :  { %v4454_v54 = vmul.f32 %v5984_v6, %v5982_v47  ;;  %v5841_v47 = vpack.c.bf16 %v5103_v46, %v5102_v45  ;;  %v5106_v6 = vld [vmem:[%s7066_s12 + $0xe0] sm:$0xff] }
0x2335   :  { %5614 = vmatmul.mubr.msk.f32.vlgmr.msra.gmra.mrb[38].mxu1 %vm409_vm3, %v4454_v54  ;;  %v5107_v54 = vld [vmem:[%s7066_s12 + $0xe8] sm:$0xff] }
0x2336   :  { %5808 = vmatpush3.bf16.msra.mxu1 %v6872_v33  ;;  %5620 = vmatprep.mubr.msk.f32.mxu1 %vm6102_vm2, %v6101_v30  ;;  %v4636_v30 = vsel %vm239_vm1, %v4634_v63, 0.0 }
0x2337   :  { %5826 = vmatprep.subr.bf16.mxu1 %v5825_v52 }
0x2408   :  { %v4527_v38 = vpop.f32.mrb[38].mxu1 }
0x2409   :  { %v5615_v49 = vpop.f32.mrb[39].mxu1  ;;  %5621 = vmatmul.mubr.msk.f32.vlgmr.msra.gmra.mrb[36].mxu1 %vm125_vm0, %v4527_v38  ;;  %v5849_v38 = vpack.c.bf16 %v5107_v54, %v5106_v6  ;;  %v5115_v54 = vld [vmem:[%s7069_s15 + $0x1] ss:$0 sm:$0xff] }
0x240a   :  { %5828 = vmatpush3.bf16.msra.mxu1 %v5825_v52 }
0x24dc   :  { %v4600_v18 = vpop.f32.mrb[36].mxu1 }
0x24dd   :  { %4605 = vst.msk [vmem:[#allocation2 + $0x8] sm:$0xff] %vm239_vm1, %v4600_v18  ;;  %v5622_v57 = vpop.f32.mrb[37].mxu1 }
0x24e4   :  { %v4607_v1 = vld [vmem:[#allocation2 + $0x8] sm:$0xff] }
0x24e5   :  { %v4617_v61 = vadd.f32 %v5085_v17, %v4607_v1  ;;  %v5096_v17 = vld [vmem:[%s7066_s12 + $0x90] sm:$0xff] }
0x24e6   :  { %v5829_v34 = vpack.c.bf16 %v5097_v32, %v5096_v17 }
0x24e7   :  { %v4619_v62 = vadd.f32 %v4617_v61, %v6729_v9 }
0x24e8   :  { %5830 = vmatprep.subr.bf16.mxu1 %v5829_v34 }
0x24e9   :  { %v4627_v33 = vsel %vm239_vm1, %v4619_v62, 0.0  ;;  %5832 = vmatpush3.bf16.msra.mxu1 %v5829_v34 }
0x24ea   :  { %4628 = vadd.xlane.f32.xlu1 %v4627_v33  ;;  %5834 = vmatprep.subr.bf16.mxu1 %v5833_v37 }
0x24ed   :  { %5836 = vmatpush3.bf16.msra.mxu1 %v5833_v37 }
0x24ee   :  { %4637 = vadd.xlane.f32.xlu1 %v4636_v30  ;;  %5838 = vmatprep.subr.bf16.mxu1 %v5837_v43 }
0x24f1   :  { %5840 = vmatpush3.bf16.msra.mxu1 %v5837_v43 }
0x24f2   :  { %5842 = vmatprep.subr.bf16.mxu1 %v5841_v47 }
0x24f5   :  { %5844 = vmatpush3.bf16.msra.mxu1 %v5841_v47 }
0x24f6   :  { %5846 = vmatprep.subr.bf16.mxu1 %v5845_v53 }
0x24f9   :  { %5848 = vmatpush3.bf16.msra.mxu1 %v5845_v53 }
0x24fa   :  { %5850 = vmatprep.subr.bf16.mxu1 %v5849_v38 }
0x24fd   :  { %5852 = vmatpush3.bf16.msra.mxu1 %v5849_v38 }
0x2577   :  { %v4629_v0 = vpop.xlane.xlu1 %4628 }
0x2578   :  { %v4631_v55 = vmul.f32 0.015625, %v4629_v0  ;;  %v5108_v0 = vld [vmem:[%s7066_s12 + $0xf0] sm:$0xff] }
0x257a   :  { %v6958_v3 = vsub.f32 %v4619_v62, %v4631_v55  ;;  %v5109_v55 = vld [vmem:[%s7066_s12 + $0xf8] sm:$0xff] }
0x257b   :  { %v4638_v4 = vpop.xlane.xlu1 %4637 }
0x257c   :  { %v4642_v5 = vmul.f32 0.015625, %v4638_v4  ;;  %v4635_v7 = vmul.f32 %v6958_v3, %v6958_v3  ;;  %v5853_v4 = vpack.c.bf16 %v5109_v55, %v5108_v0 }
0x257e   :  { %v4644_v8 = vadd.f32 1e-05, %v4642_v5  ;;  %v4639_v10 = vsel %vm239_vm1, %v4635_v7, 0.0  ;;  %5854 = vmatprep.subr.bf16.mxu1 %v5853_v4 }
0x257f   :  { %4640 = vadd.xlane.f32.xlu1 %v4639_v10  ;;  %5856 = vmatpush3.bf16.msra.mxu1 %v5853_v4 }
0x2580   :  { %5985 = vrsqrt.f32 %v4644_v8  ;;  %vm4648_vm12 = vcmp.eq.f32.partialorder %v4644_v8, inf  ;;  %v4651_v48 = vand.u32 2147483648, %v4644_v8  ;;  %vm4650_vm13 = vcmp.eq.f32.partialorder %v4644_v8, 0.0 }
0x258a   :  { %v5986_v9 = vpop.eup %5985 }
0x258b   :  { %v4647_v11 = vmul.f32 %v5986_v9, %v4644_v8 }
0x258d   :  { %v4649_v14 = vsel %vm4648_vm12, %v4644_v8, %v4647_v11 }
0x258e   :  { %v4652_v2 = vsel %vm4650_vm13, %v4651_v48, %v4649_v14  ;;  %v5111_v48 = vld [vmem:[%s7067_s13 + $0x1] ss:$0 sm:$0xff] }
0x258f   :  { %5987 = vrcp.f32 %v4652_v2 }
0x2599   :  { %v5988_v42 = vpop.eup %5987 }
0x259a   :  { %v4661_v13 = vmul.f32 %v5988_v42, %v4632_v60 }
0x259c   :  { %v4670_v19 = vmul.f32 %v6966_v41, %v4661_v13 }
0x259e   :  { %v6975_v20 = vadd.f32 %v6971_v44, %v4670_v19 }
0x25a0   :  { %5639 = vmatprep.mubr.msk.f32.mxu0 %vm239_vm1, %v6975_v20 }
0x260c   :  { %v4641_v49 = vpop.xlane.xlu1 %4640 }
0x260d   :  { %v4643_v18 = vmul.f32 0.015625, %v4641_v49 }
0x260f   :  { %v4645_v57 = vadd.f32 1e-05, %v4643_v18 }
0x2611   :  { %5989 = vrsqrt.f32 %v4645_v57  ;;  %vm4655_vm14 = vcmp.eq.f32.partialorder %v4645_v57, inf  ;;  %v4658_v1 = vand.u32 2147483648, %v4645_v57  ;;  %vm4657_vm15 = vcmp.eq.f32.partialorder %v4645_v57, 0.0 }
0x261b   :  { %v5990_v58 = vpop.eup %5989 }
0x261c   :  { %v4654_v56 = vmul.f32 %v5990_v58, %v4645_v57 }
0x261e   :  { %v4656_v60 = vsel %vm4655_vm14, %v4645_v57, %v4654_v56 }
0x261f   :  { %v4659_v61 = vsel %vm4657_vm15, %v4658_v1, %v4656_v60  ;;  %v5116_v1 = vld [vmem:[%s7070_s16] ss:$0 sm:$0xff] }
0x2620   :  { %5991 = vrcp.f32 %v4659_v61 }
0x262a   :  { %v5992_v62 = vpop.eup %5991 }
0x262b   :  { %v4663_v33 = vmul.f32 %v5992_v62, %v6958_v3  ;;  %v5091_v3 = vld [vmem:[%s7065_s11 + $0x1] ss:$0 sm:$0xff] }
0x262d   :  { %v4671_v63 = vmul.f32 %v6966_v41, %v4663_v33  ;;  %v5117_v33 = vld [vmem:[#allocation3] ss:$0 sm:$0xff] }
0x262f   :  { %v4679_v30 = vadd.f32 %v6971_v44, %v4671_v63 }
0x2631   :  { %5640 = vmatmul.mubr.msk.f32.vlgmr.msra.gmra.mrb[46].mxu0 %vm239_vm1, %v4679_v30 }
0x2704   :  { %v5641_v5 = vpop.f32.mrb[46].mxu0 }
0x2705   :  { %v4775_v7 = vadd.f32 %v5641_v5, %v5091_v3  ;;  %v4769_v8 = vpop.f32.mrb[47].mxu0 }
0x2706   :  { %v4770_v10 = vadd.f32 %v5091_v3, %v4769_v8 }
0x2707   :  { %v4779_v11 = vmax.f32 %v4775_v7, 0.0 }
0x2708   :  { %v4778_v9 = vmax.f32 %v4770_v10, 0.0 }
0x270a   :  { %5674 = vmatprep.mubr.f32.mxu1 %v4778_v9 }
0x270b   :  { %5675 = vmatmul.mubr.f32.vlgmr.msra.gmra.mrb[40].mxu1 %v4779_v11 }
0x27de   :  { %v5676_v14 = vpop.f32.mrb[40].mxu1 }
0x27df   :  { %v4871_v2 = vpop.f32.mrb[41].mxu1  ;;  %v4877_v42 = vadd.f32 %v5676_v14, %v5111_v48 }
0x27e0   :  { %v4872_v41 = vadd.f32 %v5111_v48, %v4871_v2 }
0x27e1   :  { %v4881_v19 = vadd.f32 %v4877_v42, %v4679_v30 }
0x27e2   :  { %v4880_v13 = vadd.f32 %v4872_v41, %v6975_v20 }
0x27e3   :  { %v4889_v21 = vsel %vm239_vm1, %v4881_v19, 0.0 }
0x27e4   :  { %v4886_v44 = vsel %vm239_vm1, %v4880_v13, 0.0 }
0x27e5   :  { %4887 = vadd.xlane.f32.xlu1 %v4886_v44 }
0x27e9   :  { %4890 = vadd.xlane.f32.xlu1 %v4889_v21 }
0x2872   :  { %v4888_v59 = vpop.xlane.xlu1 %4887 }
0x2873   :  { %v4892_v22 = vmul.f32 0.015625, %v4888_v59 }
0x2875   :  { %v4894_v23 = vsub.f32 %v4880_v13, %v4892_v22 }
0x2876   :  { %v4891_v24 = vpop.xlane.xlu1 %4890 }
0x2877   :  { %v4893_v12 = vmul.f32 0.015625, %v4891_v24  ;;  %v4896_v25 = vmul.f32 %v4894_v23, %v4894_v23 }
0x2879   :  { %v4895_v26 = vsub.f32 %v4881_v19, %v4893_v12  ;;  %v4898_v27 = vsel %vm239_vm1, %v4896_v25, 0.0 }
0x287a   :  { %4899 = vadd.xlane.f32.xlu0 %v4898_v27 }
0x287b   :  { %v4897_v39 = vmul.f32 %v4895_v26, %v4895_v26 }
0x287d   :  { %v4901_v20 = vsel %vm239_vm1, %v4897_v39, 0.0 }
0x287e   :  { %4902 = vadd.xlane.f32.xlu1 %v4901_v20 }
0x2907   :  { %v4900_v28 = vpop.xlane.xlu0 %4899 }
0x2908   :  { %v4904_v16 = vmul.f32 0.015625, %v4900_v28 }
0x290a   :  { %v4906_v29 = vadd.f32 1e-05, %v4904_v16 }
0x290b   :  { %v4903_v31 = vpop.xlane.xlu1 %4902 }
0x290c   :  { %5993 = vrsqrt.f32 %v4906_v29  ;;  %v4905_v17 = vmul.f32 0.015625, %v4903_v31  ;;  %vm4910_vm0 = vcmp.eq.f32.partialorder %v4906_v29, inf  ;;  %v4913_v35 = vand.u32 2147483648, %v4906_v29 }
0x290d   :  { %vm4912_vm2 = vcmp.eq.f32.partialorder %v4906_v29, 0.0 }
0x290e   :  { %v4907_v52 = vadd.f32 1e-05, %v4905_v17 }
0x2910   :  { %5995 = vrsqrt.f32 %v4907_v52  ;;  %vm4917_vm1 = vcmp.eq.f32.partialorder %v4907_v52, inf  ;;  %v4920_v43 = vand.u32 2147483648, %v4907_v52  ;;  %vm4919_vm3 = vcmp.eq.f32.partialorder %v4907_v52, 0.0 }
0x2916   :  { %v5994_v32 = vpop.eup %5993 }
0x2917   :  { %v4909_v34 = vmul.f32 %v5994_v32, %v4906_v29 }
0x2919   :  { %v4911_v36 = vsel %vm4910_vm0, %v4906_v29, %v4909_v34 }
0x291a   :  { %v4914_v37 = vsel %vm4912_vm2, %v4913_v35, %v4911_v36  ;;  %v5996_v40 = vpop.eup %5995 }
0x291b   :  { %5997 = vrcp.f32 %v4914_v37  ;;  %v4916_v15 = vmul.f32 %v5996_v40, %v4907_v52 }
0x291d   :  { %v4918_v45 = vsel %vm4917_vm1, %v4907_v52, %v4916_v15 }
0x291e   :  { %v4921_v46 = vsel %vm4919_vm3, %v4920_v43, %v4918_v45 }
0x291f   :  { %5999 = vrcp.f32 %v4921_v46 }
0x2925   :  { %v5998_v47 = vpop.eup %5997 }
0x2926   :  { %v4923_v51 = vmul.f32 %v5998_v47, %v4894_v23 }
0x2928   :  { %v4932_v53 = vmul.f32 %v5114_v50, %v4923_v51 }
0x2929   :  { %v6000_v6 = vpop.eup %5999 }
0x292a   :  { %v4925_v38 = vmul.f32 %v6000_v6, %v4895_v26  ;;  %v4940_v18 = vadd.f32 %v5115_v54, %v4932_v53 }
0x292c   :  { %v4933_v49 = vmul.f32 %v5114_v50, %v4925_v38  ;;  %v4943_v58 = vrot.slane %v4940_v18, 7 }
0x292e   :  { %v4941_v57 = vadd.f32 %v5115_v54, %v4933_v49 }
0x2930   :  { %v4946_v56 = vrot.slane %v4941_v57, 6 }
0x2932   :  { %v4949_v60 = vsel %vm4948_vm4, %v4943_v58, %v4946_v56 }
0x2933   :  { %v4957_v61 = vmul.f32 %v5116_v1, %v4949_v60 }
0x2935   :  { %v4959_v62 = vsel %vm4958_vm5, %v4957_v61, 0.0 }
0x2936   :  { %4960 = vadd.xlane.f32.xlu1 %v4959_v62 }
0x29c3   :  { %v4961_v63 = vpop.xlane.xlu1 %4960 }
0x29c4   :  { %v4969_v30 = vadd.f32 %v5117_v33, %v4961_v63 }
0x29c6   :  { %4971 = vst.msk [vmem:[%s7083_s24] sm:$0x3] %vm4970_vm6, %v4969_v30 }
0x29c7   :  { %4976 = vsyncpa [#allocation5], 1 }
0x29c8   :  { %4977 = vsyncpa [#allocation7], 1 }
0x29c9   :  { %4978 = vsyncpa [#allocation10], 1 }

</bundles_post_ra>
